<compile_context>
chip_gen: v7x
topology: tpu7x:2x2x1
jax: 0.10.0
libtpu: 0.0.40
codegen_flags: <defaults>
</compile_context>

<pallas_src>
import functools

import numpy as np
import jax
import jax.numpy as jnp
from jax import lax
from jax.experimental import pallas as pl
from jax.experimental.pallas import tpu as pltpu

EPS = 1e-5


# ------------------------------ small helpers --------------------------------
def _round_up(x, m):
    return ((x + m - 1) // m) * m


def _pad_last(x, width):
    pad = width - x.shape[-1]
    if pad == 0:
        return x
    cfg = [(0, 0)] * (x.ndim - 1) + [(0, pad)]
    return jnp.pad(x, cfg)


def _pad_axis(x, axis, size):
    pad = size - x.shape[axis]
    if pad == 0:
        return x
    cfg = [(0, 0)] * x.ndim
    cfg[axis] = (0, pad)
    return jnp.pad(x, cfg)


# ------------------------------ slab builders ---------------------------------
def _build_pred_slab(pred_logits, pred_kpts2d, pred_depth, max_depth, w,
                     DL, DK, Qp):
    """[bs, Qp, DL+DK]: cols [0:DL) = L1 values, [DL:DL+DK) = matmul values."""
    bs, Q, T, K, _ = pred_kpts2d.shape
    Kj = K - 1
    f32 = jnp.float32
    logits = pred_logits.astype(f32)
    kpts = pred_kpts2d.astype(f32)
    depth = pred_depth.astype(f32)
    md = max_depth.astype(f32).reshape(bs, 1, 1, 1)

    prob = jax.nn.softmax(logits, axis=-1)[..., 1]                 # [bs,Q,T]
    root_xy = kpts[:, :, :, 0, 0:2]                                # [bs,Q,T,2]
    root_visp = kpts[:, :, :, 0, 2]                                # [bs,Q,T]
    root_depth = depth[:, :, :, 0, 0]                              # [bs,Q,T]
    joint_xy = kpts[:, :, :, 1:, 0:2]                              # [bs,Q,T,Kj,2]
    joint_visp = kpts[:, :, :, 1:, 2]                              # [bs,Q,T,Kj]
    joint_depth = depth[:, :, :, 1:, 0]                            # [bs,Q,T,Kj]

    # Composed prediction values (L1 side), same column ordering as target.
    out_joint_xy = (joint_xy + root_xy[:, :, :, None, :]).reshape(bs, Q, 2 * T * Kj)
    out_joint_depth = (root_depth[:, :, :, None] + joint_depth / md
                       ).reshape(bs, Q, T * Kj)
    out_root_xy = root_xy.reshape(bs, Q, 2 * T)
    out_root_depth = root_depth                                    # [bs,Q,T]
    l1_seg = _pad_last(jnp.concatenate(
        [out_joint_xy, out_joint_depth, out_root_xy, out_root_depth], -1), DL)

    # Matmul side: prob (class), joint vis, root vis, per-query constant, 1.
    jv_flat = joint_visp.reshape(bs, Q, T * Kj)
    q_const = (w["joint_vis"] / (T * Kj)) * jnp.sum(jv_flat ** 2, axis=-1) \
        + (w["root_vis"] / T) * jnp.sum(root_visp ** 2, axis=-1)   # [bs,Q]
    mm_seg = _pad_last(jnp.concatenate(
        [prob, jv_flat, root_visp, q_const[..., None],
         jnp.ones((bs, Q, 1), f32)], -1), DK)

    return _pad_axis(jnp.concatenate([l1_seg, mm_seg], -1), 1, Qp)


def _build_tgt_slab(tgt_kpts2d, tgt_depth, w, DL, DK, Np):
    """[bs, Np, 2*DL+DK]: [0:DL) L1 values, [DL:2DL) scaled L1 masks,
    [2DL:2DL+DK) matmul values. Padded rows/cols are zero (contribute 0)."""
    bs, N, T, K, _ = tgt_kpts2d.shape
    Kj = K - 1
    f32 = jnp.float32
    kpts = tgt_kpts2d.astype(f32)
    depth = tgt_depth.astype(f32)

    t_root_xy = kpts[:, :, :, 0, 0:2]                              # [bs,N,T,2]
    t_root_vis = kpts[:, :, :, 0, 2]                               # [bs,N,T]
    t_root_depth = depth[:, :, :, 0, 0]                            # [bs,N,T]
    t_root_depth_ex = depth[:, :, :, 0, 1]                         # [bs,N,T]
    t_joint_xy = kpts[:, :, :, 1:, 0:2]                            # [bs,N,T,Kj,2]
    t_joint_vis = kpts[:, :, :, 1:, 2]                             # [bs,N,T,Kj]
    t_joint_depth = depth[:, :, :, 1:, 0]                          # [bs,N,T,Kj]
    t_joint_depth_ex = depth[:, :, :, 1:, 1]                       # [bs,N,T,Kj]

    # L1 target values (same column order as the prediction slab).
    l1_seg = _pad_last(jnp.concatenate(
        [t_joint_xy.reshape(bs, N, 2 * T * Kj),
         t_joint_depth.reshape(bs, N, T * Kj),
         t_root_xy.reshape(bs, N, 2 * T),
         t_root_depth], -1), DL)

    # Per-target masks, pre-scaled by weight / (denominator + eps).
    jv_sum = jnp.sum(t_joint_vis, axis=(-2, -1))                   # [bs,N]
    jd_sum = jnp.sum(t_joint_depth_ex, axis=(-2, -1))
    rv_sum = jnp.sum(t_root_vis, axis=-1)
    rd_sum = jnp.sum(t_root_depth_ex, axis=-1)

    jxy_mask = jnp.abs(jnp.broadcast_to(
        t_joint_vis[..., None], (bs, N, T, Kj, 2))).reshape(bs, N, 2 * T * Kj) \
        * (w["joint"] / (jv_sum + EPS))[..., None]
    jd_mask = jnp.abs(t_joint_depth_ex).reshape(bs, N, T * Kj) \
        * (w["joint_depth"] / (jd_sum + EPS))[..., None]
    rxy_mask = jnp.abs(jnp.broadcast_to(
        t_root_vis[..., None], (bs, N, T, 2))).reshape(bs, N, 2 * T) \
        * (w["root"] / (rv_sum + EPS))[..., None]
    rd_mask = jnp.abs(t_root_depth_ex) * (w["root_depth"] / (rd_sum + EPS))[..., None]
    mask_seg = _pad_last(jnp.concatenate(
        [jxy_mask, jd_mask, rxy_mask, rd_mask], -1), DL)

    # Matmul side: class cost + expanded MSE visibility costs.
    vis = (jnp.sum(t_joint_vis, axis=-1) > 0.0).astype(f32)        # [bs,N,T]
    vis_scaled = vis * (-w["is_human"] / (jnp.sum(vis, axis=-1) + EPS))[..., None]
    jv_flat = t_joint_vis.reshape(bs, N, T * Kj)
    n_const = (w["joint_vis"] / (T * Kj)) * jnp.sum(jv_flat ** 2, axis=-1) \
        + (w["root_vis"] / T) * jnp.sum(t_root_vis ** 2, axis=-1)  # [bs,N]
    mm_seg = _pad_last(jnp.concatenate(
        [vis_scaled,
         jv_flat * (-2.0 * w["joint_vis"] / (T * Kj)),
         t_root_vis * (-2.0 * w["root_vis"] / T),
         jnp.ones((bs, N, 1), f32),
         n_const[..., None]], -1), DK)

    return _pad_axis(jnp.concatenate([l1_seg, mask_seg, mm_seg], -1), 1, Np)


# --------------------------------- kernel -------------------------------------
def _cost_kernel(pred_ref, tgt_ref, cost_ref, *, DL, DK):
    pred = pred_ref[0]                         # [Qp, DL+DK]
    tgt = tgt_ref[0]                           # [Np, 2*DL+DK]
    out_l1 = pred[:, 0:DL]                     # [Qp, DL]   (128-aligned slices)
    pred_mm = pred[:, DL:DL + DK]              # [Qp, DK]
    tgt_l1 = tgt[:, 0:DL]                      # [Np, DL]
    l1_mask = tgt[:, DL:2 * DL]                # [Np, DL]  weight/(den+eps) folded in
    tgt_mm = tgt[:, 2 * DL:2 * DL + DK]        # [Np, DK]

    # Class cost + both MSE visibility costs as one real MXU matmul.
    mm = lax.dot_general(pred_mm, tgt_mm, (((1,), (1,)), ((), ())),
                         precision=lax.Precision.HIGHEST,
                         preferred_element_type=jnp.float32)       # [Qp, Np]

    # All four masked-L1 terms fused into one lane-dense broadcast pass.
    diff = jnp.abs(out_l1[:, None, :] - tgt_l1[None, :, :])        # [Qp, Np, DL]
    l1 = jnp.sum(diff * l1_mask[None, :, :], axis=-1)              # [Qp, Np]

    cost_ref[0] = (mm + l1).astype(cost_ref.dtype)                 # lane-dense store


def pallas_cost_matrix(pred_logits, pred_kpts2d, pred_depth,
                       tgt_kpts2d, tgt_depth, max_depth, weights):
    bs, Q, T, K, _ = pred_kpts2d.shape
    N = tgt_kpts2d.shape[1]
    DL = _round_up(3 * T * K, 128)             # fused L1 segment width
    DK = _round_up(T * (K + 1) + 2, 128)       # matmul segment width
    Qp = _round_up(Q, 8)
    Np = _round_up(N, 128)                     # lane-dense output last dim

    pred_slab = _build_pred_slab(pred_logits, pred_kpts2d, pred_depth,
                                 max_depth, weights, DL, DK, Qp)
    tgt_slab = _build_tgt_slab(tgt_kpts2d, tgt_depth, weights, DL, DK, Np)

    kernel = functools.partial(_cost_kernel, DL=DL, DK=DK)
    cost = pl.pallas_call(
        kernel,
        out_shape=jax.ShapeDtypeStruct((bs, Qp, Np), jnp.float32),
        grid=(bs,),
        in_specs=[
            pl.BlockSpec((1, Qp, DL + DK), lambda b: (b, 0, 0)),
            pl.BlockSpec((1, Np, 2 * DL + DK), lambda b: (b, 0, 0)),
        ],
        out_specs=pl.BlockSpec((1, Qp, Np), lambda b: (b, 0, 0)),
        compiler_params=pltpu.CompilerParams(
            dimension_semantics=("parallel",)),   # megacore sharding on v7x
    )(pred_slab, tgt_slab)
    return cost[:, :Q, :N]


# ------------------- host-side Hungarian (linear_sum_assignment) -------------
def linear_sum_assignment_np(cost):
    # TODO(synk): the Hungarian algorithm is inherently sequential /
    # data-dependent; it runs on host (pure numpy, scipy-compatible result),
    # matching the PyTorch reference which also calls it on .cpu().
    cost = np.asarray(cost, dtype=np.float64)
    transposed = cost.shape[0] > cost.shape[1]
    if transposed:
        cost = cost.T
    n_rows, n_cols = cost.shape
    if n_rows == 0 or n_cols == 0:
        return np.empty(0, dtype=np.int64), np.empty(0, dtype=np.int64)
    u = np.zeros(n_rows)
    v = np.zeros(n_cols)
    col4row = np.full(n_rows, -1, dtype=np.int64)
    row4col = np.full(n_cols, -1, dtype=np.int64)
    for cur_row in range(n_rows):
        shortest = np.full(n_cols, np.inf)
        path = np.full(n_cols, -1, dtype=np.int64)
        SR = np.zeros(n_rows, dtype=bool)
        SC = np.zeros(n_cols, dtype=bool)
        min_val = 0.0
        i = cur_row
        sink = -1
        while sink == -1:
            SR[i] = True
            lowest = np.inf
            index = -1
            for j in range(n_cols):
                if SC[j]:
                    continue
                r = min_val + cost[i, j] - u[i] - v[j]
                if r < shortest[j]:
                    shortest[j] = r
                    path[j] = i
                if shortest[j] < lowest or (shortest[j] == lowest
                                            and row4col[j] == -1):
                    lowest = shortest[j]
                    index = j
            min_val = lowest
            j = index
            if row4col[j] == -1:
                sink = j
            else:
                i = row4col[j]
            SC[j] = True
        u[cur_row] += min_val
        for r_ in range(n_rows):
            if SR[r_] and r_ != cur_row:
                u[r_] += min_val - shortest[col4row[r_]]
        for c_ in range(n_cols):
            if SC[c_]:
                v[c_] -= min_val - shortest[c_]
        j = sink
        while True:
            i = path[j]
            row4col[j] = i
            col4row[i], j = j, col4row[i]
            if i == cur_row:
                break
    if transposed:
        rows = col4row
        cols = np.arange(n_rows, dtype=np.int64)
        order = np.argsort(rows)
        return rows[order], cols[order]
    return np.arange(n_rows, dtype=np.int64), col4row


# ------------------------------ matcher module --------------------------------
class HungarianMatcherPallas:
    def __init__(self, cost_is_human=1.0, cost_root=1.0, cost_root_vis=1.0,
                 cost_joint=1.0, cost_joint_vis=1.0, cost_joint_depth=1.0,
                 cost_root_depth=1.0):
        self.weights = dict(is_human=float(cost_is_human),
                            root=float(cost_root),
                            root_vis=float(cost_root_vis),
                            joint=float(cost_joint),
                            joint_vis=float(cost_joint_vis),
                            joint_depth=float(cost_joint_depth),
                            root_depth=float(cost_root_depth))

    def __call__(self, outputs, targets):
        tgt_kpts2d = jnp.stack([t["kpts2d"] for t in targets], axis=0)
        tgt_depth = jnp.stack([t["depth"] for t in targets], axis=0)
        max_depth = jnp.asarray([t["max_depth"] for t in targets],
                                dtype=jnp.float32)
        cost = pallas_cost_matrix(outputs["pred_logits"],
                                  outputs["pred_kpts2d"],
                                  outputs["pred_depth"],
                                  tgt_kpts2d, tgt_depth, max_depth,
                                  self.weights)
        cost = jax.block_until_ready(cost)
        cost_np = np.asarray(cost)
        indices = []
        for b in range(cost_np.shape[0]):
            ri, ci = linear_sum_assignment_np(cost_np[b])
            indices.append((jnp.asarray(ri, dtype=jnp.int32),
                            jnp.asarray(ci, dtype=jnp.int32)))
        return indices, cost


# ------------------------------ numpy reference --------------------------------
def ref_cost_np(pred_logits, pred_kpts2d, pred_depth, tgt_kpts2d, tgt_depth,
                max_depth, w, eps=EPS):
    pred_logits = np.asarray(pred_logits, np.float64)
    pred_kpts2d = np.asarray(pred_kpts2d, np.float64)
    pred_depth = np.asarray(pred_depth, np.float64)
    tgt_kpts2d = np.asarray(tgt_kpts2d, np.float64)
    tgt_depth = np.asarray(tgt_depth, np.float64)
    max_depth = np.asarray(max_depth, np.float64)
    bs = pred_logits.shape[0]
    costs = []
    for i in range(bs):
        tgt_k = tgt_kpts2d[i][None]
        tgt_root = tgt_k[:, :, :, :1, :]
        tgt_joint = tgt_k[:, :, :, 1:, 0:2]
        joint_visib = tgt_k[:, :, :, 1:, 2:3]
        tgt_d = tgt_depth[i][None]
        t_root_depth = tgt_d[:, :, :, :1, 0:1]
        t_root_depth_exist = tgt_d[:, :, :, :1, 1:2]
        t_joint_depth = tgt_d[:, :, :, 1:, 0:1]
        t_joint_depth_exist = tgt_d[:, :, :, 1:, 1:2]
        md = max_depth[i]
        out_d = pred_depth[i][:, None]
        out_root_depth = out_d[:, :, :, :1, :]
        out_joint_depth = out_root_depth + out_d[:, :, :, 1:, :] / md
        logits = pred_logits[i]
        e = np.exp(logits - logits.max(-1, keepdims=True))
        out_prob = e / e.sum(-1, keepdims=True)
        out_k = pred_kpts2d[i][:, None]
        out_root = out_k[:, :, :, :1, :]
        out_joint_all = out_k[:, :, :, 1:, :]
        out_joint_vis = out_joint_all[..., 2:3]
        out_joint = out_joint_all[..., 0:2] + out_root[..., 0:2]
        prob = out_prob[:, :, 1][:, None]
        vis = (joint_visib.sum((-2, -1)) > 0).astype(np.float64)
        class_cost = -(prob * vis).sum(-1) / (vis.sum(-1) + eps)
        joint_cost = np.abs(joint_visib * (out_joint - tgt_joint)).sum(
            (-1, -2, -3)) / (joint_visib.sum((-1, -2, -3)) + eps)
        joint_visib_cost = ((out_joint_vis - joint_visib) ** 2).mean((-1, -2, -3))
        joint_depth_cost = np.abs(
            t_joint_depth_exist * (out_joint_depth - t_joint_depth)).sum(
                (-1, -2, -3)) / (t_joint_depth_exist.sum((-1, -2, -3)) + eps)
        root_visib = tgt_root[..., 2:3]
        root_cost = np.abs(
            root_visib * (out_root[..., 0:2] - tgt_root[..., 0:2])).sum(
                (-1, -2, -3)) / (root_visib.sum((-1, -2, -3)) + eps)
        root_visib_cost = ((out_root[..., 2:3] - root_visib) ** 2).mean((-1, -2, -3))
        root_depth_cost = np.abs(
            t_root_depth_exist * (out_root_depth - t_root_depth)).sum(
                (-1, -2, -3)) / (t_root_depth_exist.sum((-1, -2, -3)) + eps)
        c = (w["is_human"] * class_cost + w["root"] * root_cost
             + w["root_vis"] * root_visib_cost + w["root_depth"] * root_depth_cost
             + w["joint"] * joint_cost + w["joint_vis"] * joint_visib_cost
             + w["joint_depth"] * joint_depth_cost)
        costs.append(c)
    return np.stack(costs, 0)


# ----------------------------------- main --------------------------------------
if __name__ == "__main__":
    bs, Q, N, T, K = 2, 16, 8, 2, 15
    key = jax.random.PRNGKey(0)
    ks = jax.random.split(key, 8)
    pred_logits = jax.random.normal(ks[0], (bs, Q, T, 2), dtype=jnp.float32)
    pred_kpts2d = jax.random.uniform(ks[1], (bs, Q, T, K, 3), dtype=jnp.float32)
    pred_depth = jax.random.uniform(ks[2], (bs, Q, T, K, 1),
                                    dtype=jnp.float32) * 5.0
    tgt_xy = jax.random.uniform(ks[3], (bs, N, T, K, 2), dtype=jnp.float32)
    tgt_vis = (jax.random.uniform(ks[4], (bs, N, T, K, 1)) > 0.3).astype(jnp.float32)
    tgt_kpts2d = jnp.concatenate([tgt_xy, tgt_vis], axis=-1)
    tgt_dval = jax.random.uniform(ks[5], (bs, N, T, K, 1), dtype=jnp.float32) * 5.0
    tgt_dexist = (jax.random.uniform(ks[6], (bs, N, T, K, 1)) > 0.3).astype(jnp.float32)
    tgt_depth = jnp.concatenate([tgt_dval, tgt_dexist], axis=-1)
    max_depth = jnp.array([10.0, 12.0], dtype=jnp.float32)

    outputs = {"pred_logits": pred_logits, "pred_kpts2d": pred_kpts2d,
               "pred_depth": pred_depth}
    targets = [{"kpts2d": tgt_kpts2d[i], "depth": tgt_depth[i],
                "max_depth": float(max_depth[i])} for i in range(bs)]

    matcher = HungarianMatcherPallas()
    indices, cost = matcher(outputs, targets)
    cost = jax.block_until_ready(cost)

    ref = ref_cost_np(pred_logits, pred_kpts2d, pred_depth, tgt_kpts2d,
                      tgt_depth, max_depth, matcher.weights)
    err = np.max(np.abs(np.asarray(cost) - ref))
    if not np.allclose(np.asarray(cost), ref, atol=2e-3, rtol=2e-3):
        raise AssertionError("cost matrix mismatch, max abs err = %g" % err)
    for (ri, ci) in indices:
        assert ri.shape[0] == min(Q, N) and ci.shape[0] == min(Q, N)
    print("KERNEL_OK")
</pallas_src>

<mosaic_0001>
module attributes {stable_mosaic.version = 11 : i64} {
  func.func @_cost_kernel(%arg0: i32, %arg1: memref<1x16x256xf32, #tpu.memory_space<vmem>>, %arg2: memref<1x128x384xf32, #tpu.memory_space<vmem>>, %arg3: memref<1x16x128xf32, #tpu.memory_space<vmem>>) attributes {dimension_semantics = [#tpu.dimension_semantics<parallel>], iteration_bounds = array<i64: 2>, scalar_prefetch = 0 : i64, scratch_operands = 0 : i64, tpu.core_type = #tpu.core_type<tc>, window_params = [{transform_indices = @transform_0, window_bounds = array<i64: 1, 16, 256>}, {transform_indices = @transform_1, window_bounds = array<i64: 1, 128, 384>}, {transform_indices = @transform_2, window_bounds = array<i64: 1, 16, 128>}]} {
    %c0 = arith.constant 0 : index
    %c0_0 = arith.constant 0 : index
    %c0_1 = arith.constant 0 : index
    %0 = vector.load %arg1[%c0, %c0_0, %c0_1] : memref<1x16x256xf32, #tpu.memory_space<vmem>>, vector<1x16x256xf32>
    %1 = vector.shape_cast %0 : vector<1x16x256xf32> to vector<16x256xf32>
    %c0_2 = arith.constant 0 : index
    %c0_3 = arith.constant 0 : index
    %c0_4 = arith.constant 0 : index
    %2 = vector.load %arg2[%c0_2, %c0_3, %c0_4] : memref<1x128x384xf32, #tpu.memory_space<vmem>>, vector<1x128x384xf32>
    %3 = vector.shape_cast %2 : vector<1x128x384xf32> to vector<128x384xf32>
    %4 = vector.extract_strided_slice %1 {offsets = [0, 0], sizes = [16, 128], strides = [1, 1]} : vector<16x256xf32> to vector<16x128xf32>
    %5 = vector.extract_strided_slice %1 {offsets = [0, 128], sizes = [16, 128], strides = [1, 1]} : vector<16x256xf32> to vector<16x128xf32>
    %6 = vector.extract_strided_slice %3 {offsets = [0, 0], sizes = [128, 128], strides = [1, 1]} : vector<128x384xf32> to vector<128x128xf32>
    %7 = vector.extract_strided_slice %3 {offsets = [0, 128], sizes = [128, 128], strides = [1, 1]} : vector<128x384xf32> to vector<128x128xf32>
    %8 = vector.extract_strided_slice %3 {offsets = [0, 256], sizes = [128, 128], strides = [1, 1]} : vector<128x384xf32> to vector<128x128xf32>
    %cst = arith.constant dense<0.000000e+00> : vector<16x128xf32>
    %9 = tpu.matmul %5, %8, %cst {dimension_numbers = #tpu.dot_dimension_numbers<[1], [1], [0], [0], [0, 0, 1, 0], [], []>, precision = #tpu.contract_precision<fp32>} : vector<16x128xf32>, vector<128x128xf32>, vector<16x128xf32> -> vector<16x128xf32>
    %10 = vector.shape_cast %4 : vector<16x128xf32> to vector<16x1x128xf32>
    %11 = vector.shape_cast %6 : vector<128x128xf32> to vector<1x128x128xf32>
    %12 = vector.broadcast %10 : vector<16x1x128xf32> to vector<16x128x128xf32>
    %13 = vector.broadcast %11 : vector<1x128x128xf32> to vector<16x128x128xf32>
    %14 = arith.subf %12, %13 : vector<16x128x128xf32>
    %15 = math.absf %14 : vector<16x128x128xf32>
    %16 = vector.shape_cast %7 : vector<128x128xf32> to vector<1x128x128xf32>
    %17 = vector.broadcast %16 : vector<1x128x128xf32> to vector<16x128x128xf32>
    %18 = arith.mulf %15, %17 : vector<16x128x128xf32>
    %cst_5 = arith.constant dense<0.000000e+00> : vector<16x128xf32>
    %19 = vector.multi_reduction <add>, %18, %cst_5 [2] : vector<16x128x128xf32> to vector<16x128xf32>
    %20 = arith.addf %9, %19 : vector<16x128xf32>
    %c0_6 = arith.constant 0 : index
    %c0_7 = arith.constant 0 : index
    %c0_8 = arith.constant 0 : index
    %21 = vector.load %arg3[%c0_6, %c0_7, %c0_8] : memref<1x16x128xf32, #tpu.memory_space<vmem>>, vector<1x16x128xf32>
    %22 = vector.shape_cast %21 : vector<1x16x128xf32> to vector<16x128xf32>
    %23 = vector.shape_cast %20 : vector<16x128xf32> to vector<1x16x128xf32>
    tpu.vector_store %arg3[%c0_6, %c0_7, %c0_8], %23 {strides = array<i32>} : memref<1x16x128xf32, #tpu.memory_space<vmem>>, vector<1x16x128xf32>,
    return
  }
  func.func @transform_0(%arg0: i32) -> (i32, i32, i32) {
    %c0_i32 = arith.constant 0 : i32
    %c0_i32_0 = arith.constant 0 : i32
    %c0_i32_1 = arith.constant 0 : i32
    return %arg0, %c0_i32, %c0_i32_0 : i32, i32, i32
  }
  func.func @transform_1(%arg0: i32) -> (i32, i32, i32) {
    %c0_i32 = arith.constant 0 : i32
    %c0_i32_0 = arith.constant 0 : i32
    %c0_i32_1 = arith.constant 0 : i32
    return %arg0, %c0_i32, %c0_i32_0 : i32, i32, i32
  }
  func.func @transform_2(%arg0: i32) -> (i32, i32, i32) {
    %c0_i32 = arith.constant 0 : i32
    %c0_i32_0 = arith.constant 0 : i32
    %c0_i32_1 = arith.constant 0 : i32
    return %arg0, %c0_i32, %c0_i32_0 : i32, i32, i32
  }
}

</mosaic_0001>

<bundles_post_ra>
// kernel: tpu_custom_call.1
= control target key start
LH: loop header
LB: loop body
LE: loop exit
PB: predicated region body
PF: predicated region fallthrough
CT: control target
= control target key end

     0   :  { %7 = vsyncpa [#allocation3], 0  ;;  %s7364_s0 = inlined_call_operand.hbm [shape: f32[2,16,256], index: 0, kind: input, shape index: {}]   ;;  %s7365_s1 = inlined_call_operand.hbm [shape: f32[2,128,384], index: 1, kind: input, shape index: {}]   ;;  %s7366_s2 = inlined_call_operand.hbm [shape: f32[2,16,128], index: 2, kind: output, shape index: {}]  }
   0x1   :  { %9 = vsyncpa [#allocation3 + $0x1], 0 }
   0x2   :  { %10 = vsyncpa [#allocation6], 0 }
   0x3   :  { %12 = vsyncpa [#allocation6 + $0x1], 0 }
   0x4   :  { %13 = vsyncpa [#allocation4], 0 }
   0x5   :  { %15 = vsyncpa [#allocation4 + $0x1], 0  ;;  %s4922_s9 = smov 0   ;;  %s4924_s10 = smov 0  }
   0x6   :  { %s4926_s11 = smov 0   ;;  %s4928_s12 = smov 0  }
   0x7 LB: > { %s4943_s13 = sadd.s32 4294967295, %s4895_s12   ;;  %s4085_s14 = sadd.s32 4294967294, %s4895_s12   ;;  %s4895_s12 = sphi %s4928_s12, %s7807_s12   ;;  %s4891_s11 = sphi %s4926_s11, %s7806_s11   ;;  %s4887_s10 = sphi %s4924_s10, %s7805_s10   ;;  %s4883_s9 = sphi %s4922_s9, %s7804_s9  }
   0x8   : > { %s4947_s15 = sadd.s32 1, %s4895_s12   ;;  %s28_s16 = sadd.s32 1, %s4891_s11 }
   0x9   : > { %s25_s17 = ssub.s32 %s4895_s12, %s4947_s15  ;;  %p35_p0 = scmp.ne.s32.totalorder %s4891_s11, %s4887_s10 }
   0xa   : > { %p26_p1 = scmp.eq.s32.totalorder %s25_s17, 0  ;;  %p36_p2 = scmp.eq.s32.totalorder %s4895_s12, 0 }
   0xb   : > { %p41_p3 = scmp.ne.s32.totalorder %s4887_s10, %s4883_s9  ;;  %p42_p4 = scmp.eq.s32.totalorder %s4943_s13, 0 }
   0xc   : > { %s4959_s18 = scalar_select %p26_p1, %s4891_s11, %s28_s16  }
   0xd   : > { %p4961_p5 = por %p36_p2, %p35_p0  ;;  %p4965_p6 = por %p42_p4, %p41_p3 }
   0xe   : > { %p91_p7 = scmp.eq.s32.totalorder %s4943_s13, 1  ;;  %p97_p8 = scmp.eq.s32.totalorder %s4085_s14, 1 }
   0xf   : > { %s7555_s20 = scalar_select %p4965_p6, 1, 0 }
  0x10   : > { %p4644_p10 = scmp.lt.s32.totalorder %s4895_s12, 2  ;;  %p4972_p11 = por %p91_p7, %p35_p0 }
  0x11   : > { %p4976_p12 = por %p97_p8, %p41_p3  ;;  %s4981_s23 = sand.u32 1, %s4891_s11  }
  0x12   : > { %s7556_s21 = scalar_select %p4972_p11, 1, 0 }
  0x13   : > { %s7557_s22 = scalar_select %p4976_p12, 1, 0 }
  0x14   : > { %s4100_s24 = sshll.u32 %s4895_s12, 9  ;;  %s4088_s25 = sshll.u32 %s4981_s23, 5 }
  0x15   : > { %s4988_s28 = scalar_lea.hbm %s7364_s0, %s4100_s24  ;;  %s121_s29 = scalar_lea.vmem [#allocation2], %s4088_s25 }
  0x16   : > { %s128_s30 = sshll.u32 %s121_s29, 4  ;;  %p4992_p13 = pnand %p4644_p10, %p4961_p5  ;;  %s4996_s30 = int_to_ptr.vmem [resolvable:$true] %s128_s30 }
  0x17   : > { %s118_s4 = scalar_lea.sflag [#allocation3], %s4981_s23  ;;  %s4765_s5 = scalar_lea.hbm %s4988_s28, 512 }
  0x18   : > { %p4766_p0 = scmp.ne.s32.totalorder %s4988_s28, %s4765_s5  ;;  %p4767_p1 = pneg %p4992_p13 }
  0x19   : > { %s4770_s8 = scalar_lea.hbm %s7364_s0, 1024  ;;  %p4771_p4 = scmp.lt.u32.totalorder %s4988_s28, %s7364_s0 }
  0x1a   : > { %p4768_p2 = pnand %p4767_p1, %p4766_p0  ;;  %p4772_p5 = scmp.lt.u32.totalorder %s4770_s8, %s4765_s5 }
  0x1b   : > { %p4774_p8 = scmp.lt.u32.totalorder %s4765_s5, %s4988_s28 }
  0x1c   : > { %p4769_p3 = pneg %p4768_p2  ;;  %p4773_p7 = por %p4772_p5, %p4771_p4 }
  0x1e   : > { %p4775_p10 = por %p4774_p8, %p4773_p7 }
  0x20   : > { %p4776_p9 = pnand %p4775_p10, %p4769_p3 }
  0x22   : > { %4779 = shalt.err (!%p4776_p9)
}
  0x23   : > { %s4780_s17 = scalar_lea.vmem %s4996_s30, 512  ;;  %s4897_s19 = smov [#allocation2]  }
  0x24   : > { %p4781_p0 = scmp.ne.s32.totalorder %s4996_s30, %s4780_s17  ;;  %s4785_s24 = sshll.u32 %s4897_s19, 4  ;;  %s4786_s24 = int_to_ptr.vmem [resolvable:$false] %s4785_s24 }
  0x25   : > { %s4787_s25 = scalar_lea.vmem %s4786_s24, 1024  ;;  %p4788_p11 = scmp.lt.s32.totalorder %s4996_s30, %s4786_s24 }
  0x26   : > { %p4783_p2 = pnand %p4781_p0, %p4767_p1  ;;  %p4789_p4 = scmp.lt.s32.totalorder %s4787_s25, %s4780_s17 }
  0x28   : > { %p4784_p12 = pneg %p4783_p2  ;;  %p4790_p5 = por %p4789_p4, %p4788_p11 }
  0x2a   : > { %p4791_p7 = pnand %p4790_p5, %p4784_p12 }
  0x2c   : > { %4794 = shalt.err (!%p4791_p7)
}
  0x2d   : > { %s4898_s26 = smov 256   ;;  %s4899_s27 = smov 16  }
  0x2e   : > { %4636 = dma.hbm_to_vmem [thread:$0]  (!%p4992_p13), %s4988_s28, 512, %s4996_s30, %s118_s4, %s4898_s26, %s4898_s26, %s4899_s27  }
  0x2f   : > { %p4092_p9 = scmp.ge.s32.totalorder %s4895_s12, 1  ;;  %p157_p3 = scmp.lt.s32.totalorder %s4895_s12, 3 }
  0x30   : > { %s4624_s29 = smul.u32 384, %s4981_s23  ;;  %s139_s28 = scalar_lea.sflag [#allocation6], %s4981_s23 }
  0x31   : > { %p5029_p11 = pnand %p4092_p9, %p157_p3  ;;  %s4625_s6 = smul.u32 6144, %s4895_s12 }
  0x32   : > { %s142_s16 = scalar_lea.vmem [#allocation5], %s4624_s29  ;;  %s4800_s24 = scalar_lea.hbm %s7365_s1, 12288 }
  0x33   : > { %s5037_s14 = scalar_lea.hbm %s7365_s1, %s4625_s6  ;;  %s149_s17 = sshll.u32 %s142_s16, 4  ;;  %s5039_s17 = int_to_ptr.vmem [resolvable:$true] %s149_s17 }
  0x34   : > { %s4795_s30 = scalar_lea.hbm %s5037_s14, 6144  ;;  %p4801_p0 = scmp.lt.u32.totalorder %s5037_s14, %s7365_s1 }
  0x35   : > { %p4796_p12 = scmp.ne.s32.totalorder %s5037_s14, %s4795_s30  ;;  %p4802_p2 = scmp.lt.u32.totalorder %s4800_s24, %s4795_s30 }
  0x36   : > { %p4804_p5 = scmp.lt.u32.totalorder %s4795_s30, %s5037_s14 }
  0x37   : > { %p4798_p8 = pnand %p4796_p12, %p4767_p1  ;;  %p4803_p4 = por %p4802_p2, %p4801_p0 }
  0x39   : > { %p4799_p10 = pneg %p4798_p8  ;;  %p4805_p7 = por %p4804_p5, %p4803_p4 }
  0x3b   : > { %p4806_p9 = pnand %p4805_p7, %p4799_p10 }
  0x3d   : > { %4809 = shalt.err (!%p4806_p9)
}
  0x3e   : > { %s4810_s27 = scalar_lea.vmem %s5039_s17, 6144  ;;  %s4900_s29 = smov [#allocation5]  }
  0x3f   : > { %p4811_p3 = scmp.ne.s32.totalorder %s5039_s17, %s4810_s27  ;;  %s4815_s6 = sshll.u32 %s4900_s29, 4  ;;  %s4816_s6 = int_to_ptr.vmem [resolvable:$false] %s4815_s6 }
  0x40   : > { %s4817_s7 = scalar_lea.vmem %s4816_s6, 12288  ;;  %p4818_p6 = scmp.lt.s32.totalorder %s5039_s17, %s4816_s6 }
  0x41   : > { %p4813_p12 = pnand %p4811_p3, %p4767_p1  ;;  %p4819_p0 = scmp.lt.s32.totalorder %s4817_s7, %s4810_s27 }
  0x43   : > { %p4814_p8 = pneg %p4813_p12  ;;  %p4820_p2 = por %p4819_p0, %p4818_p6 }
  0x45   : > { %p4821_p4 = pnand %p4820_p2, %p4814_p8 }
  0x47   : > { %4824 = shalt.err (!%p4821_p4)
}
  0x48   : > { %s4901_s8 = smov 384   ;;  %s4902_s16 = smov 24  }
  0x49   : > { %4639 = dma.hbm_to_vmem [thread:$0]  (!%p4992_p13), %s5037_s14, 6144, %s5039_s17, %s139_s28, %s4901_s8, %s4901_s8, %s4902_s16  }
  0x4a   : > { %161 = sbr.rel (%p5029_p11) target bundleno = 782 (0x30e), region = 28 }
  0x51   : > { %s5070_s30 = sand.u32 1, %s4887_s10   ;;  %p7560_p6 = scmp.ne.s32.totalorder %s7555_s20, 0 }
  0x52   : > { %s4093_s4 = sshll.u32 %s5070_s30, 5  ;;  %s164_s19 = scalar_lea.sflag [#allocation3], %s5070_s30 }
  0x53   : > { %s5074_s24 = scalar_lea.vmem [#allocation2], %s4093_s4 }
  0x54   : > { %4870 = dma.done.wait (%p7560_p6), %s164_s19, 512  }
  0x55   : > { %4872 = vsyncadd (%p7560_p6), %s164_s19, 4294966784  ;;  %s4626_s23 = smul.u32 384, %s5070_s30  ;;  %s173_s3 = scalar_lea.sflag [#allocation6], %s5070_s30 }
  0x57   : > { %s5082_s5 = scalar_lea.vmem [#allocation5], %s4626_s23 }
  0x58   : > { %4874 = dma.done.wait (%p7560_p6), %s173_s3, 6144  }
  0x59   : > { %4876 = vsyncadd (%p7560_p6), %s173_s3, 4294961152  ;;  %v7369_v0 = vlaneseq  ;;  %v4903_v1 = vmov 1966171168   ;;  %v5095_v6 = vld [vmem:[%s5082_s5 + $0x10] sm:$0xff]  ;;  %v5098_v7 = vld [vmem:[%s5082_s5 + $0x28] sm:$0xff]  ;;  %vm1981_vm0 = vcmask 130112  }
  0x5a   : > { %v258_v2 = vunpack.c.l.s4 %v4903_v1  ;;  %v5101_v8 = vld [vmem:[%s5074_s24] sm:$0xff]  ;;  %v7377_v9 = vand.u32 4294901760, %v5095_v6  ;;  %v7376_v10 = vand.u32 4294901760, %v5098_v7  ;;  %v5116_v14 = vld [vmem:[%s5082_s5 + $0x58] sm:$0xff]  ;;  %v5131_v19 = vld [vmem:[%s5082_s5 + $0x30] sm:$0xff]  ;;  %vm1988_vm1 = vcmask 195712  }
  0x5b   : > { %v5089_v3 = vshrl.u32 %v7369_v0, 7  ;;  %7563 = vst [vmem:[#allocation13_spill] sm:$0xff] %v5101_v8  ;;  %v5113_v13 = vld [vmem:[%s5082_s5 + $0x40] sm:$0xff]  ;;  %v7374_v18 = vand.u32 4294901760, %v5116_v14  ;;  %v5137_v21 = vld [vmem:[%s5082_s5 + $0x48] sm:$0xff]  ;;  %v5152_v24 = vld [vmem:[%s5082_s5 + $0x18] sm:$0xff] }
  0x5c   : > { %v259_v4 = vunpack.c.0.s8 %v258_v2  ;;  %v5122_v15 = vpack.c.bf16 %v7376_v10, %v7377_v9  ;;  %v7375_v17 = vand.u32 4294901760, %v5113_v13  ;;  %v5134_v20 = vld [vmem:[%s5082_s5] sm:$0xff]  ;;  %v5155_v25 = vld [vmem:[%s5082_s5 + $0x78] sm:$0xff]  ;;  %v5158_v26 = vld [vmem:[%s5082_s5 + $0x70] sm:$0xff]  ;;  %vm1995_vm2 = vcmask 261312   ;;  %s4094_s20 = sshll.u32 %s5070_s30, 4 }
  0x5d   : > { %7561 = vst [vmem:[#allocation11_spill] sm:$0xff] %v5089_v3  ;;  %v5110_v12 = vsub.s32 0, %v5089_v3  ;;  %v5163_v27 = vld [vmem:[%s5082_s5 + $0x60] sm:$0xff]  ;;  %v5166_v28 = vld [vmem:[%s5082_s5 + $0x88] sm:$0xff]  ;;  %v7373_v29 = vand.u32 4294901760, %v5158_v26  ;;  %v5179_v34 = vld [vmem:[%s5082_s5 + $0x38] sm:$0xff] }
  0x5e   : > { %v5092_v5 = vsub.s32 %v259_v4, %v5089_v3  ;;  %7565 = vst [vmem:[#allocation15_spill] sm:$0xff] %v5122_v15  ;;  %4421 = vmatprep.subr.bf16.mxu1 %v5122_v15  ;;  %4517 = vmatprep.subr.bf16.mxu0 %v5122_v15  ;;  %v5149_v23 = vpack.c.bf16 %v7374_v18, %v7375_v17  ;;  %v7372_v33 = vand.u32 4294901760, %v5166_v28  ;;  %7567 = vst [vmem:[#allocation17_spill] sm:$0xff] %v5179_v34  ;;  %v5182_v35 = vld [vmem:[%s5082_s5 + $0x8] sm:$0xff]  ;;  %v5194_v43 = vld [vmem:[%s5082_s5 + $0x50] sm:$0xff]  ;;  %vm2002_vm3 = vcmask 326912  }
  0x5f   : > { %7564 = vst [vmem:[#allocation14_spill] sm:$0xff] %v5110_v12  ;;  %4423 = vmatpush3.bf16.xpose.msra.mxu1 %v5122_v15  ;;  %4519 = vmatpush3.bf16.xpose.msra.mxu0 %v5122_v15  ;;  %v5189_v38 = vld [vmem:[%s5082_s5 + $0xa8] sm:$0xff]  ;;  %v5197_v44 = vld [vmem:[%s5082_s5 + $0x20] sm:$0xff]  ;;  %v5200_v46 = vld [vmem:[%s5082_s5 + $0x90] sm:$0xff]  ;;  %vm2009_vm4 = vcmask 392512   ;;  %vm2016_vm5 = vcmask 458112  }
  0x60   : > { %7562 = vst [vmem:[#allocation12_spill] sm:$0xff] %v5092_v5  ;;  %v5107_v11 = vrot.slane %v5101_v8, %v5092_v5  ;;  %7566 = vst [vmem:[#allocation16_spill] sm:$0xff] %v5149_v23  ;;  %4425 = vmatprep.subr.bf16.mxu1 %v5149_v23  ;;  %4521 = vmatprep.subr.bf16.mxu0 %v5149_v23  ;;  %v5208_v49 = vpack.c.bf16 %v7372_v33, %v7373_v29  ;;  %v5213_v52 = vld [vmem:[%s5082_s5 + $0xa0] sm:$0xff]  ;;  %v5216_v53 = vld [vmem:[%s5082_s5 + $0xb8] sm:$0xff]  ;;  %vm2023_vm6 = vcmask 523712   ;;  %vm2030_vm7 = vcmask 589312  }
  0x61   : > { %7568 = vst [vmem:[#allocation18_spill] sm:$0xff] %v5200_v46  ;;  %v5221_v56 = vld [vmem:[%s5082_s5 + $0x80] sm:$0xff]  ;;  %v5228_v59 = vld [vmem:[%s5082_s5 + $0x68] sm:$0xff]  ;;  %v5231_v60 = vld [vmem:[%s5082_s5 + $0xd8] sm:$0xff]  ;;  %v7371_v62 = vand.u32 4294901760, %v5213_v52  ;;  %v7370_v63 = vand.u32 4294901760, %v5216_v53 }
  0x62   : > { %v5126_v16 = vrot.slane %v5107_v11, %v5092_v5  ;;  %7569 = vst [vmem:[#allocation19_spill] sm:$0xff] %v5208_v49  ;;  %7570 = vst [vmem:[#allocation20_spill] sm:$0xff] %v5221_v56  ;;  %v5234_v61 = vld [vmem:[%s5082_s5 + $0xc0] sm:$0xff]  ;;  %v5303_v33 = vld [vmem:[%s5082_s5 + $0x110] sm:$0xff]  ;;  %vm2037_vm8 = vcmask 654912   ;;  %vm7552_vm9 = vcmask 720512  }
  0x63   : > { %7571 = vst [vmem:[#allocation21_spill] sm:$0xff] %v5228_v59  ;;  %7572 = vst [vmem:[#allocation22_spill] sm:$0xff] %v5231_v60  ;;  %v5312_v17 = vld [vmem:[%s5082_s5 + $0xf8] sm:$0xff]  ;;  %v5315_v10 = vld [vmem:[%s5082_s5 + $0x150] sm:$0xff]  ;;  %vm2051_vm10 = vcmask 786112   ;;  %vm2058_vm11 = vcmask 851712  }
  0x64   : > { %v5143_v22 = vrot.slane %v5126_v16, %v5110_v12  ;;  %7573 = vst [vmem:[#allocation23_spill] sm:$0xff] %v5234_v61  ;;  %v5330_v9 = vld [vmem:[%s5082_s5 + $0x118] sm:$0xff]  ;;  %vm2065_vm12 = vcmask 917312   ;;  %vm2072_vm13 = vcmask 982912   ;;  %vm2079_vm14 = vcmask 1048512   ;;  %s6857_s14 = scalar_lea.vmem [#allocation7], %s4094_s20 }
  0x65   : > { %7582 = vst [vmem:[#allocation32_spill] sm:$0xff] %v5330_v9  ;;  %vm7478_vm15 = vcmask 1041409   ;;  %s3989_s17 = sshll.u32 %s6857_s14, 4  ;;  %s4101_s28 = sshll.u32 %s4943_s13, 8  ;;  %s7312_s17 = int_to_ptr.vmem [resolvable:$true] %s3989_s17 }
  0x66   : > { %v436_v30 = vsub.f32 %v5143_v22, %v5131_v19  ;;  %v434_v31 = vsub.f32 %v5143_v22, %v5134_v20  ;;  %v437_v32 = vsub.f32 %v5143_v22, %v5137_v21  ;;  %v435_v36 = vsub.f32 %v5143_v22, %v5152_v24  ;;  %s7318_s27 = scalar_lea.hbm %s7366_s2, %s4101_s28  ;;  %s3976_s29 = scalar_lea.sflag [#allocation4], %s5070_s30 }
  0x67   : > { %v439_v37 = vsub.f32 %v5143_v22, %v5155_v25  ;;  %v438_v42 = vsub.f32 %v5143_v22, %v5163_v27  ;;  %v441_v51 = vsub.f32 %v5143_v22, %v5189_v38  ;;  %v440_v58 = vsub.f32 %v5143_v22, %v5200_v46  ;;  %4427 = vmatpush3.bf16.xpose.msra.mxu1 %v5149_v23  ;;  %s4825_s6 = scalar_lea.vmem %s7312_s17, 256  ;;  %p7801_p1 = scmp.ne.s32.totalorder %s7556_s21, 0 }
  0x68   : > { %v692_v39 = vand.u32 2147483647, %v436_v30  ;;  %v690_v40 = vand.u32 2147483647, %v434_v31  ;;  %v693_v41 = vand.u32 2147483647, %v437_v32  ;;  %4523 = vmatpush3.bf16.xpose.msra.mxu0 %v5149_v23  ;;  %4429 = vmatprep.subr.bf16.mxu1 %v5208_v49  ;;  %v443_v32 = vsub.f32 %v5143_v22, %v5231_v60  ;;  %p4826_p13 = scmp.ne.s32.totalorder %s7312_s17, %s4825_s6 }
  0x69   : > { %v691_v45 = vand.u32 2147483647, %v435_v36  ;;  %v695_v50 = vand.u32 2147483647, %v439_v37  ;;  %v694_v57 = vand.u32 2147483647, %v438_v42  ;;  %4525 = vmatprep.subr.bf16.mxu0 %v5208_v49  ;;  %v442_v36 = vsub.f32 %v5143_v22, %v5234_v61 }
  0x6a   : > { %v948_v47 = vmul.f32 %v692_v39, %v5179_v34  ;;  %v946_v48 = vmul.f32 %v690_v40, %v5182_v35  ;;  %v949_v54 = vmul.f32 %v693_v41, %v5194_v43  ;;  %v697_v2 = vand.u32 2147483647, %v441_v51  ;;  %v5243_v30 = vld [vmem:[%s5082_s5 + $0xb0] sm:$0xff]  ;;  %v5250_v37 = vld [vmem:[%s5082_s5 + $0x108] sm:$0xff]  ;;  %v5253_v39 = vld [vmem:[%s5082_s5 + $0x98] sm:$0xff]  ;;  %p4827_p11 = pnand %p4826_p13, %p7801_p1  ;;  %s4904_s13 = smov [#allocation7]  }
  0x6b   : > { %v947_v55 = vmul.f32 %v691_v45, %v5197_v44  ;;  %v951_v1 = vmul.f32 %v695_v50, %v5221_v56  ;;  %v950_v4 = vmul.f32 %v694_v57, %v5228_v59  ;;  %v696_v31 = vand.u32 2147483647, %v440_v58  ;;  %v5256_v40 = vld [vmem:[%s5082_s5 + $0xf0] sm:$0xff]  ;;  %v5279_v58 = vld [vmem:[%s5082_s5 + $0x138] sm:$0xff]  ;;  %s4829_s7 = sshll.u32 %s4904_s13, 4  ;;  %s4830_s7 = int_to_ptr.vmem [resolvable:$false] %s4829_s7 }
  0x6c   : > { %1206 = vadd.xlane.f32.xlu1 %v948_v47  ;;  %1202 = vadd.xlane.f32.xlu0 %v946_v48  ;;  %v5262_v41 = vpack.c.bf16 %v7370_v63, %v7371_v62  ;;  %v953_v42 = vmul.f32 %v697_v2, %v5243_v30  ;;  %v445_v45 = vsub.f32 %v5143_v22, %v5250_v37  ;;  %v5268_v47 = vld [vmem:[%s5082_s5 + $0xd0] sm:$0xff]  ;;  %v5271_v48 = vld [vmem:[%s5082_s5 + $0xe8] sm:$0xff]  ;;  %v5282_v2 = vld [vmem:[%s5082_s5 + $0x120] sm:$0xff]  ;;  %p4828_p10 = pneg %p4827_p11  ;;  %s4831_s8 = scalar_lea.vmem %s4830_s7, 512 }
  0x6d   : > { %7575 = vst [vmem:[#allocation25_spill] sm:$0xff] %v5268_v47  ;;  %7576 = vst [vmem:[#allocation26_spill] sm:$0xff] %v5271_v48  ;;  %v271_v50 = vcombine.high %v5107_v11, %v5107_v11  ;;  %v952_v51 = vmul.f32 %v696_v31, %v5253_v39  ;;  %v444_v57 = vsub.f32 %v5143_v22, %v5256_v40  ;;  %v5287_v11 = vld [vmem:[%s5082_s5 + $0xe0] sm:$0xff]  ;;  %v7382_v31 = vand.u32 4294901760, %v5271_v48  ;;  %v5384_v48 = vld [vmem:[%s5082_s5 + $0x148] sm:$0xff]  ;;  %p4832_p5 = scmp.lt.s32.totalorder %s7312_s17, %s4830_s7  ;;  %p4833_p7 = scmp.lt.s32.totalorder %s4831_s8, %s4825_s6 }
  0x6e   : > { %7574 = vst [vmem:[#allocation24_spill] sm:$0xff] %v5262_v41  ;;  %7577 = vst [vmem:[#allocation27_spill] sm:$0xff] %v5279_v58  ;;  %v446_v0 = vsub.f32 %v5143_v22, %v5282_v2 }
  0x6f   : > { %7578 = vst [vmem:[#allocation28_spill] sm:$0xff] %v5282_v2  ;;  %4431 = vmatpush3.bf16.xpose.msra.mxu1 %v5208_v49  ;;  %v700_v29 = vand.u32 2147483647, %v444_v57  ;;  %v5309_v18 = vrot.slane %v271_v50, %v5092_v5  ;;  %v5327_v50 = vld [vmem:[%s5082_s5 + $0x100] sm:$0xff]  ;;  %7589 = vst [vmem:[#allocation37_spill] sm:$0xff] %v5384_v48  ;;  %p4834_p9 = por %p4833_p7, %p4832_p5 }
  0x70   : > { %1208 = vadd.xlane.f32.xlu1 %v949_v54  ;;  %1204 = vadd.xlane.f32.xlu0 %v947_v55  ;;  %v699_v54 = vand.u32 2147483647, %v443_v32  ;;  %v698_v55 = vand.u32 2147483647, %v442_v36  ;;  %v701_v32 = vand.u32 2147483647, %v445_v45  ;;  %v447_v36 = vsub.f32 %v5143_v22, %v5279_v58 }
  0x71   : > { %4527 = vmatpush3.bf16.xpose.msra.mxu0 %v5208_v49  ;;  %4433 = vmatprep.subr.bf16.mxu1 %v5262_v41  ;;  %v5306_v45 = vld [vmem:[%s5082_s5 + $0x168] sm:$0xff]  ;;  %7579 = vst [vmem:[#allocation29_spill] sm:$0xff] %v5309_v18  ;;  %7581 = vst [vmem:[#allocation31_spill] sm:$0xff] %v5327_v50  ;;  %v956_v3 = vmul.f32 %v700_v29, %v5312_v17  ;;  %v5334_v49 = vld [vmem:[%s5082_s5 + $0x140] sm:$0xff]  ;;  %p4835_p3 = pnand %p4834_p9, %p4828_p10 }
  0x72   : > { %4529 = vmatprep.subr.bf16.mxu0 %v5262_v41  ;;  %v955_v63 = vmul.f32 %v699_v54, %v5287_v11  ;;  %v703_v54 = vand.u32 2147483647, %v447_v36  ;;  %v449_v57 = vsub.f32 %v5143_v22, %v5306_v45 }
  0x74   : > { %1212 = vadd.xlane.f32.xlu1 %v951_v1  ;;  %1210 = vadd.xlane.f32.xlu0 %v950_v4  ;;  %v5290_v1 = vld [vmem:[%s5082_s5 + $0xc8] sm:$0xff]  ;;  %v7383_v4 = vand.u32 4294901760, %v5268_v47  ;;  %v7593_v47 = vand.u32 4294901760, %v5095_v6 }
  0x75   : > { %v954_v62 = vmul.f32 %v698_v55, %v5290_v1  ;;  %v702_v55 = vand.u32 2147483647, %v446_v0  ;;  %v5343_v0 = vrot.slane %v5309_v18, %v5110_v12  ;;  %v5381_v18 = vld [vmem:[%s5082_s5 + $0x130] sm:$0xff] }
  0x76   : > { %7588 = vst [vmem:[#allocation36_spill] sm:$0xff] %v5381_v18 }
  0x77   : > { %4435 = vmatpush3.bf16.xpose.msra.mxu1 %v5262_v41  ;;  %v451_v15 = vsub.f32 %v5343_v0, %v5152_v24  ;;  %v450_v29 = vsub.f32 %v5343_v0, %v5134_v20  ;;  %v452_v8 = vsub.f32 %v5343_v0, %v5131_v19 }
  0x78   : > { %1216 = vadd.xlane.f32.xlu1 %v953_v42  ;;  %1214 = vadd.xlane.f32.xlu0 %v952_v51  ;;  %v5321_v42 = vpack.c.bf16 %v7382_v31, %v7383_v4  ;;  %v957_v51 = vmul.f32 %v701_v32, %v5303_v33  ;;  %v5337_v31 = vld [vmem:[%s5082_s5 + $0x128] sm:$0xff]  ;;  %v448_v32 = vsub.f32 %v5143_v22, %v5315_v10  ;;  %v705_v4 = vand.u32 2147483647, %v449_v57 }
  0x79   : > { %4531 = vmatpush3.bf16.xpose.msra.mxu0 %v5262_v41  ;;  %v959_v22 = vmul.f32 %v703_v54, %v5334_v49  ;;  %v958_v36 = vmul.f32 %v702_v55, %v5337_v31  ;;  %v5355_v41 = vld [vmem:[%s5082_s5 + $0x170] sm:$0xff]  ;;  %v7584_v54 = vand.u32 4294901760, %v5327_v50  ;;  %v7585_v55 = vand.u32 4294901760, %v5330_v9 }
  0x7a   : > { %7580 = vst [vmem:[#allocation30_spill] sm:$0xff] %v5321_v42  ;;  %4437 = vmatprep.subr.bf16.mxu1 %v5321_v42  ;;  %4533 = vmatprep.subr.bf16.mxu0 %v5321_v42  ;;  %v704_v23 = vand.u32 2147483647, %v448_v32  ;;  %v453_v32 = vsub.f32 %v5343_v0, %v5137_v21  ;;  %v706_v9 = vand.u32 2147483647, %v450_v29 }
  0x7b   : > { %v5370_v57 = vpack.c.bf16 %v7585_v55, %v7584_v54  ;;  %v707_v55 = vand.u32 2147483647, %v451_v15  ;;  %v708_v15 = vand.u32 2147483647, %v452_v8 }
  0x7c   : > { %1220 = vadd.xlane.f32.xlu1 %v955_v63  ;;  %1218 = vadd.xlane.f32.xlu0 %v954_v62  ;;  %v203_v62 = vld [vmem:[%s5074_s24 + $0x8] sm:$0xff]  ;;  %v5364_v63 = vld [vmem:[%s5082_s5 + $0x158] sm:$0xff] }
  0x7d   : > { %v5361_v5 = vand.u32 4294901760, %v203_v62  ;;  %7586 = vst [vmem:[#allocation34_spill] sm:$0xff] %v5370_v57  ;;  %v960_v54 = vmul.f32 %v704_v23, %v5364_v63  ;;  %v455_v23 = vsub.f32 %v5343_v0, %v5155_v25  ;;  %v963_v29 = vmul.f32 %v707_v55, %v5197_v44 }
  0x7f   : > { %7583 = vst [vmem:[#allocation33_spill] sm:$0xff] %v5361_v5  ;;  %4439 = vmatpush3.bf16.xpose.msra.mxu1 %v5321_v42 }
  0x80   : > { %1224 = vadd.xlane.f32.xlu1 %v957_v51  ;;  %1222 = vadd.xlane.f32.xlu0 %v956_v3  ;;  %v5373_v3 = vsub.f32 %v203_v62, %v5361_v5  ;;  %v961_v51 = vmul.f32 %v705_v4, %v5355_v41  ;;  %v454_v4 = vsub.f32 %v5343_v0, %v5163_v27 }
  0x81   : > { %4535 = vmatpush3.bf16.xpose.msra.mxu0 %v5321_v42  ;;  %4441 = vmatprep.subr.bf16.mxu1 %v5370_v57  ;;  %v962_v42 = vmul.f32 %v706_v9, %v5182_v35 }
  0x82   : > { %7587 = vst [vmem:[#allocation35_spill] sm:$0xff] %v5373_v3  ;;  %v3372_v62 = vand.u32 4294901760, %v5373_v3  ;;  %4537 = vmatprep.subr.bf16.mxu0 %v5370_v57 }
  0x84   : > { %1228 = vadd.xlane.f32.xlu1 %v959_v22  ;;  %1226 = vadd.xlane.f32.xlu0 %v958_v36  ;;  %v3373_v22 = vsub.f32 %v5373_v3, %v3372_v62  ;;  %v709_v36 = vand.u32 2147483647, %v453_v32  ;;  %v7590_v3 = vand.u32 4294901760, %v5381_v18  ;;  %v7591_v32 = vand.u32 4294901760, %v5384_v48 }
  0x85   : > { %4347 = vmatprep.mubr.f32.mxu0 %v3372_v62  ;;  %v964_v62 = vmul.f32 %v708_v15, %v5179_v34  ;;  %v205_v15 = vld [vmem:[%s5074_s24 + $0x18] sm:$0xff] }
  0x86   : > { %v3374_v50 = vand.u32 4294901760, %v3373_v22  ;;  %v5405_v8 = vpack.c.bf16 %v7591_v32, %v7590_v3  ;;  %v965_v55 = vmul.f32 %v709_v36, %v5194_v43  ;;  %v5420_v22 = vld [vmem:[%s5082_s5 + $0x160] sm:$0xff]  ;;  %v5423_v3 = vld [vmem:[%s5082_s5 + $0x178] sm:$0xff]  ;;  %v710_v32 = vand.u32 2147483647, %v454_v4 }
  0x87   : > { %7597 = vst [vmem:[#allocation41_spill] sm:$0xff] %v5420_v22  ;;  %7598 = vst [vmem:[#allocation42_spill] sm:$0xff] %v5423_v3  ;;  %4443 = vmatpush3.bf16.xpose.msra.mxu1 %v5370_v57  ;;  %v7600_v18 = vand.u32 4294901760, %v5420_v22 }
  0x88   : > { %1232 = vadd.xlane.f32.xlu1 %v961_v51  ;;  %1230 = vadd.xlane.f32.xlu0 %v960_v54  ;;  %7592 = vst [vmem:[#allocation38_spill] sm:$0xff] %v5405_v8  ;;  %v5410_v51 = vsub.f32 %v5095_v6, %v7593_v47  ;;  %v7595_v54 = vand.u32 4294901760, %v5098_v7  ;;  %v457_v6 = vsub.f32 %v5343_v0, %v5189_v38 }
  0x89   : > { %4242 = vmatprep.mubr.f32.mxu1 %v3374_v50  ;;  %v711_v50 = vand.u32 2147483647, %v455_v23  ;;  %4539 = vmatpush3.bf16.xpose.msra.mxu0 %v5370_v57  ;;  %v459_v23 = vsub.f32 %v5343_v0, %v5231_v60  ;;  %v966_v57 = vmul.f32 %v710_v32, %v5228_v59 }
  0x8a   : > { %7594 = vst [vmem:[#allocation39_spill] sm:$0xff] %v5410_v51  ;;  %v5415_v9 = vsub.f32 %v5098_v7, %v7595_v54  ;;  %v456_v7 = vsub.f32 %v5343_v0, %v5200_v46  ;;  %4445 = vmatprep.subr.bf16.mxu1 %v5405_v8  ;;  %4541 = vmatprep.subr.bf16.mxu0 %v5405_v8  ;;  %v3393_v4 = vand.u32 4294901760, %v5410_v51  ;;  %v713_v47 = vand.u32 2147483647, %v457_v6 }
  0x8b   : > { %v967_v54 = vmul.f32 %v711_v50, %v5221_v56  ;;  %v7601_v46 = vand.u32 4294901760, %v5423_v3  ;;  %v7603_v50 = vand.u32 4294901760, %v5113_v13  ;;  %v7604_v6 = vand.u32 4294901760, %v5116_v14 }
  0x8c   : > { %7596 = vst [vmem:[#allocation40_spill] sm:$0xff] %v5415_v9  ;;  %1236 = vadd.xlane.f32.xlu1 %v963_v29  ;;  %1234 = vadd.xlane.f32.xlu0 %v962_v42  ;;  %v3400_v36 = vand.u32 4294901760, %v5415_v9  ;;  %v458_v29 = vsub.f32 %v5343_v0, %v5234_v61  ;;  %v712_v48 = vand.u32 2147483647, %v456_v7  ;;  %v5444_v42 = vand.u32 4294901760, %v205_v15 }
  0x8d   : > { %v5450_v34 = vpack.c.bf16 %v7601_v46, %v7600_v18  ;;  %v3394_v60 = vsub.f32 %v5410_v51, %v3393_v4  ;;  %v5459_v32 = vsub.f32 %v5113_v13, %v7603_v50  ;;  %v5464_v7 = vsub.f32 %v5116_v14, %v7604_v6 }
  0x8e   : > { %7599 = vst [vmem:[#allocation43_spill] sm:$0xff] %v5444_v42  ;;  %v3401_v61 = vsub.f32 %v5415_v9, %v3400_v36  ;;  %v969_v18 = vmul.f32 %v713_v47, %v5243_v30  ;;  %v968_v46 = vmul.f32 %v712_v48, %v5253_v39  ;;  %v460_v9 = vsub.f32 %v5343_v0, %v5256_v40 }
  0x8f   : > { %7602 = vst [vmem:[#allocation44_spill] sm:$0xff] %v5450_v34  ;;  %4447 = vmatpush3.bf16.xpose.msra.mxu1 %v5405_v8  ;;  %v5473_v13 = vsub.f32 %v205_v15, %v5444_v42  ;;  %v3395_v14 = vand.u32 4294901760, %v3394_v60  ;;  %v301_v48 = vcombine.high %v5126_v16, %v5126_v16  ;;  %v3414_v50 = vand.u32 4294901760, %v5464_v7 }
  0x90   : > { %1240 = vadd.xlane.f32.xlu1 %v965_v55  ;;  %1238 = vadd.xlane.f32.xlu0 %v964_v62  ;;  %v715_v55 = vand.u32 2147483647, %v459_v23  ;;  %v461_v62 = vsub.f32 %v5343_v0, %v5250_v37  ;;  %v714_v23 = vand.u32 2147483647, %v458_v29  ;;  %v463_v29 = vsub.f32 %v5343_v0, %v5279_v58 }
  0x91   : > { %4543 = vmatpush3.bf16.xpose.msra.mxu0 %v5405_v8  ;;  %7605 = vst [vmem:[#allocation45_spill] sm:$0xff] %v5473_v13  ;;  %4449 = vmatprep.subr.bf16.mxu1 %v5450_v34  ;;  %v716_v8 = vand.u32 2147483647, %v460_v9  ;;  %v462_v60 = vsub.f32 %v5343_v0, %v5282_v2  ;;  %v3382_v16 = vand.u32 4294901760, %v5473_v13  ;;  %v464_v51 = vsub.f32 %v5343_v0, %v5315_v10 }
  0x92   : > { %4545 = vmatprep.subr.bf16.mxu0 %v5450_v34  ;;  %v717_v47 = vand.u32 2147483647, %v461_v62  ;;  %v971_v15 = vmul.f32 %v715_v55, %v5287_v11  ;;  %v970_v6 = vmul.f32 %v714_v23, %v5290_v1  ;;  %v465_v62 = vsub.f32 %v5343_v0, %v5306_v45 }
  0x93   : > { %v7607_v9 = vand.u32 4294901760, %v5166_v28  ;;  %v719_v23 = vand.u32 2147483647, %v463_v29  ;;  %v972_v0 = vmul.f32 %v716_v8, %v5312_v17 }
  0x94   : > { %1244 = vadd.xlane.f32.xlu1 %v967_v54  ;;  %1242 = vadd.xlane.f32.xlu0 %v966_v57  ;;  %v3402_v57 = vand.u32 4294901760, %v3401_v61  ;;  %v3407_v54 = vand.u32 4294901760, %v5459_v32  ;;  %v4548_v61 = vpack.c.bf16 %v3400_v36, %v3393_v4  ;;  %v3415_v36 = vsub.f32 %v5464_v7, %v3414_v50 }
  0x95   : > { %v721_v29 = vand.u32 2147483647, %v465_v62  ;;  %v975_v8 = vmul.f32 %v719_v23, %v5334_v49 }
  0x96   : > { %v4452_v42 = vpack.c.bf16 %v3402_v57, %v3395_v14  ;;  %v3408_v4 = vsub.f32 %v5459_v32, %v3407_v54  ;;  %v973_v14 = vmul.f32 %v717_v47, %v5303_v33  ;;  %v718_v57 = vand.u32 2147483647, %v462_v60 }
  0x97   : > { %4451 = vmatpush3.bf16.xpose.msra.mxu1 %v5450_v34  ;;  %v3416_v60 = vand.u32 4294901760, %v3415_v36  ;;  %v4552_v36 = vpack.c.bf16 %v3414_v50, %v3407_v54 }
  0x98   : > { %1248 = vadd.xlane.f32.xlu1 %v969_v18  ;;  %1246 = vadd.xlane.f32.xlu0 %v968_v46  ;;  %v7606_v18 = vand.u32 4294901760, %v5158_v26  ;;  %v5500_v46 = vsub.f32 %v5166_v28, %v7607_v9  ;;  %v3383_v28 = vsub.f32 %v5473_v13, %v3382_v16 }
  0x99   : > { %4547 = vmatpush3.bf16.xpose.msra.mxu0 %v5450_v34  ;;  %4453 = vmatprep.subr.bf16.mxu1 %v4452_v42 }
  0x9a   : > { %v5495_v55 = vsub.f32 %v5158_v26, %v7606_v18  ;;  %v5507_v26 = vrot.slane %v301_v48, %v5110_v12  ;;  %4549 = vmatprep.subr.bf16.mxu0 %v4548_v61  ;;  %v720_v18 = vand.u32 2147483647, %v464_v51  ;;  %v3428_v47 = vand.u32 4294901760, %v5500_v46 }
  0x9b   : > { %v974_v48 = vmul.f32 %v718_v57, %v5337_v31  ;;  %v3384_v62 = vand.u32 4294901760, %v3383_v28  ;;  %v977_v51 = vmul.f32 %v721_v29, %v5355_v41  ;;  %v7609_v57 = vand.u32 4294901760, %v5216_v53 }
  0x9c   : > { %1252 = vadd.xlane.f32.xlu1 %v971_v15  ;;  %1250 = vadd.xlane.f32.xlu0 %v970_v6  ;;  %v3421_v15 = vand.u32 4294901760, %v5495_v55  ;;  %v3409_v6 = vand.u32 4294901760, %v3408_v4  ;;  %v467_v9 = vsub.f32 %v5507_v26, %v5152_v24  ;;  %v466_v13 = vsub.f32 %v5507_v26, %v5134_v20 }
  0x9d   : > { %v976_v34 = vmul.f32 %v720_v18, %v5364_v63  ;;  %v3429_v23 = vsub.f32 %v5500_v46, %v3428_v47  ;;  %v5532_v22 = vsub.f32 %v5216_v53, %v7609_v57  ;;  %v469_v18 = vsub.f32 %v5507_v26, %v5137_v21 }
  0x9e   : > { %v3422_v3 = vsub.f32 %v5495_v55, %v3421_v15  ;;  %v4456_v4 = vpack.c.bf16 %v3416_v60, %v3409_v6  ;;  %v723_v28 = vand.u32 2147483647, %v467_v9  ;;  %v722_v29 = vand.u32 2147483647, %v466_v13  ;;  %4243 = vmatmul.mubr.f32.vlgmr.msra.gmra.mrb[0].mxu1 %v3384_v62 }
  0x9f   : > { %v468_v54 = vsub.f32 %v5507_v26, %v5131_v19  ;;  %4455 = vmatpush3.bf16.xpose.msra.mxu1 %v4452_v42  ;;  %v470_v53 = vsub.f32 %v5507_v26, %v5163_v27  ;;  %v3442_v6 = vand.u32 4294901760, %v5532_v22  ;;  %4277 = vmatprep.mubr.f32.mxu1 %v5361_v5 }
  0xa0   : > { %1256 = vadd.xlane.f32.xlu1 %v973_v14  ;;  %1254 = vadd.xlane.f32.xlu0 %v972_v0  ;;  %v7608_v14 = vand.u32 4294901760, %v5213_v52  ;;  %v3423_v50 = vand.u32 4294901760, %v3422_v3  ;;  %v978_v42 = vmul.f32 %v722_v29, %v5182_v35  ;;  %v7612_v29 = vld [vmem:[#allocation26_spill] sm:$0xff] }
  0xa1   : > { %4348 = vmatmul.mubr.f32.vlgmr.msra.gmra.mrb[0].mxu0 %v3382_v16  ;;  %4457 = vmatprep.subr.bf16.mxu1 %v4456_v4  ;;  %v979_v16 = vmul.f32 %v723_v28, %v5197_v44  ;;  %v724_v60 = vand.u32 2147483647, %v468_v54  ;;  %v726_v9 = vand.u32 2147483647, %v470_v53  ;;  %v7614_v53 = vld [vmem:[#allocation17_spill] sm:$0xff] }
  0xa2   : > { %v5527_v0 = vsub.f32 %v5213_v52, %v7608_v14  ;;  %4551 = vmatpush3.bf16.xpose.msra.mxu0 %v4548_v61  ;;  %v471_v52 = vsub.f32 %v5507_v26, %v5155_v25  ;;  %v725_v61 = vand.u32 2147483647, %v469_v18  ;;  %4382 = vmatprep.mubr.f32.mxu0 %v5361_v5  ;;  %v7610_v14 = vld [vmem:[#allocation25_spill] sm:$0xff]  ;;  %v7613_v18 = vand.u32 4294901760, %v7612_v29  ;;  %v7616_v5 = vld [vmem:[#allocation22_spill] sm:$0xff] }
  0xa3   : > { %4553 = vmatprep.subr.bf16.mxu0 %v4552_v36  ;;  %v7611_v57 = vand.u32 4294901760, %v7610_v14 }
  0xa4   : > { %1260 = vadd.xlane.f32.xlu1 %v975_v8  ;;  %1258 = vadd.xlane.f32.xlu0 %v974_v48  ;;  %v3430_v8 = vand.u32 4294901760, %v3429_v23  ;;  %v3435_v13 = vand.u32 4294901760, %v5527_v0  ;;  %v473_v48 = vsub.f32 %v5507_v26, %v5189_v38  ;;  %v727_v3 = vand.u32 2147483647, %v471_v52 }
  0xa5   : > { %v4556_v23 = vpack.c.bf16 %v3428_v47, %v3421_v15  ;;  %v5555_v28 = vsub.f32 %v7610_v14, %v7611_v57  ;;  %v5560_v54 = vsub.f32 %v7612_v29, %v7613_v18  ;;  %v981_v52 = vmul.f32 %v725_v61, %v5194_v43  ;;  %v7615_v47 = vld [vmem:[#allocation18_spill] sm:$0xff] }
  0xa6   : > { %v4460_v62 = vpack.c.bf16 %v3430_v8, %v3423_v50  ;;  %v980_v15 = vmul.f32 %v724_v60, %v7614_v53  ;;  %v472_v50 = vsub.f32 %v5507_v26, %v7615_v47  ;;  %v983_v8 = vmul.f32 %v727_v3, %v5221_v56 }
  0xa7   : > { %4459 = vmatpush3.bf16.xpose.msra.mxu1 %v4456_v4  ;;  %v982_v14 = vmul.f32 %v726_v9, %v5228_v59  ;;  %v729_v57 = vand.u32 2147483647, %v473_v48  ;;  %v475_v29 = vsub.f32 %v5507_v26, %v7616_v5  ;;  %v3449_v61 = vand.u32 4294901760, %v5555_v28  ;;  %v7620_v59 = vld [vmem:[#allocation31_spill] sm:$0xff] }
  0xa8   : > { %1264 = vadd.xlane.f32.xlu1 %v977_v51  ;;  %1262 = vadd.xlane.f32.xlu0 %v976_v34  ;;  %v3436_v51 = vsub.f32 %v5527_v0, %v3435_v13  ;;  %v3443_v34 = vsub.f32 %v5532_v22, %v3442_v6  ;;  %v3456_v60 = vand.u32 4294901760, %v5560_v54  ;;  %v728_v4 = vand.u32 2147483647, %v472_v50 }
  0xa9   : > { %4461 = vmatprep.subr.bf16.mxu1 %v4460_v62  ;;  %v5576_v48 = vpack.c.bf16 %v5464_v7, %v5459_v32  ;;  %v5580_v9 = vpack.c.bf16 %v5500_v46, %v5495_v55  ;;  %v4560_v18 = vpack.c.bf16 %v3442_v6, %v3435_v13  ;;  %v3450_v56 = vsub.f32 %v5555_v28, %v3449_v61  ;;  %v7622_v7 = vld [vmem:[#allocation32_spill] sm:$0xff] }
  0xaa   : > { %4555 = vmatpush3.bf16.xpose.msra.mxu0 %v4552_v36  ;;  %v7617_v36 = vld [vmem:[#allocation23_spill] sm:$0xff]  ;;  %v3457_v32 = vsub.f32 %v5560_v54, %v3456_v60  ;;  %v985_v46 = vmul.f32 %v729_v57, %v5243_v30  ;;  %v984_v13 = vmul.f32 %v728_v4, %v5253_v39 }
  0xab   : > { %4557 = vmatprep.subr.bf16.mxu0 %v4556_v23  ;;  %v474_v3 = vsub.f32 %v5507_v26, %v7617_v36  ;;  %7618 = vst [vmem:[#allocation25_spill] sm:$0xff] %v5576_v48  ;;  %7619 = vst [vmem:[#allocation26_spill] sm:$0xff] %v5580_v9  ;;  %v7623_v48 = vand.u32 4294901760, %v7622_v7 }
  0xac   : > { %1268 = vadd.xlane.f32.xlu1 %v979_v16  ;;  %1266 = vadd.xlane.f32.xlu0 %v978_v42  ;;  %v3437_v16 = vand.u32 4294901760, %v3436_v51  ;;  %v3444_v42 = vand.u32 4294901760, %v3443_v34  ;;  %v477_v51 = vsub.f32 %v5507_v26, %v5250_v37  ;;  %v731_v34 = vand.u32 2147483647, %v475_v29 }
  0xad   : > { %v5594_v55 = vsub.f32 %v7622_v7, %v7623_v48  ;;  %v730_v6 = vand.u32 2147483647, %v474_v3  ;;  %v4564_v7 = vpack.c.bf16 %v3456_v60, %v3449_v61  ;;  %v5627_v61 = vpack.c.bf16 %v5532_v22, %v5527_v0 }
  0xae   : > { %v4464_v50 = vpack.c.bf16 %v3444_v42, %v3437_v16  ;;  %v733_v29 = vand.u32 2147483647, %v477_v51  ;;  %v479_v16 = vsub.f32 %v5507_v26, %v5279_v58  ;;  %v987_v48 = vmul.f32 %v731_v34, %v5287_v11 }
  0xaf   : > { %4463 = vmatpush3.bf16.xpose.msra.mxu1 %v4460_v62  ;;  %v3470_v57 = vand.u32 4294901760, %v5594_v55  ;;  %v986_v4 = vmul.f32 %v730_v6, %v5290_v1  ;;  %v478_v51 = vsub.f32 %v5507_v26, %v5282_v2  ;;  %v7624_v62 = vld [vmem:[#allocation29_spill] sm:$0xff] }
  0xb0   : > { %1272 = vadd.xlane.f32.xlu1 %v981_v52  ;;  %1270 = vadd.xlane.f32.xlu0 %v980_v15  ;;  %v7621_v52 = vand.u32 4294901760, %v7620_v59  ;;  %v735_v34 = vand.u32 2147483647, %v479_v16  ;;  %v7627_v2 = vld [vmem:[#allocation37_spill] sm:$0xff]  ;;  %v480_v16 = vsub.f32 %v5507_v26, %v5315_v10 }
  0xb1   : > { %4465 = vmatprep.subr.bf16.mxu1 %v4464_v50  ;;  %v3471_v9 = vsub.f32 %v5594_v55, %v3470_v57  ;;  %v7628_v58 = vand.u32 4294901760, %v7627_v2 }
  0xb2   : > { %v5587_v15 = vsub.f32 %v7620_v59, %v7621_v52  ;;  %v476_v59 = vsub.f32 %v5507_v26, %v5256_v40  ;;  %4559 = vmatpush3.bf16.xpose.msra.mxu0 %v4556_v23  ;;  %v303_v23 = vcombine.high %v7624_v62, %v7624_v62  ;;  %v989_v52 = vmul.f32 %v733_v29, %v5303_v33 }
  0xb3   : > { %4561 = vmatprep.subr.bf16.mxu0 %v4560_v18  ;;  %v5623_v62 = vsub.f32 %v7627_v2, %v7628_v58  ;;  %v734_v29 = vand.u32 2147483647, %v478_v51  ;;  %v991_v2 = vmul.f32 %v735_v34, %v5334_v49  ;;  %v3472_v0 = vand.u32 4294901760, %v3471_v9 }
  0xb4   : > { %1276 = vadd.xlane.f32.xlu1 %v983_v8  ;;  %1274 = vadd.xlane.f32.xlu0 %v982_v14  ;;  %v3463_v42 = vand.u32 4294901760, %v5587_v15  ;;  %v3451_v8 = vand.u32 4294901760, %v3450_v56  ;;  %v3458_v14 = vand.u32 4294901760, %v3457_v32  ;;  %v732_v3 = vand.u32 2147483647, %v476_v59 }
  0xb5   : > { %v481_v56 = vsub.f32 %v5507_v26, %v5306_v45  ;;  %v990_v26 = vmul.f32 %v734_v29, %v5337_v31 }
  0xb6   : > { %v3464_v32 = vsub.f32 %v5587_v15, %v3463_v42  ;;  %v4468_v59 = vpack.c.bf16 %v3458_v14, %v3451_v8  ;;  %v988_v60 = vmul.f32 %v732_v3, %v5312_v17  ;;  %v5633_v8 = vrot.slane %v303_v23, %v5110_v12 }
  0xb7   : > { %4467 = vmatpush3.bf16.xpose.msra.mxu1 %v4464_v50  ;;  %v737_v14 = vand.u32 2147483647, %v481_v56  ;;  %v5645_v3 = vpack.c.bf16 %v5560_v54, %v5555_v28  ;;  %v4568_v9 = vpack.c.bf16 %v3470_v57, %v3463_v42 }
  0xb8   : > { %1280 = vadd.xlane.f32.xlu1 %v985_v46  ;;  %1278 = vadd.xlane.f32.xlu0 %v984_v13  ;;  %v7625_v46 = vld [vmem:[#allocation36_spill] sm:$0xff]  ;;  %v3465_v22 = vand.u32 4294901760, %v3464_v32  ;;  %v483_v50 = vsub.f32 %v5633_v8, %v5152_v24  ;;  %v485_v23 = vsub.f32 %v5633_v8, %v5137_v21  ;;  %v7629_v32 = vld [vmem:[#allocation41_spill] sm:$0xff] }
  0xb9   : > { %v7626_v13 = vand.u32 4294901760, %v7625_v46  ;;  %4469 = vmatprep.subr.bf16.mxu1 %v4468_v59  ;;  %v993_v51 = vmul.f32 %v737_v14, %v5355_v41 }
  0xba   : > { %4563 = vmatpush3.bf16.xpose.msra.mxu0 %v4560_v18  ;;  %v482_v18 = vsub.f32 %v5633_v8, %v5134_v20  ;;  %v4472_v34 = vpack.c.bf16 %v3472_v0, %v3465_v22  ;;  %v739_v42 = vand.u32 2147483647, %v483_v50  ;;  %v741_v14 = vand.u32 2147483647, %v485_v23 }
  0xbb   : > { %v5617_v6 = vsub.f32 %v7625_v46, %v7626_v13  ;;  %4565 = vmatprep.subr.bf16.mxu0 %v4564_v7  ;;  %v7630_v46 = vand.u32 4294901760, %v7629_v32  ;;  %v487_v22 = vsub.f32 %v5633_v8, %v5155_v25  ;;  %v486_v50 = vsub.f32 %v5633_v8, %v5163_v27 }
  0xbc   : > { %1284 = vadd.xlane.f32.xlu1 %v987_v48  ;;  %1282 = vadd.xlane.f32.xlu0 %v986_v4  ;;  %v3484_v48 = vand.u32 4294901760, %v5623_v62  ;;  %v736_v4 = vand.u32 2147483647, %v480_v16  ;;  %v738_v57 = vand.u32 2147483647, %v482_v18  ;;  %v484_v16 = vsub.f32 %v5633_v8, %v5131_v19 }
  0xbd   : > { %v3477_v58 = vand.u32 4294901760, %v5617_v6  ;;  %v3490_v13 = vsub.f32 %v7629_v32, %v7630_v46  ;;  %v997_v18 = vmul.f32 %v741_v14, %v5194_v43  ;;  %v743_v23 = vand.u32 2147483647, %v487_v22 }
  0xbe   : > { %v3485_v56 = vsub.f32 %v5623_v62, %v3484_v48  ;;  %v992_v54 = vmul.f32 %v736_v4, %v5364_v63  ;;  %v995_v4 = vmul.f32 %v739_v42, %v5197_v44  ;;  %v5679_v42 = vpack.c.bf16 %v5623_v62, %v5617_v6 }
  0xbf   : > { %4471 = vmatpush3.bf16.xpose.msra.mxu1 %v4468_v59  ;;  %v3491_v46 = vand.u32 4294901760, %v3490_v13  ;;  %v740_v59 = vand.u32 2147483647, %v484_v16  ;;  %v490_v14 = vsub.f32 %v5633_v8, %v7617_v36 }
  0xc0   : > { %1288 = vadd.xlane.f32.xlu1 %v989_v52  ;;  %1286 = vadd.xlane.f32.xlu0 %v988_v60  ;;  %v3478_v52 = vsub.f32 %v5617_v6, %v3477_v58  ;;  %v7631_v60 = vld [vmem:[#allocation42_spill] sm:$0xff]  ;;  %v3486_v32 = vand.u32 4294901760, %v3485_v56  ;;  %7634 = vst [vmem:[#allocation18_spill] sm:$0xff] %v5679_v42  ;;  %v7636_v6 = vld [vmem:[#allocation20_spill] sm:$0xff] }
  0xc1   : > { %v7632_v29 = vand.u32 4294901760, %v7631_v60  ;;  %4473 = vmatprep.subr.bf16.mxu1 %v4472_v34  ;;  %v999_v62 = vmul.f32 %v743_v23, %v7636_v6  ;;  %v493_v23 = vsub.f32 %v5633_v8, %v5250_v37 }
  0xc2   : > { %4567 = vmatpush3.bf16.xpose.msra.mxu0 %v4564_v7  ;;  %v3479_v0 = vand.u32 4294901760, %v3478_v52  ;;  %v994_v7 = vmul.f32 %v738_v57, %v5182_v35  ;;  %v489_v52 = vsub.f32 %v5633_v8, %v5189_v38  ;;  %v7635_v57 = vld [vmem:[#allocation13_spill] sm:$0xff] }
  0xc3   : > { %v3497_v28 = vsub.f32 %v7631_v60, %v7632_v29  ;;  %4569 = vmatprep.subr.bf16.mxu0 %v4568_v9  ;;  %v4572_v60 = vpack.c.bf16 %v3484_v48, %v3477_v58  ;;  %v742_v29 = vand.u32 2147483647, %v486_v50  ;;  %v256_v16 = vcombine.high %v7635_v57, %v7635_v57 }
  0xc4   : > { %1292 = vadd.xlane.f32.xlu1 %v991_v2  ;;  %1290 = vadd.xlane.f32.xlu0 %v990_v26  ;;  %v5665_v26 = vpack.c.bf16 %v5594_v55, %v5587_v15  ;;  %v4476_v56 = vpack.c.bf16 %v3486_v32, %v3479_v0  ;;  %v3492_v15 = vsub.f32 %v3490_v13, %v3491_v46  ;;  %v745_v58 = vand.u32 2147483647, %v489_v52  ;;  %v7637_v32 = vld [vmem:[#allocation21_spill] sm:$0xff] }
  0xc5   : > { %v3498_v2 = vand.u32 4294901760, %v3497_v28  ;;  %v491_v48 = vsub.f32 %v5633_v8, %v7616_v5  ;;  %v746_v57 = vand.u32 2147483647, %v490_v14  ;;  %v497_v14 = vsub.f32 %v5633_v8, %v5306_v45 }
  0xc6   : > { %7633 = vst [vmem:[#allocation17_spill] sm:$0xff] %v5665_v26  ;;  %v3493_v22 = vand.u32 4294901760, %v3492_v15 }
  0xc7   : > { %v3499_v55 = vsub.f32 %v3497_v28, %v3498_v2  ;;  %4475 = vmatpush3.bf16.xpose.msra.mxu1 %v4472_v34  ;;  %v5689_v34 = vpack.c.bf16 %v3497_v28, %v3490_v13  ;;  %v747_v52 = vand.u32 2147483647, %v491_v48  ;;  %v4576_v26 = vpack.c.bf16 %v3498_v2, %v3491_v46 }
  0xc8   : > { %1296 = vadd.xlane.f32.xlu1 %v993_v51  ;;  %1294 = vadd.xlane.f32.xlu0 %v992_v54  ;;  %v996_v51 = vmul.f32 %v740_v59, %v7614_v53  ;;  %v488_v54 = vsub.f32 %v5633_v8, %v7615_v47  ;;  %v7638_v59 = vld [vmem:[#allocation12_spill] sm:$0xff]  ;;  %v492_v13 = vsub.f32 %v5633_v8, %v5256_v40  ;;  %v749_v2 = vand.u32 2147483647, %v493_v23 }
  0xc9   : > { %4477 = vmatprep.subr.bf16.mxu1 %v4476_v56  ;;  %v3500_v0 = vand.u32 4294901760, %v3499_v55  ;;  %v5693_v50 = vrot.slane %v256_v16, %v7638_v59  ;;  %v1003_v28 = vmul.f32 %v747_v52, %v5287_v11  ;;  %v1002_v15 = vmul.f32 %v746_v57, %v5290_v1  ;;  %v7639_v55 = vld [vmem:[#allocation27_spill] sm:$0xff] }
  0xca   : > { %4571 = vmatpush3.bf16.xpose.msra.mxu0 %v4568_v9  ;;  %v1001_v9 = vmul.f32 %v745_v58, %v5243_v30  ;;  %v495_v46 = vsub.f32 %v5633_v8, %v7639_v55  ;;  %v7641_v16 = vld [vmem:[#allocation39_spill] sm:$0xff]  ;;  %v7642_v58 = vld [vmem:[#allocation40_spill] sm:$0xff]  ;;  %v753_v57 = vand.u32 2147483647, %v497_v14  ;;  %v7648_v14 = vld [vmem:[#allocation33_spill] sm:$0xff] }
  0xcb   : > { %4573 = vmatprep.subr.bf16.mxu0 %v4572_v60  ;;  %v4480_v42 = vpack.c.bf16 %v3500_v0, %v3493_v22  ;;  %v4484_v48 = vpack.c.bf16 %v7642_v58, %v7641_v16  ;;  %v496_v22 = vsub.f32 %v5633_v8, %v5315_v10  ;;  %v1005_v0 = vmul.f32 %v749_v2, %v5303_v33  ;;  %v7643_v52 = vld [vmem:[#allocation15_spill] sm:$0xff] }
  0xcc   : > { %1300 = vadd.xlane.f32.xlu1 %v995_v4  ;;  %1298 = vadd.xlane.f32.xlu0 %v994_v7  ;;  %v998_v4 = vmul.f32 %v742_v29, %v7637_v32  ;;  %v744_v7 = vand.u32 2147483647, %v488_v54  ;;  %v7640_v29 = vld [vmem:[#allocation28_spill] sm:$0xff] }
  0xcd   : > { %v494_v54 = vsub.f32 %v5633_v8, %v7640_v29  ;;  %v752_v8 = vand.u32 2147483647, %v496_v22 }
  0xcf   : > { %4479 = vmatpush3.bf16.xpose.msra.mxu1 %v4476_v56  ;;  %v5708_v56 = vrot.slane %v5693_v50, %v7638_v59 }
  0xd0   : > { %1304 = vadd.xlane.f32.xlu1 %v997_v18  ;;  %1302 = vadd.xlane.f32.xlu0 %v996_v51  ;;  %v1000_v18 = vmul.f32 %v744_v7, %v5253_v39  ;;  %v748_v51 = vand.u32 2147483647, %v492_v13 }
  0xd1   : > { %4481 = vmatprep.subr.bf16.mxu1 %v4480_v42  ;;  %v5720_v7 = vrot.slane %v5708_v56, %v5110_v12 }
  0xd2   : > { %4575 = vmatpush3.bf16.xpose.msra.mxu0 %v4572_v60  ;;  %v751_v60 = vand.u32 2147483647, %v495_v46 }
  0xd3   : > { %4577 = vmatprep.subr.bf16.mxu0 %v4576_v26  ;;  %v499_v23 = vsub.f32 %v5720_v7, %v5152_v24  ;;  %v498_v13 = vsub.f32 %v5720_v7, %v5134_v20  ;;  %v501_v46 = vsub.f32 %v5720_v7, %v5137_v21  ;;  %v500_v2 = vsub.f32 %v5720_v7, %v5131_v19  ;;  %v7645_v20 = vld [vmem:[#allocation25_spill] sm:$0xff]  ;;  %v7646_v24 = vld [vmem:[#allocation16_spill] sm:$0xff] }
  0xd4   : > { %1308 = vadd.xlane.f32.xlu1 %v999_v62  ;;  %1306 = vadd.xlane.f32.xlu0 %v998_v4  ;;  %v1004_v62 = vmul.f32 %v748_v51, %v5312_v17  ;;  %v750_v4 = vand.u32 2147483647, %v494_v54  ;;  %v7644_v51 = vld [vmem:[#allocation43_spill] sm:$0xff]  ;;  %v503_v54 = vsub.f32 %v5720_v7, %v5155_v25  ;;  %v502_v21 = vsub.f32 %v5720_v7, %v5163_v27 }
  0xd5   : > { %v757_v16 = vand.u32 2147483647, %v501_v46  ;;  %v756_v58 = vand.u32 2147483647, %v500_v2  ;;  %v505_v22 = vsub.f32 %v5720_v7, %v5189_v38  ;;  %v504_v25 = vsub.f32 %v5720_v7, %v7615_v47 }
  0xd6   : > { %v507_v47 = vsub.f32 %v5720_v7, %v7616_v5 }
  0xd7   : > { %4483 = vmatpush3.bf16.xpose.msra.mxu1 %v4480_v42  ;;  %v1009_v42 = vmul.f32 %v753_v57, %v5355_v41  ;;  %v1013_v27 = vmul.f32 %v757_v16, %v5194_v43  ;;  %v761_v38 = vand.u32 2147483647, %v505_v22  ;;  %v7651_v57 = vlaneseq }
  0xd8   : > { %1312 = vadd.xlane.f32.xlu1 %v1001_v9  ;;  %1310 = vadd.xlane.f32.xlu0 %v1000_v18  ;;  %v1007_v9 = vmul.f32 %v751_v60, %v5334_v49  ;;  %v1006_v18 = vmul.f32 %v750_v4, %v5337_v31  ;;  %v7650_v4 = vld [vmem:[#allocation19_spill] sm:$0xff] }
  0xd9   : > { %4485 = vmatprep.subr.bf16.mxu1 %v4484_v48 }
  0xda   : > { %4579 = vmatpush3.bf16.xpose.msra.mxu0 %v4576_v26  ;;  %v1008_v26 = vmul.f32 %v752_v8, %v5364_v63  ;;  %v5765_v8 = vand.u32 127, %v7651_v57 }
  0xdb   : > { %4581 = vmatprep.subr.bf16.mxu0 %v7643_v52 }
  0xdc   : > { %1316 = vadd.xlane.f32.xlu1 %v1003_v28  ;;  %1314 = vadd.xlane.f32.xlu0 %v1002_v15  ;;  %v755_v28 = vand.u32 2147483647, %v499_v23  ;;  %v754_v15 = vand.u32 2147483647, %v498_v13  ;;  %v763_v13 = vand.u32 2147483647, %v507_v47 }
  0xde   : > { %4278 = vmatmul.mubr.f32.vlgmr.msra.gmra.mrb[0].mxu1 %v7644_v51  ;;  %v1011_v19 = vmul.f32 %v755_v28, %v5197_v44  ;;  %v1010_v60 = vmul.f32 %v754_v15, %v5182_v35  ;;  %v1012_v44 = vmul.f32 %v756_v58, %v7614_v53  ;;  %v758_v35 = vand.u32 2147483647, %v502_v21 }
  0xdf   : > { %4487 = vmatpush3.bf16.xpose.msra.mxu1 %v4484_v48  ;;  %v7647_v48 = vld [vmem:[#allocation35_spill] sm:$0xff]  ;;  %v1997_v21 = vadd.s32 4294967264, %v5765_v8 }
  0xe0   : > { %1320 = vadd.xlane.f32.xlu1 %v1005_v0  ;;  %1318 = vadd.xlane.f32.xlu0 %v1004_v62  ;;  %v759_v0 = vand.u32 2147483647, %v503_v54  ;;  %v7649_v62 = vld [vmem:[#allocation26_spill] sm:$0xff]  ;;  %v1014_v53 = vmul.f32 %v758_v35, %v7637_v32  ;;  %v511_v32 = vsub.f32 %v5720_v7, %v7639_v55  ;;  %v510_v55 = vsub.f32 %v5720_v7, %v7640_v29 }
  0xe1   : > { %4383 = vmatmul.mubr.f32.vlgmr.msra.gmra.mrb[0].mxu0 %v7644_v51  ;;  %4489 = vmatprep.subr.bf16.mxu1 %v7645_v20 }
  0xe2   : > { %4583 = vmatpush3.bf16.xpose.msra.mxu0 %v7643_v52  ;;  %4312 = vmatprep.mubr.f32.mxu1 %v7647_v48  ;;  %v1015_v43 = vmul.f32 %v759_v0, %v7636_v6  ;;  %v506_v52 = vsub.f32 %v5720_v7, %v7617_v36  ;;  %v508_v6 = vsub.f32 %v5720_v7, %v5256_v40  ;;  %v7652_v40 = vld [vmem:[#allocation24_spill] sm:$0xff]  ;;  %v766_v58 = vand.u32 2147483647, %v510_v55 }
  0xe3   : > { %4585 = vmatprep.subr.bf16.mxu0 %v7646_v24  ;;  %4417 = vmatprep.mubr.f32.mxu0 %v7648_v14  ;;  %v272_v36 = vcombine.high %v5693_v50, %v5693_v50  ;;  %v2004_v50 = vadd.s32 4294967256, %v5765_v8  ;;  %v513_v48 = vsub.f32 %v5720_v7, %v5306_v45  ;;  %v512_v14 = vsub.f32 %v5720_v7, %v5315_v10 }
  0xe4   : > { %1324 = vadd.xlane.f32.xlu1 %v1007_v9  ;;  %1322 = vadd.xlane.f32.xlu0 %v1006_v18  ;;  %v760_v9 = vand.u32 2147483647, %v504_v25  ;;  %v1017_v18 = vmul.f32 %v761_v38, %v5243_v30  ;;  %v762_v5 = vand.u32 2147483647, %v506_v52  ;;  %v1983_v30 = vadd.s32 4294967280, %v5765_v8  ;;  %v7658_v38 = vld [vmem:[#allocation30_spill] sm:$0xff] }
  0xe5   : > { %v764_v46 = vand.u32 2147483647, %v508_v6  ;;  %v5790_v2 = vrot.slane %v272_v36, %v7638_v59  ;;  %v2018_v10 = vadd.s32 4294967240, %v5765_v8  ;;  %v768_v47 = vand.u32 2147483647, %v512_v14  ;;  %v5841_v52 = vld [vmem:[%s5082_s5] sm:$0xff] }
  0xe6   : > { %v1016_v23 = vmul.f32 %v760_v9, %v5253_v39  ;;  %v1990_v39 = vadd.s32 4294967272, %v5765_v8  ;;  %v1018_v28 = vmul.f32 %v762_v5, %v5290_v1  ;;  %v769_v9 = vand.u32 2147483647, %v513_v48  ;;  %7660 = vst [vmem:[#allocation36_spill] sm:$0xff] %v5841_v52 }
  0xe7   : > { %4491 = vmatpush3.bf16.xpose.msra.mxu1 %v7645_v20  ;;  %v1020_v25 = vmul.f32 %v764_v46, %v5312_v17  ;;  %v2039_v14 = vadd.s32 4294967216, %v5765_v8 }
  0xe8   : > { %1328 = vadd.xlane.f32.xlu1 %v1009_v42  ;;  %1326 = vadd.xlane.f32.xlu0 %v1008_v26  ;;  %v509_v42 = vsub.f32 %v5720_v7, %v5250_v37  ;;  %v1976_v26 = vadd.s32 4294967288, %v5765_v8  ;;  %v1019_v37 = vmul.f32 %v763_v13, %v5287_v11  ;;  %v7653_v11 = vld [vmem:[#allocation11_spill] sm:$0xff]  ;;  %v2011_v7 = vadd.s32 4294967248, %v5765_v8 }
  0xe9   : > { %4493 = vmatprep.subr.bf16.mxu1 %v7649_v62  ;;  %v5798_v29 = vsub.s32 %v1983_v30, %v7653_v11  ;;  %v5801_v1 = vsub.s32 %v1990_v39, %v7653_v11  ;;  %v5807_v16 = vsub.s32 %v2004_v50, %v7653_v11  ;;  %v5820_v35 = vsub.s32 %v1997_v21, %v7653_v11 }
  0xea   : > { %4587 = vmatpush3.bf16.xpose.msra.mxu0 %v7646_v24  ;;  %v765_v15 = vand.u32 2147483647, %v509_v42  ;;  %v5794_v24 = vsub.s32 %v5765_v8, %v7653_v11  ;;  %v5847_v13 = vsub.s32 %v2018_v10, %v7653_v11  ;;  %v5850_v5 = vsub.s32 %v2011_v7, %v7653_v11 }
  0xeb   : > { %4589 = vmatprep.subr.bf16.mxu0 %v7650_v4  ;;  %7655 = vst [vmem:[#allocation23_spill] sm:$0xff] %v5798_v29  ;;  %7656 = vst [vmem:[#allocation31_spill] sm:$0xff] %v5807_v16  ;;  %v2032_v42 = vadd.s32 4294967224, %v5765_v8  ;;  %v2025_v30 = vadd.s32 4294967232, %v5765_v8  ;;  %v1025_v39 = vmul.f32 %v769_v9, %v5355_v41  ;;  %v2046_v21 = vadd.s32 4294967208, %v5765_v8 }
  0xec   : > { %1332 = vadd.xlane.f32.xlu1 %v1011_v19  ;;  %1330 = vadd.xlane.f32.xlu0 %v1010_v60  ;;  %7654 = vst [vmem:[#allocation22_spill] sm:$0xff] %v5794_v24  ;;  %v767_v19 = vand.u32 2147483647, %v511_v32  ;;  %v5804_v60 = vsub.s32 %v1976_v26, %v7653_v11  ;;  %v1021_v22 = vmul.f32 %v765_v15, %v5303_v33  ;;  %7657 = vst [vmem:[#allocation32_spill] sm:$0xff] %v5820_v35  ;;  %v5866_v15 = vld [vmem:[%s5082_s5 + $0x30] sm:$0xff] }
  0xed   : > { %v1024_v26 = vmul.f32 %v768_v47, %v5364_v63  ;;  %7662 = vst [vmem:[#allocation41_spill] sm:$0xff] %v5866_v15  ;;  %v5880_v48 = vsub.s32 %v2025_v30, %v7653_v11 }
  0xee   : > { %v1023_v45 = vmul.f32 %v767_v19, %v5334_v49  ;;  %v1022_v49 = vmul.f32 %v766_v58, %v5337_v31 }
  0xef   : > { %4495 = vmatpush3.bf16.xpose.msra.mxu1 %v7649_v62 }
  0xf0   : > { %1336 = vadd.xlane.f32.xlu1 %v1013_v27  ;;  %1334 = vadd.xlane.f32.xlu0 %v1012_v44  ;;  %v5817_v27 = vrot.slane %v5790_v2, %v5110_v12 }
  0xf1   : > { %4497 = vmatprep.subr.bf16.mxu1 %v5627_v61 }
  0xf2   : > { %4591 = vmatpush3.bf16.xpose.msra.mxu0 %v7650_v4  ;;  %v514_v31 = vsub.f32 %v5817_v27, %v5841_v52  ;;  %v516_v46 = vsub.f32 %v5817_v27, %v5866_v15 }
  0xf3   : > { %4593 = vmatprep.subr.bf16.mxu0 %v7652_v40 }
  0xf4   : > { %1340 = vadd.xlane.f32.xlu1 %v1015_v43  ;;  %1338 = vadd.xlane.f32.xlu0 %v1014_v53  ;;  %v5836_v53 = vld [vmem:[%s5082_s5 + $0x18] sm:$0xff] }
  0xf5   : > { %7659 = vst [vmem:[#allocation29_spill] sm:$0xff] %v5836_v53 }
  0xf7   : > { %4499 = vmatpush3.bf16.xpose.msra.mxu1 %v5627_v61  ;;  %v515_v61 = vsub.f32 %v5817_v27, %v5836_v53 }
  0xf8   : > { %1344 = vadd.xlane.f32.xlu1 %v1017_v18  ;;  %1342 = vadd.xlane.f32.xlu0 %v1016_v23 }
  0xf9   : > { %v1207_v20 = vpop.xlane.xlu1 %1206  ;;  %v1203_v54 = vpop.xlane.xlu0 %1202  ;;  %4501 = vmatprep.subr.bf16.mxu1 %v5645_v3  ;;  %v771_v55 = vand.u32 2147483647, %v515_v61  ;;  %v2060_v61 = vadd.s32 4294967192, %v5765_v8 }
  0xfa   : > { %v1975_v33 = vrot.slane %v1203_v54, %v5794_v24  ;;  %4595 = vmatpush3.bf16.xpose.msra.mxu0 %v7652_v40  ;;  %v1987_v4 = vrot.slane %v1207_v20, %v5798_v29  ;;  %v5872_v54 = vsub.s32 %v2032_v42, %v7653_v11  ;;  %v5916_v42 = vld [vmem:[%s5082_s5 + $0x50] sm:$0xff] }
  0xfb   : > { %4597 = vmatprep.subr.bf16.mxu0 %v7658_v38 }
  0xfc   : > { %1348 = vadd.xlane.f32.xlu1 %v1019_v37  ;;  %1346 = vadd.xlane.f32.xlu0 %v1018_v28  ;;  %v5860_v37 = vld [vmem:[%s5082_s5 + $0x48] sm:$0xff]  ;;  %v770_v28 = vand.u32 2147483647, %v514_v31  ;;  %7663 = vst [vmem:[#allocation42_spill] sm:$0xff] %v5872_v54 }
  0xfd   : > { %v1209_v44 = vpop.xlane.xlu1 %1208  ;;  %v1205_v0 = vpop.xlane.xlu0 %1204  ;;  %7661 = vst [vmem:[#allocation37_spill] sm:$0xff] %v5860_v37  ;;  %v517_v40 = vsub.f32 %v5817_v27, %v5860_v37 }
  0xfe   : > { %v1994_v17 = vrot.slane %v1209_v44, %v5801_v1  ;;  %v1980_v62 = vrot.slane %v1205_v0, %v5804_v60  ;;  %v5886_v0 = vld [vmem:[%s5082_s5 + $0x78] sm:$0xff] }
  0xff   : > { %4503 = vmatpush3.bf16.xpose.msra.mxu1 %v5645_v3  ;;  %v773_v44 = vand.u32 2147483647, %v517_v40  ;;  %7666 = vst [vmem:[#allocation13_spill] sm:$0xff] %v5886_v0  ;;  %v5891_v3 = vld [vmem:[%s5082_s5 + $0x60] sm:$0xff] }
 0x100   : > { %v1982_v43 = vsel %vm1981_vm0, %v1980_v62, %v1975_v33  ;;  %1352 = vadd.xlane.f32.xlu1 %v1021_v22  ;;  %1350 = vadd.xlane.f32.xlu0 %v1020_v25  ;;  %v7664_v22 = vld [vmem:[#allocation17_spill] sm:$0xff]  ;;  %v7665_v25 = vld [vmem:[#allocation34_spill] sm:$0xff]  ;;  %7667 = vst [vmem:[#allocation20_spill] sm:$0xff] %v5891_v3  ;;  %v518_v10 = vsub.f32 %v5817_v27, %v5891_v3  ;;  %v5897_v33 = vld [vmem:[%s5082_s5 + $0x20] sm:$0xff] }
 0x101   : > { %v1989_v57 = vsel %vm1988_vm1, %v1987_v4, %v1982_v43  ;;  %v1213_v18 = vpop.xlane.xlu1 %1212  ;;  %v1211_v23 = vpop.xlane.xlu0 %1210  ;;  %4505 = vmatprep.subr.bf16.mxu1 %v7664_v22  ;;  %v5901_v62 = vld [vmem:[%s5082_s5 + $0x8] sm:$0xff]  ;;  %v5906_v43 = vsub.s32 %v2046_v21, %v7653_v11  ;;  %v2074_v21 = vadd.s32 4294967176, %v5765_v8 }
 0x102   : > { %v2008_v6 = vrot.slane %v1213_v18, %v5807_v16  ;;  %v1996_v36 = vsel %vm1995_vm2, %v1994_v17, %v1989_v57  ;;  %v2001_v32 = vrot.slane %v1211_v23, %v5820_v35  ;;  %4599 = vmatpush3.bf16.xpose.msra.mxu0 %v7658_v38  ;;  %v1027_v17 = vmul.f32 %v5897_v33, %v771_v55  ;;  %v5930_v55 = vld [vmem:[%s5082_s5 + $0x90] sm:$0xff] }
 0x103   : > { %4601 = vmatprep.subr.bf16.mxu0 %v7665_v25  ;;  %v1026_v4 = vmul.f32 %v5901_v62, %v770_v28  ;;  %7668 = vst [vmem:[#allocation21_spill] sm:$0xff] %v5906_v43  ;;  %v5912_v18 = vsub.s32 %v2039_v14, %v7653_v11  ;;  %v2053_v23 = vadd.s32 4294967200, %v5765_v8  ;;  %v520_v28 = vsub.f32 %v5817_v27, %v5930_v55 }
 0x104   : > { %v2003_v50 = vsel %vm2002_vm3, %v2001_v32, %v1996_v36  ;;  %1356 = vadd.xlane.f32.xlu1 %v1023_v45  ;;  %1354 = vadd.xlane.f32.xlu0 %v1022_v49  ;;  %v519_v45 = vsub.f32 %v5817_v27, %v5886_v0  ;;  %v772_v49 = vand.u32 2147483647, %v516_v46  ;;  %v5920_v32 = vld [vmem:[%s5082_s5 + $0xa8] sm:$0xff] }
 0x105   : > { %v1217_v20 = vpop.xlane.xlu1 %1216  ;;  %v2010_v41 = vsel %vm2009_vm4, %v2008_v6, %v2003_v50  ;;  %v1215_v63 = vpop.xlane.xlu0 %1214  ;;  %7669 = vst [vmem:[#allocation27_spill] sm:$0xff] %v5912_v18  ;;  %v1029_v6 = vmul.f32 %v5916_v42, %v773_v44  ;;  %v521_v30 = vsub.f32 %v5817_v27, %v5920_v32  ;;  %v774_v50 = vand.u32 2147483647, %v518_v10 }
 0x106   : > { %v2022_v19 = vrot.slane %v1217_v20, %v5847_v13  ;;  %v2015_v58 = vrot.slane %v1215_v63, %v5850_v5  ;;  %v775_v36 = vand.u32 2147483647, %v519_v45  ;;  %v5936_v63 = vsub.s32 %v2060_v61, %v7653_v11  ;;  %v5948_v45 = vld [vmem:[%s5082_s5 + $0x80] sm:$0xff] }
 0x107   : > { %4507 = vmatpush3.bf16.xpose.msra.mxu1 %v7664_v22  ;;  %v5944_v14 = vsub.s32 %v2053_v23, %v7653_v11  ;;  %v2067_v44 = vadd.s32 4294967184, %v5765_v8  ;;  %v5960_v8 = vld [vmem:[%s5082_s5 + $0x68] sm:$0xff] }
 0x108   : > { %v2017_v7 = vsel %vm2016_vm5, %v2015_v58, %v2010_v41  ;;  %1360 = vadd.xlane.f32.xlu1 %v1025_v39  ;;  %1358 = vadd.xlane.f32.xlu0 %v1024_v26  ;;  %v5926_v26 = vld [vmem:[%s5082_s5 + $0x38] sm:$0xff]  ;;  %7670 = vst [vmem:[#allocation28_spill] sm:$0xff] %v5936_v63  ;;  %v1031_v10 = vmul.f32 %v5948_v45, %v775_v36 }
 0x109   : > { %v1221_v38 = vpop.xlane.xlu1 %1220  ;;  %v2024_v9 = vsel %vm2023_vm6, %v2022_v19, %v2017_v7  ;;  %v1219_v47 = vpop.xlane.xlu0 %1218  ;;  %v1028_v40 = vmul.f32 %v5926_v26, %v772_v49  ;;  %7671 = vst [vmem:[#allocation39_spill] sm:$0xff] %v5944_v14  ;;  %v7672_v7 = vld [vmem:[#allocation18_spill] sm:$0xff] }
 0x10a   : > { %v2036_v31 = vrot.slane %v1221_v38, %v5872_v54  ;;  %v2029_v57 = vrot.slane %v1219_v47, %v5880_v48  ;;  %4603 = vmatpush3.bf16.xpose.msra.mxu0 %v7665_v25  ;;  %4509 = vmatprep.subr.bf16.mxu1 %v7672_v7  ;;  %v5954_v49 = vld [vmem:[%s5082_s5 + $0xd8] sm:$0xff]  ;;  %v1030_v38 = vmul.f32 %v5960_v8, %v774_v50  ;;  %v5964_v47 = vld [vmem:[%s5082_s5 + $0xc0] sm:$0xff] }
 0x10b   : > { %v523_v22 = vsub.f32 %v5817_v27, %v5954_v49  ;;  %v522_v61 = vsub.f32 %v5817_v27, %v5964_v47 }
 0x10c   : > { %v2031_v39 = vsel %vm2030_vm7, %v2029_v57, %v2024_v9  ;;  %1364 = vadd.xlane.f32.xlu1 %v1027_v17  ;;  %1362 = vadd.xlane.f32.xlu0 %v1026_v4  ;;  %v7673_v17 = vld [vmem:[#allocation38_spill] sm:$0xff]  ;;  %v777_v4 = vand.u32 2147483647, %v521_v30  ;;  %v776_v9 = vand.u32 2147483647, %v520_v28  ;;  %v5972_v30 = vsub.s32 %v2074_v21, %v7653_v11 }
 0x10d   : > { %v1225_v46 = vpop.xlane.xlu1 %1224  ;;  %v2038_v20 = vsel %vm2037_vm8, %v2036_v31, %v2031_v39  ;;  %v1223_v41 = vpop.xlane.xlu0 %1222  ;;  %4605 = vmatprep.subr.bf16.mxu0 %v7673_v17  ;;  %v5975_v39 = vsub.s32 %v2067_v44, %v7653_v11  ;;  %v779_v28 = vand.u32 2147483647, %v523_v22  ;;  %v5988_v21 = vld [vmem:[%s5082_s5 + $0x98] sm:$0xff] }
 0x10e   : > { %v2050_v19 = vrot.slane %v1225_v46, %v5906_v43  ;;  %v2043_v58 = vrot.slane %v1223_v41, %v5912_v18  ;;  %7674 = vst [vmem:[#allocation40_spill] sm:$0xff] %v5972_v30  ;;  %v5982_v46 = vld [vmem:[%s5082_s5 + $0x108] sm:$0xff]  ;;  %v1032_v11 = vmul.f32 %v5988_v21, %v776_v9  ;;  %v6002_v9 = vld [vmem:[%s5082_s5 + $0x138] sm:$0xff] }
 0x10f   : > { %7675 = vst [vmem:[#allocation15_spill] sm:$0xff] %v5975_v39  ;;  %4511 = vmatpush3.bf16.xpose.msra.mxu1 %v7672_v7  ;;  %7678 = vst [vmem:[#allocation16_spill] sm:$0xff] %v6002_v9 }
 0x110   : > { %v2045_v25 = vsel %vm7552_vm9, %v2043_v58, %v2038_v20  ;;  %1368 = vadd.xlane.f32.xlu1 %v1029_v6  ;;  %1366 = vadd.xlane.f32.xlu0 %v1028_v40  ;;  %v5978_v40 = vld [vmem:[%s5082_s5 + $0xb0] sm:$0xff]  ;;  %v525_v20 = vsub.f32 %v5817_v27, %v5982_v46 }
 0x111   : > { %v1229_v31 = vpop.xlane.xlu1 %1228  ;;  %v2052_v57 = vsel %vm2051_vm10, %v2050_v19, %v2045_v25  ;;  %v1227_v23 = vpop.xlane.xlu0 %1226  ;;  %7676 = vst [vmem:[#allocation43_spill] sm:$0xff] %v5978_v40  ;;  %v1033_v50 = vmul.f32 %v5978_v40, %v777_v4  ;;  %v778_v19 = vand.u32 2147483647, %v522_v61  ;;  %v5992_v58 = vld [vmem:[%s5082_s5 + $0xf0] sm:$0xff]  ;;  %v527_v61 = vsub.f32 %v5817_v27, %v6002_v9  ;;  %4513 = vmatprep.subr.bf16.mxu1 %v5689_v34 }
 0x112   : > { %v2064_v6 = vrot.slane %v1229_v31, %v5936_v63  ;;  %v2057_v36 = vrot.slane %v1227_v23, %v5944_v14  ;;  %7677 = vst [vmem:[#allocation25_spill] sm:$0xff] %v5992_v58  ;;  %v524_v44 = vsub.f32 %v5817_v27, %v5992_v58  ;;  %4607 = vmatpush3.bf16.xpose.msra.mxu0 %v7673_v17  ;;  %v6007_v31 = vld [vmem:[%s5082_s5 + $0xe0] sm:$0xff]  ;;  %v7680_v23 = vld [vmem:[#allocation44_spill] sm:$0xff] }
 0x113   : > { %7679 = vst [vmem:[#allocation35_spill] sm:$0xff] %v6007_v31  ;;  %4609 = vmatprep.subr.bf16.mxu0 %v7680_v23 }
 0x114   : > { %v2059_v41 = vsel %vm2058_vm11, %v2057_v36, %v2052_v57  ;;  %1372 = vadd.xlane.f32.xlu1 %v1031_v10  ;;  %1370 = vadd.xlane.f32.xlu0 %v1030_v38  ;;  %v1035_v57 = vmul.f32 %v6007_v31, %v779_v28  ;;  %v6013_v36 = vld [vmem:[%s5082_s5 + $0x120] sm:$0xff] }
 0x115   : > { %v1233_v4 = vpop.xlane.xlu1 %1232  ;;  %v2066_v22 = vsel %vm2065_vm12, %v2064_v6, %v2059_v41  ;;  %v1231_v25 = vpop.xlane.xlu0 %1230  ;;  %v781_v6 = vand.u32 2147483647, %v525_v20  ;;  %7681 = vst [vmem:[#allocation33_spill] sm:$0xff] %v6013_v36  ;;  %v526_v7 = vsub.f32 %v5817_v27, %v6013_v36  ;;  %v6019_v41 = vld [vmem:[%s5082_s5 + $0xc8] sm:$0xff]  ;;  %v302_v20 = vcombine.high %v5708_v56, %v5708_v56 }
 0x116   : > { %v2078_v10 = vrot.slane %v1233_v4, %v5972_v30  ;;  %v2071_v38 = vrot.slane %v1231_v25, %v5975_v39  ;;  %v1034_v28 = vmul.f32 %v6019_v41, %v778_v19  ;;  %v780_v4 = vand.u32 2147483647, %v524_v44  ;;  %v6034_v44 = vld [vmem:[%s5082_s5 + $0x168] sm:$0xff] }
 0x117   : > { %v782_v19 = vand.u32 2147483647, %v526_v7  ;;  %7683 = vst [vmem:[#allocation19_spill] sm:$0xff] %v6034_v44  ;;  %v529_v56 = vsub.f32 %v5817_v27, %v6034_v44  ;;  %v6049_v7 = vrot.slane %v302_v20, %v5110_v12  ;;  %4515 = vmatpush3.bf16.xpose.msra.mxu1 %v5689_v34 }
 0x118   : > { %v2073_v17 = vsel %vm2072_vm13, %v2071_v38, %v2066_v22  ;;  %1376 = vadd.xlane.f32.xlu1 %v1033_v50  ;;  %1374 = vadd.xlane.f32.xlu0 %v1032_v11  ;;  %v783_v11 = vand.u32 2147483647, %v527_v61  ;;  %v6030_v38 = vld [vmem:[%s5082_s5 + $0x110] sm:$0xff]  ;;  %v6045_v61 = vld [vmem:[%s5082_s5 + $0xf8] sm:$0xff] }
 0x119   : > { %v6025_v25 = vsel %vm2079_vm14, %v2078_v10, %v2073_v17  ;;  %v1237_v59 = vpop.xlane.xlu1 %1236  ;;  %v1235_v36 = vpop.xlane.xlu0 %1234  ;;  %7682 = vst [vmem:[#allocation26_spill] sm:$0xff] %v6030_v38  ;;  %v1037_v9 = vmul.f32 %v6030_v38, %v781_v6  ;;  %v6039_v10 = vld [vmem:[%s5082_s5 + $0x150] sm:$0xff]  ;;  %v1036_v6 = vmul.f32 %v6045_v61, %v780_v4  ;;  %v785_v20 = vand.u32 2147483647, %v529_v56 }
 0x11a   : > { %v2088_v22 = vrot.slane %v1237_v59, %v5804_v60  ;;  %v2084_v50 = vrot.slane %v1235_v36, %v5794_v24  ;;  %7684 = vst [vmem:[#allocation24_spill] sm:$0xff] %v6039_v10  ;;  %v528_v59 = vsub.f32 %v5817_v27, %v6039_v10  ;;  %4611 = vmatpush3.bf16.xpose.msra.mxu0 %v7680_v23  ;;  %v6056_v27 = vld [vmem:[%s5082_s5 + $0x140] sm:$0xff]  ;;  %v6072_v56 = vld [vmem:[%s5082_s5 + $0x170] sm:$0xff] }
 0x11b   : > { %7685 = vst [vmem:[#allocation11_spill] sm:$0xff] %v6056_v27  ;;  %v531_v34 = vsub.f32 %v6049_v7, %v5836_v53  ;;  %v530_v23 = vsub.f32 %v6049_v7, %v5841_v52  ;;  %7686 = vst [vmem:[#allocation30_spill] sm:$0xff] %v6072_v56 }
 0x11c   : > { %v2089_v36 = vsel %vm1981_vm0, %v2088_v22, %v2084_v50  ;;  %1380 = vadd.xlane.f32.xlu1 %v1035_v57  ;;  %1378 = vadd.xlane.f32.xlu0 %v1034_v28  ;;  %v1039_v57 = vmul.f32 %v6056_v27, %v783_v11  ;;  %v6060_v28 = vld [vmem:[%s5082_s5 + $0x128] sm:$0xff]  ;;  %v784_v22 = vand.u32 2147483647, %v528_v59 }
 0x11d   : > { %v1241_v17 = vpop.xlane.xlu1 %1240  ;;  %v1239_v38 = vpop.xlane.xlu0 %1238  ;;  %v1038_v4 = vmul.f32 %v6060_v28, %v782_v19 }
 0x11e   : > { %v2098_v44 = vrot.slane %v1241_v17, %v5801_v1  ;;  %v2093_v24 = vrot.slane %v1239_v38, %v5798_v29 }
 0x120   : > { %v2094_v50 = vsel %vm1988_vm1, %v2093_v24, %v2089_v36  ;;  %1384 = vadd.xlane.f32.xlu1 %v1037_v9  ;;  %1382 = vadd.xlane.f32.xlu0 %v1036_v6  ;;  %v1041_v24 = vmul.f32 %v6072_v56, %v785_v20  ;;  %v6076_v9 = vld [vmem:[%s5082_s5 + $0x158] sm:$0xff]  ;;  %v533_v36 = vsub.f32 %v6049_v7, %v5860_v37  ;;  %v7688_v56 = vld [vmem:[#allocation45_spill] sm:$0xff] }
 0x121   : > { %v1245_v38 = vpop.xlane.xlu1 %1244  ;;  %v2099_v11 = vsel %vm1995_vm2, %v2098_v44, %v2094_v50  ;;  %v1243_v17 = vpop.xlane.xlu0 %1242  ;;  %7687 = vst [vmem:[#allocation17_spill] sm:$0xff] %v6076_v9  ;;  %v1040_v59 = vmul.f32 %v6076_v9, %v784_v22  ;;  %v787_v44 = vand.u32 2147483647, %v531_v34  ;;  %v786_v50 = vand.u32 2147483647, %v530_v23  ;;  %4313 = vmatmul.mubr.f32.vlgmr.msra.gmra.mrb[0].mxu1 %v7688_v56  ;;  %4418 = vmatmul.mubr.f32.vlgmr.msra.gmra.mrb[0].mxu0 %v7644_v51 }
 0x122   : > { %v2108_v27 = vrot.slane %v1245_v38, %v5807_v16  ;;  %v2103_v19 = vrot.slane %v1243_v17, %v5820_v35  ;;  %v532_v38 = vsub.f32 %v6049_v7, %v5866_v15 }
 0x123   : > { %v1042_v23 = vmul.f32 %v5901_v62, %v786_v50 }
 0x124   : > { %v2104_v6 = vsel %vm2002_vm3, %v2103_v19, %v2099_v11  ;;  %1388 = vadd.xlane.f32.xlu1 %v1039_v57  ;;  %1386 = vadd.xlane.f32.xlu0 %v1038_v4  ;;  %v789_v11 = vand.u32 2147483647, %v533_v36  ;;  %v535_v57 = vsub.f32 %v6049_v7, %v5886_v0  ;;  %v534_v4 = vsub.f32 %v6049_v7, %v5891_v3 }
 0x125   : > { %v1249_v17 = vpop.xlane.xlu1 %1248  ;;  %v2109_v35 = vsel %vm2009_vm4, %v2108_v27, %v2104_v6  ;;  %v1247_v20 = vpop.xlane.xlu0 %1246  ;;  %v1043_v27 = vmul.f32 %v5897_v33, %v787_v44  ;;  %v788_v51 = vand.u32 2147483647, %v532_v38  ;;  %v537_v3 = vsub.f32 %v6049_v7, %v5920_v32 }
 0x126   : > { %v2118_v22 = vrot.slane %v1249_v17, %v5847_v13  ;;  %v2113_v9 = vrot.slane %v1247_v20, %v5850_v5  ;;  %v791_v20 = vand.u32 2147483647, %v535_v57  ;;  %v790_v44 = vand.u32 2147483647, %v534_v4 }
 0x128   : > { %v2114_v34 = vsel %vm2016_vm5, %v2113_v9, %v2109_v35  ;;  %1392 = vadd.xlane.f32.xlu1 %v1041_v24  ;;  %1390 = vadd.xlane.f32.xlu0 %v1040_v59  ;;  %v536_v35 = vsub.f32 %v6049_v7, %v5930_v55  ;;  %v1045_v9 = vmul.f32 %v5916_v42, %v789_v11 }
 0x129   : > { %v1253_v19 = vpop.xlane.xlu1 %1252  ;;  %v2119_v56 = vsel %vm2023_vm6, %v2118_v22, %v2114_v34  ;;  %v1251_v6 = vpop.xlane.xlu0 %1250  ;;  %v1044_v59 = vmul.f32 %v5926_v26, %v788_v51  ;;  %v1046_v11 = vmul.f32 %v5960_v8, %v790_v44  ;;  %v538_v51 = vsub.f32 %v6049_v7, %v5964_v47 }
 0x12a   : > { %v2128_v36 = vrot.slane %v1253_v19, %v5872_v54  ;;  %v2123_v17 = vrot.slane %v1251_v6, %v5880_v48  ;;  %v1047_v19 = vmul.f32 %v5948_v45, %v791_v20  ;;  %v793_v6 = vand.u32 2147483647, %v537_v3 }
 0x12b   : > { %v792_v4 = vand.u32 2147483647, %v536_v35  ;;  %v794_v44 = vand.u32 2147483647, %v538_v51  ;;  %v7690_v51 = vld [vmem:[#allocation33_spill] sm:$0xff] }
 0x12c   : > { %v2124_v24 = vsel %vm2030_vm7, %v2123_v17, %v2119_v56  ;;  %1396 = vadd.xlane.f32.xlu1 %v1043_v27  ;;  %1394 = vadd.xlane.f32.xlu0 %v1042_v23  ;;  %v539_v27 = vsub.f32 %v6049_v7, %v5954_v49 }
 0x12d   : > { %v1257_v50 = vpop.xlane.xlu1 %1256  ;;  %v2129_v38 = vsel %vm2037_vm8, %v2128_v36, %v2124_v24  ;;  %v1255_v22 = vpop.xlane.xlu0 %1254  ;;  %v1049_v24 = vmul.f32 %v5978_v40, %v793_v6  ;;  %v1048_v35 = vmul.f32 %v5988_v21, %v792_v4  ;;  %v304_v6 = vcombine.high %v5790_v2, %v5790_v2 }
 0x12e   : > { %v2138_v57 = vrot.slane %v1257_v50, %v5906_v43  ;;  %v2133_v34 = vrot.slane %v1255_v22, %v5912_v18  ;;  %v795_v50 = vand.u32 2147483647, %v539_v27 }
 0x130   : > { %v2134_v23 = vsel %vm7552_vm9, %v2133_v34, %v2129_v38  ;;  %1400 = vadd.xlane.f32.xlu1 %v1045_v9  ;;  %1398 = vadd.xlane.f32.xlu0 %v1044_v59  ;;  %v541_v9 = vsub.f32 %v6049_v7, %v5982_v46  ;;  %v540_v38 = vsub.f32 %v6049_v7, %v5992_v58 }
 0x131   : > { %v1261_v56 = vpop.xlane.xlu1 %1260  ;;  %v2139_v36 = vsel %vm2051_vm10, %v2138_v57, %v2134_v23  ;;  %v1259_v17 = vpop.xlane.xlu0 %1258 }
 0x132   : > { %v2148_v20 = vrot.slane %v1261_v56, %v5936_v63  ;;  %v2143_v3 = vrot.slane %v1259_v17, %v5944_v14  ;;  %v542_v56 = vsub.f32 %v6049_v7, %v7690_v51  ;;  %v1050_v17 = vmul.f32 %v6019_v41, %v794_v44 }
 0x133   : > { %v797_v2 = vand.u32 2147483647, %v541_v9  ;;  %v544_v9 = vsub.f32 %v6049_v7, %v6039_v10 }
 0x134   : > { %v2144_v59 = vsel %vm2058_vm11, %v2143_v3, %v2139_v36  ;;  %1404 = vadd.xlane.f32.xlu1 %v1047_v19  ;;  %1402 = vadd.xlane.f32.xlu0 %v1046_v11  ;;  %v1051_v19 = vmul.f32 %v6007_v31, %v795_v50  ;;  %v7689_v11 = vld [vmem:[#allocation16_spill] sm:$0xff] }
 0x135   : > { %v1265_v22 = vpop.xlane.xlu1 %1264  ;;  %v2149_v57 = vsel %vm2065_vm12, %v2148_v20, %v2144_v59  ;;  %v1263_v34 = vpop.xlane.xlu0 %1262  ;;  %v543_v4 = vsub.f32 %v6049_v7, %v7689_v11  ;;  %v796_v20 = vand.u32 2147483647, %v540_v38  ;;  %v7691_v11 = vld [vmem:[#allocation22_spill] sm:$0xff] }
 0x136   : > { %v2158_v27 = vrot.slane %v1265_v22, %v5972_v30  ;;  %v2153_v23 = vrot.slane %v1263_v34, %v5975_v39 }
 0x137   : > { %v799_v31 = vand.u32 2147483647, %v543_v4 }
 0x138   : > { %v2154_v36 = vsel %vm2072_vm13, %v2153_v23, %v2149_v57  ;;  %1408 = vadd.xlane.f32.xlu1 %v1049_v24  ;;  %1406 = vadd.xlane.f32.xlu0 %v1048_v35  ;;  %v7692_v57 = vld [vmem:[#allocation19_spill] sm:$0xff]  ;;  %v6150_v35 = vrot.slane %v304_v6, %v5110_v12  ;;  %v798_v23 = vand.u32 2147483647, %v542_v56 }
 0x139   : > { %v2159_v3 = vsel %vm2079_vm14, %v2158_v27, %v2154_v36  ;;  %v1269_v59 = vpop.xlane.xlu1 %1268  ;;  %v1267_v22 = vpop.xlane.xlu0 %1266  ;;  %v545_v24 = vsub.f32 %v6049_v7, %v7692_v57  ;;  %v1052_v27 = vmul.f32 %v6045_v61, %v796_v20 }
 0x13a   : > { %v6141_v50 = vsel %vm7478_vm15, %v2159_v3, %v6025_v25  ;;  %v2167_v34 = vrot.slane %v1269_v59, %v5804_v60  ;;  %v2163_v51 = vrot.slane %v1267_v22, %v7691_v11  ;;  %v7693_v25 = vld [vmem:[#allocation26_spill] sm:$0xff]  ;;  %v547_v7 = vsub.f32 %v6150_v35, %v5836_v53 }
 0x13b   : > { %v1053_v38 = vmul.f32 %v7693_v25, %v797_v2  ;;  %v801_v22 = vand.u32 2147483647, %v545_v24  ;;  %v546_v6 = vsub.f32 %v6150_v35, %v5841_v52  ;;  %v1054_v56 = vmul.f32 %v6060_v28, %v798_v23 }
 0x13c   : > { %v2168_v44 = vsel %vm1981_vm0, %v2167_v34, %v2163_v51  ;;  %1412 = vadd.xlane.f32.xlu1 %v1051_v19  ;;  %1410 = vadd.xlane.f32.xlu0 %v1050_v17  ;;  %v7694_v51 = vld [vmem:[#allocation11_spill] sm:$0xff]  ;;  %v800_v2 = vand.u32 2147483647, %v544_v9  ;;  %v549_v52 = vsub.f32 %v6150_v35, %v5860_v37  ;;  %v7696_v9 = vld [vmem:[#allocation30_spill] sm:$0xff]  ;;  %vm7490_vm15 = vcmask 1042434  }
 0x13d   : > { %v1273_v36 = vpop.xlane.xlu1 %1272  ;;  %v1271_v4 = vpop.xlane.xlu0 %1270  ;;  %v1055_v17 = vmul.f32 %v7694_v51, %v799_v31 }
 0x13e   : > { %v2177_v3 = vrot.slane %v1273_v36, %v5801_v1  ;;  %v2172_v59 = vrot.slane %v1271_v4, %v5798_v29  ;;  %v7695_v4 = vld [vmem:[#allocation32_spill] sm:$0xff]  ;;  %v803_v29 = vand.u32 2147483647, %v547_v7  ;;  %v805_v37 = vand.u32 2147483647, %v549_v52 }
 0x140   : > { %v2173_v19 = vsel %vm1988_vm1, %v2172_v59, %v2168_v44  ;;  %1416 = vadd.xlane.f32.xlu1 %v1053_v38  ;;  %1414 = vadd.xlane.f32.xlu0 %v1052_v27  ;;  %v548_v44 = vsub.f32 %v6150_v35, %v5866_v15  ;;  %v1057_v38 = vmul.f32 %v7696_v9, %v801_v22  ;;  %v7697_v27 = vld [vmem:[#allocation17_spill] sm:$0xff] }
 0x141   : > { %v1277_v20 = vpop.xlane.xlu1 %1276  ;;  %v2178_v34 = vsel %vm1995_vm2, %v2177_v3, %v2173_v19  ;;  %v1275_v36 = vpop.xlane.xlu0 %1274  ;;  %v1056_v23 = vmul.f32 %v7697_v27, %v800_v2  ;;  %v802_v3 = vand.u32 2147483647, %v546_v6  ;;  %v551_v15 = vsub.f32 %v6150_v35, %v5886_v0 }
 0x142   : > { %v2187_v24 = vrot.slane %v1277_v20, %v5807_v16  ;;  %v2182_v53 = vrot.slane %v1275_v36, %v7695_v4  ;;  %v1059_v6 = vmul.f32 %v5897_v33, %v803_v29  ;;  %v804_v2 = vand.u32 2147483647, %v548_v44 }
 0x144   : > { %v2183_v31 = vsel %vm2002_vm3, %v2182_v53, %v2178_v34  ;;  %1420 = vadd.xlane.f32.xlu1 %v1055_v17  ;;  %1418 = vadd.xlane.f32.xlu0 %v1054_v56  ;;  %v7698_v53 = vld [vmem:[#allocation20_spill] sm:$0xff]  ;;  %v1058_v56 = vmul.f32 %v5901_v62, %v802_v3  ;;  %v1060_v29 = vmul.f32 %v5926_v26, %v804_v2 }
 0x145   : > { %v1281_v59 = vpop.xlane.xlu1 %1280  ;;  %v2188_v19 = vsel %vm2009_vm4, %v2187_v24, %v2183_v31  ;;  %v1279_v20 = vpop.xlane.xlu0 %1278  ;;  %v550_v17 = vsub.f32 %v6150_v35, %v7698_v53  ;;  %v807_v53 = vand.u32 2147483647, %v551_v15  ;;  %v552_v3 = vsub.f32 %v6150_v35, %v5930_v55 }
 0x146   : > { %v2197_v7 = vrot.slane %v1281_v59, %v5847_v13  ;;  %v2192_v36 = vrot.slane %v1279_v20, %v5850_v5  ;;  %v1061_v20 = vmul.f32 %v5916_v42, %v805_v37 }
 0x147   : > { %v806_v44 = vand.u32 2147483647, %v550_v17  ;;  %v808_v2 = vand.u32 2147483647, %v552_v3 }
 0x148   : > { %v2193_v22 = vsel %vm2016_vm5, %v2192_v36, %v2188_v19  ;;  %1424 = vadd.xlane.f32.xlu1 %v1057_v38  ;;  %1422 = vadd.xlane.f32.xlu0 %v1056_v23  ;;  %v553_v38 = vsub.f32 %v6150_v35, %v5920_v32 }
 0x149   : > { %v1285_v34 = vpop.xlane.xlu1 %1284  ;;  %v2198_v24 = vsel %vm2023_vm6, %v2197_v7, %v2193_v22  ;;  %v1283_v31 = vpop.xlane.xlu0 %1282  ;;  %v1063_v22 = vmul.f32 %v5948_v45, %v807_v53 }
 0x14a   : > { %v2207_v52 = vrot.slane %v1285_v34, %v5872_v54  ;;  %v2202_v59 = vrot.slane %v1283_v31, %v5880_v48  ;;  %v809_v34 = vand.u32 2147483647, %v553_v38 }
 0x14c   : > { %v2203_v23 = vsel %vm2030_vm7, %v2202_v59, %v2198_v24  ;;  %1428 = vadd.xlane.f32.xlu1 %v1059_v6  ;;  %1426 = vadd.xlane.f32.xlu0 %v1058_v56  ;;  %v555_v6 = vsub.f32 %v6150_v35, %v5954_v49  ;;  %v1062_v56 = vmul.f32 %v5960_v8, %v806_v44 }
 0x14d   : > { %v1289_v19 = vpop.xlane.xlu1 %1288  ;;  %v2208_v7 = vsel %vm2037_vm8, %v2207_v52, %v2203_v23  ;;  %v1287_v36 = vpop.xlane.xlu0 %1286  ;;  %v554_v24 = vsub.f32 %v6150_v35, %v5964_v47  ;;  %v6206_v23 = vld [vmem:[%s5074_s24 + $0x10] sm:$0xff]  ;;  %v556_v44 = vsub.f32 %v6150_v35, %v5992_v58  ;;  %v7701_v58 = vld [vmem:[#allocation35_spill] sm:$0xff] }
 0x14e   : > { %v2217_v37 = vrot.slane %v1289_v19, %v5906_v43  ;;  %v2212_v15 = vrot.slane %v1287_v36, %v5912_v18  ;;  %7699 = vst [vmem:[#allocation34_spill] sm:$0xff] %v6206_v23  ;;  %v1065_v19 = vmul.f32 %v5978_v40, %v809_v34 }
 0x14f   : > { %v810_v36 = vand.u32 2147483647, %v554_v24  ;;  %v7703_v24 = vld [vmem:[#allocation33_spill] sm:$0xff] }
 0x150   : > { %v2213_v17 = vsel %vm7552_vm9, %v2212_v15, %v2208_v7  ;;  %1432 = vadd.xlane.f32.xlu1 %v1061_v20  ;;  %1430 = vadd.xlane.f32.xlu0 %v1060_v29  ;;  %v811_v20 = vand.u32 2147483647, %v555_v6  ;;  %v557_v29 = vsub.f32 %v6150_v35, %v5982_v46  ;;  %v1064_v7 = vmul.f32 %v5988_v21, %v808_v2 }
 0x151   : > { %v1293_v31 = vpop.xlane.xlu1 %1292  ;;  %v2218_v52 = vsel %vm2051_vm10, %v2217_v37, %v2213_v17  ;;  %v1291_v59 = vpop.xlane.xlu0 %1290  ;;  %v7700_v37 = vld [vmem:[#allocation12_spill] sm:$0xff] }
 0x152   : > { %v2227_v53 = vrot.slane %v1293_v31, %v5936_v63  ;;  %v2222_v38 = vrot.slane %v1291_v59, %v5944_v14  ;;  %v6219_v15 = vrot.slane %v6206_v23, %v7700_v37 }
 0x154   : > { %v2223_v3 = vsel %vm2058_vm11, %v2222_v38, %v2218_v52  ;;  %1436 = vadd.xlane.f32.xlu1 %v1063_v22  ;;  %1434 = vadd.xlane.f32.xlu0 %v1062_v56  ;;  %v1067_v52 = vmul.f32 %v7701_v58, %v811_v20  ;;  %v813_v22 = vand.u32 2147483647, %v557_v29  ;;  %v7702_v56 = vld [vmem:[#allocation16_spill] sm:$0xff]  ;;  %v558_v38 = vsub.f32 %v6150_v35, %v7703_v24 }
 0x155   : > { %v1297_v17 = vpop.xlane.xlu1 %1296  ;;  %v2228_v34 = vsel %vm2065_vm12, %v2227_v53, %v2223_v3  ;;  %v1295_v6 = vpop.xlane.xlu0 %1294  ;;  %v559_v2 = vsub.f32 %v6150_v35, %v7702_v56  ;;  %v1066_v53 = vmul.f32 %v6019_v41, %v810_v36  ;;  %v812_v3 = vand.u32 2147483647, %v556_v44 }
 0x156   : > { %v2237_v31 = vrot.slane %v1297_v17, %v5972_v30  ;;  %v2232_v59 = vrot.slane %v1295_v6, %v5975_v39  ;;  %v6233_v17 = vrot.slane %v6219_v15, %v7700_v37  ;;  %v1069_v44 = vmul.f32 %v7693_v25, %v813_v22  ;;  %v7705_v22 = vld [vmem:[#allocation23_spill] sm:$0xff] }
 0x157   : > { %v815_v36 = vand.u32 2147483647, %v559_v2 }
 0x158   : > { %v2233_v23 = vsel %vm2072_vm13, %v2232_v59, %v2228_v34  ;;  %1440 = vadd.xlane.f32.xlu1 %v1065_v19  ;;  %1438 = vadd.xlane.f32.xlu0 %v1064_v7  ;;  %7704 = vst [vmem:[#allocation18_spill] sm:$0xff] %v6233_v17  ;;  %v561_v7 = vsub.f32 %v6150_v35, %v7692_v57  ;;  %v814_v34 = vand.u32 2147483647, %v558_v38 }
 0x159   : > { %v2238_v20 = vsel %vm2079_vm14, %v2237_v31, %v2233_v23  ;;  %v1301_v29 = vpop.xlane.xlu1 %1300  ;;  %v1299_v6 = vpop.xlane.xlu0 %1298  ;;  %v560_v23 = vsub.f32 %v6150_v35, %v6039_v10  ;;  %v6251_v59 = vrot.slane %v6233_v17, %v5110_v12  ;;  %v1071_v38 = vmul.f32 %v7694_v51, %v815_v36 }
 0x15a   : > { %v6238_v56 = vsel %vm7490_vm15, %v2238_v20, %v6141_v50  ;;  %v2246_v24 = vrot.slane %v1301_v29, %v5804_v60  ;;  %v2242_v19 = vrot.slane %v1299_v6, %v7691_v11  ;;  %v1068_v50 = vmul.f32 %v6045_v61, %v812_v3 }
 0x15b   : > { %v1070_v35 = vmul.f32 %v6060_v28, %v814_v34  ;;  %v817_v10 = vand.u32 2147483647, %v561_v7  ;;  %vm7497_vm15 = vcmask 1043459  }
 0x15c   : > { %v2247_v31 = vsel %vm1981_vm0, %v2246_v24, %v2242_v19  ;;  %1444 = vadd.xlane.f32.xlu1 %v1067_v52  ;;  %1442 = vadd.xlane.f32.xlu0 %v1066_v53  ;;  %v816_v24 = vand.u32 2147483647, %v560_v23  ;;  %v7706_v53 = vld [vmem:[#allocation29_spill] sm:$0xff]  ;;  %v7707_v19 = vld [vmem:[#allocation36_spill] sm:$0xff] }
 0x15d   : > { %v1305_v20 = vpop.xlane.xlu1 %1304  ;;  %v1303_v29 = vpop.xlane.xlu0 %1302  ;;  %v563_v3 = vsub.f32 %v6251_v59, %v7706_v53  ;;  %v562_v17 = vsub.f32 %v6251_v59, %v7707_v19  ;;  %v1073_v7 = vmul.f32 %v7696_v9, %v817_v10  ;;  %v7709_v53 = vld [vmem:[#allocation41_spill] sm:$0xff] }
 0x15e   : > { %v2256_v6 = vrot.slane %v1305_v20, %v5801_v1  ;;  %v2251_v2 = vrot.slane %v1303_v29, %v7705_v22  ;;  %v1072_v23 = vmul.f32 %v7697_v27, %v816_v24 }
 0x15f   : > { %v818_v19 = vand.u32 2147483647, %v562_v17 }
 0x160   : > { %v2252_v52 = vsel %vm1988_vm1, %v2251_v2, %v2247_v31  ;;  %1448 = vadd.xlane.f32.xlu1 %v1069_v44  ;;  %1446 = vadd.xlane.f32.xlu0 %v1068_v50  ;;  %v7708_v44 = vld [vmem:[#allocation37_spill] sm:$0xff]  ;;  %v819_v2 = vand.u32 2147483647, %v563_v3 }
 0x161   : > { %v1309_v12 = vpop.xlane.xlu1 %1308  ;;  %v2257_v20 = vsel %vm1995_vm2, %v2256_v6, %v2252_v52  ;;  %v1307_v29 = vpop.xlane.xlu0 %1306  ;;  %v565_v31 = vsub.f32 %v6251_v59, %v7708_v44  ;;  %v564_v6 = vsub.f32 %v6251_v59, %v7709_v53  ;;  %v567_v44 = vsub.f32 %v6251_v59, %v5886_v0 }
 0x162   : > { %v2266_v36 = vrot.slane %v1309_v12, %v5807_v16  ;;  %v2261_v34 = vrot.slane %v1307_v29, %v7695_v4  ;;  %v1074_v3 = vmul.f32 %v5901_v62, %v818_v19 }
 0x163   : > { %v821_v27 = vand.u32 2147483647, %v565_v31 }
 0x164   : > { %v2262_v50 = vsel %vm2002_vm3, %v2261_v34, %v2257_v20  ;;  %1452 = vadd.xlane.f32.xlu1 %v1071_v38  ;;  %1450 = vadd.xlane.f32.xlu0 %v1070_v35  ;;  %v7710_v20 = vld [vmem:[#allocation20_spill] sm:$0xff]  ;;  %v1075_v35 = vmul.f32 %v5897_v33, %v819_v2 }
 0x165   : > { %v1313_v52 = vpop.xlane.xlu1 %1312  ;;  %v2267_v12 = vsel %vm2009_vm4, %v2266_v36, %v2262_v50  ;;  %v1311_v29 = vpop.xlane.xlu0 %1310  ;;  %v566_v38 = vsub.f32 %v6251_v59, %v7710_v20  ;;  %v820_v36 = vand.u32 2147483647, %v564_v6  ;;  %v1077_v0 = vmul.f32 %v5916_v42, %v821_v27 }
 0x166   : > { %v2276_v10 = vrot.slane %v1313_v52, %v5847_v13  ;;  %v2271_v24 = vrot.slane %v1311_v29, %v5850_v5  ;;  %v823_v20 = vand.u32 2147483647, %v567_v44  ;;  %v568_v6 = vsub.f32 %v6251_v59, %v5930_v55 }
 0x167   : > { %v1076_v19 = vmul.f32 %v5926_v26, %v820_v36  ;;  %v822_v2 = vand.u32 2147483647, %v566_v38 }
 0x168   : > { %v2272_v17 = vsel %vm2016_vm5, %v2271_v24, %v2267_v12  ;;  %1456 = vadd.xlane.f32.xlu1 %v1073_v7  ;;  %1454 = vadd.xlane.f32.xlu0 %v1072_v23  ;;  %v569_v7 = vsub.f32 %v6251_v59, %v5920_v32  ;;  %v824_v36 = vand.u32 2147483647, %v568_v6 }
 0x169   : > { %v1317_v34 = vpop.xlane.xlu1 %1316  ;;  %v2277_v50 = vsel %vm2023_vm6, %v2276_v10, %v2272_v17  ;;  %v1315_v52 = vpop.xlane.xlu0 %1314  ;;  %v1079_v17 = vmul.f32 %v5948_v45, %v823_v20  ;;  %v1078_v38 = vmul.f32 %v5960_v8, %v822_v2 }
 0x16a   : > { %v2286_v31 = vrot.slane %v1317_v34, %v5872_v54  ;;  %v2281_v29 = vrot.slane %v1315_v52, %v5880_v48  ;;  %v825_v34 = vand.u32 2147483647, %v569_v7 }
 0x16c   : > { %v2282_v23 = vsel %vm2030_vm7, %v2281_v29, %v2277_v50  ;;  %1460 = vadd.xlane.f32.xlu1 %v1075_v35  ;;  %1458 = vadd.xlane.f32.xlu0 %v1074_v3  ;;  %v571_v35 = vsub.f32 %v6251_v59, %v5954_v49  ;;  %v570_v50 = vsub.f32 %v6251_v59, %v5964_v47 }
 0x16d   : > { %v1321_v12 = vpop.xlane.xlu1 %1320  ;;  %v2287_v10 = vsel %vm2037_vm8, %v2286_v31, %v2282_v23  ;;  %v1319_v24 = vpop.xlane.xlu0 %1318  ;;  %v573_v23 = vsub.f32 %v6251_v59, %v5982_v46 }
 0x16e   : > { %v2296_v27 = vrot.slane %v1321_v12, %v5906_v43  ;;  %v2291_v44 = vrot.slane %v1319_v24, %v5912_v18  ;;  %v7711_v12 = vld [vmem:[#allocation25_spill] sm:$0xff]  ;;  %v826_v24 = vand.u32 2147483647, %v570_v50 }
 0x16f   : > { %v572_v2 = vsub.f32 %v6251_v59, %v7711_v12 }
 0x170   : > { %v2292_v3 = vsel %vm7552_vm9, %v2291_v44, %v2287_v10  ;;  %1464 = vadd.xlane.f32.xlu1 %v1077_v0  ;;  %1462 = vadd.xlane.f32.xlu0 %v1076_v19  ;;  %v1081_v0 = vmul.f32 %v5978_v40, %v825_v34  ;;  %v827_v19 = vand.u32 2147483647, %v571_v35  ;;  %v1080_v10 = vmul.f32 %v5988_v21, %v824_v36 }
 0x171   : > { %v1325_v52 = vpop.xlane.xlu1 %1324  ;;  %v2297_v31 = vsel %vm2051_vm10, %v2296_v27, %v2292_v3  ;;  %v1323_v29 = vpop.xlane.xlu0 %1322  ;;  %v320_v27 = vcombine.high %v6219_v15, %v6219_v15  ;;  %v1082_v50 = vmul.f32 %v6019_v41, %v826_v24 }
 0x172   : > { %v2306_v20 = vrot.slane %v1325_v52, %v5936_v63  ;;  %v2301_v7 = vrot.slane %v1323_v29, %v5944_v14  ;;  %v829_v29 = vand.u32 2147483647, %v573_v23  ;;  %v1083_v40 = vmul.f32 %v7701_v58, %v827_v19 }
 0x174   : > { %v2302_v6 = vsel %vm2058_vm11, %v2301_v7, %v2297_v31  ;;  %1468 = vadd.xlane.f32.xlu1 %v1079_v17  ;;  %1466 = vadd.xlane.f32.xlu0 %v1078_v38  ;;  %v7712_v31 = vld [vmem:[#allocation16_spill] sm:$0xff]  ;;  %v7713_v38 = vld [vmem:[#allocation33_spill] sm:$0xff]  ;;  %v6325_v7 = vrot.slane %v320_v27, %v7700_v37 }
 0x175   : > { %v1329_v44 = vpop.xlane.xlu1 %1328  ;;  %v2307_v3 = vsel %vm2065_vm12, %v2306_v20, %v2302_v6  ;;  %v1327_v52 = vpop.xlane.xlu0 %1326  ;;  %v575_v17 = vsub.f32 %v6251_v59, %v7712_v31  ;;  %v574_v36 = vsub.f32 %v6251_v59, %v7713_v38  ;;  %v828_v20 = vand.u32 2147483647, %v572_v2  ;;  %v7715_v27 = vld [vmem:[#allocation24_spill] sm:$0xff] }
 0x176   : > { %v2316_v34 = vrot.slane %v1329_v44, %v5972_v30  ;;  %v2311_v35 = vrot.slane %v1327_v52, %v5975_v39  ;;  %7714 = vst [vmem:[#allocation38_spill] sm:$0xff] %v6325_v7  ;;  %v1085_v38 = vmul.f32 %v7693_v25, %v829_v29  ;;  %v577_v2 = vsub.f32 %v6251_v59, %v7692_v57 }
 0x177   : > { %v830_v24 = vand.u32 2147483647, %v574_v36 }
 0x178   : > { %v2312_v15 = vsel %vm2072_vm13, %v2311_v35, %v2307_v3  ;;  %1472 = vadd.xlane.f32.xlu1 %v1081_v0  ;;  %1470 = vadd.xlane.f32.xlu0 %v1080_v10  ;;  %v831_v10 = vand.u32 2147483647, %v575_v17  ;;  %v576_v3 = vsub.f32 %v6251_v59, %v7715_v27  ;;  %v1084_v35 = vmul.f32 %v6045_v61, %v828_v20  ;;  %v7717_v20 = vld [vmem:[#allocation29_spill] sm:$0xff] }
 0x179   : > { %v2317_v23 = vsel %vm2079_vm14, %v2316_v34, %v2312_v15  ;;  %v1333_v19 = vpop.xlane.xlu1 %1332  ;;  %v1331_v6 = vpop.xlane.xlu0 %1330  ;;  %v7716_v15 = vld [vmem:[#allocation14_spill] sm:$0xff]  ;;  %v1086_v59 = vmul.f32 %v6060_v28, %v830_v24 }
 0x17a   : > { %v2325_v44 = vrot.slane %v1333_v19, %v5804_v60  ;;  %v2321_v52 = vrot.slane %v1331_v6, %v7691_v11  ;;  %v6333_v0 = vsel %vm7497_vm15, %v2317_v23, %v6238_v56  ;;  %v6343_v29 = vrot.slane %v6325_v7, %v7716_v15 }
 0x17b   : > { %v1087_v19 = vmul.f32 %v7694_v51, %v831_v10  ;;  %v833_v6 = vand.u32 2147483647, %v577_v2  ;;  %vm7498_vm15 = vcmask 1044484  }
 0x17c   : > { %v2326_v34 = vsel %vm1981_vm0, %v2325_v44, %v2321_v52  ;;  %1476 = vadd.xlane.f32.xlu1 %v1083_v40  ;;  %1474 = vadd.xlane.f32.xlu0 %v1082_v50  ;;  %v832_v50 = vand.u32 2147483647, %v576_v3  ;;  %v579_v44 = vsub.f32 %v6343_v29, %v7717_v20  ;;  %v7718_v52 = vld [vmem:[#allocation36_spill] sm:$0xff]  ;;  %v580_v3 = vsub.f32 %v6343_v29, %v7709_v53 }
 0x17d   : > { %v1337_v56 = vpop.xlane.xlu1 %1336  ;;  %v1335_v23 = vpop.xlane.xlu0 %1334  ;;  %v578_v37 = vsub.f32 %v6343_v29, %v7718_v52  ;;  %v1089_v2 = vmul.f32 %v7696_v9, %v833_v6 }
 0x17e   : > { %v2335_v17 = vrot.slane %v1337_v56, %v5801_v1  ;;  %v2330_v36 = vrot.slane %v1335_v23, %v7705_v22 }
 0x180   : > { %v2331_v40 = vsel %vm1988_vm1, %v2330_v36, %v2326_v34  ;;  %1480 = vadd.xlane.f32.xlu1 %v1085_v38  ;;  %1478 = vadd.xlane.f32.xlu0 %v1084_v35  ;;  %v7719_v34 = vld [vmem:[#allocation37_spill] sm:$0xff] }
 0x181   : > { %v1341_v7 = vpop.xlane.xlu1 %1340  ;;  %v2336_v56 = vsel %vm1995_vm2, %v2335_v17, %v2331_v40  ;;  %v1339_v23 = vpop.xlane.xlu0 %1338  ;;  %v581_v38 = vsub.f32 %v6343_v29, %v7719_v34  ;;  %v7720_v36 = vld [vmem:[#allocation17_spill] sm:$0xff]  ;;  %v835_v17 = vand.u32 2147483647, %v579_v44  ;;  %v834_v40 = vand.u32 2147483647, %v578_v37 }
 0x182   : > { %v2345_v10 = vrot.slane %v1341_v7, %v5807_v16  ;;  %v2340_v24 = vrot.slane %v1339_v23, %v7695_v4  ;;  %v1088_v20 = vmul.f32 %v7720_v36, %v832_v50  ;;  %v836_v4 = vand.u32 2147483647, %v580_v3  ;;  %v7721_v16 = vld [vmem:[#allocation13_spill] sm:$0xff] }
 0x183   : > { %v837_v34 = vand.u32 2147483647, %v581_v38  ;;  %v583_v53 = vsub.f32 %v6343_v29, %v7721_v16  ;;  %v1091_v37 = vmul.f32 %v5897_v33, %v835_v17  ;;  %v1090_v50 = vmul.f32 %v5901_v62, %v834_v40 }
 0x184   : > { %v2341_v35 = vsel %vm2002_vm3, %v2340_v24, %v2336_v56  ;;  %1484 = vadd.xlane.f32.xlu1 %v1087_v19  ;;  %1482 = vadd.xlane.f32.xlu0 %v1086_v59  ;;  %v7722_v56 = vld [vmem:[#allocation20_spill] sm:$0xff]  ;;  %v585_v33 = vsub.f32 %v6343_v29, %v5920_v32  ;;  %v584_v62 = vsub.f32 %v6343_v29, %v5930_v55 }
 0x185   : > { %v1345_v52 = vpop.xlane.xlu1 %1344  ;;  %v2346_v7 = vsel %vm2009_vm4, %v2345_v10, %v2341_v35  ;;  %v1343_v23 = vpop.xlane.xlu0 %1342  ;;  %v582_v19 = vsub.f32 %v6343_v29, %v7722_v56  ;;  %v1093_v16 = vmul.f32 %v5916_v42, %v837_v34  ;;  %v1092_v35 = vmul.f32 %v5926_v26, %v836_v4 }
 0x186   : > { %v2355_v6 = vrot.slane %v1345_v52, %v5847_v13  ;;  %v2350_v9 = vrot.slane %v1343_v23, %v5850_v5  ;;  %v839_v52 = vand.u32 2147483647, %v583_v53  ;;  %v587_v4 = vsub.f32 %v6343_v29, %v5954_v49 }
 0x187   : > { %v841_v55 = vand.u32 2147483647, %v585_v33  ;;  %v586_v34 = vsub.f32 %v6343_v29, %v5964_v47  ;;  %v7723_v47 = vld [vmem:[#allocation43_spill] sm:$0xff]  ;;  %v7724_v33 = vld [vmem:[#allocation18_spill] sm:$0xff] }
 0x188   : > { %v2351_v59 = vsel %vm2016_vm5, %v2350_v9, %v2346_v7  ;;  %1488 = vadd.xlane.f32.xlu1 %v1089_v2  ;;  %1486 = vadd.xlane.f32.xlu0 %v1088_v20  ;;  %v838_v9 = vand.u32 2147483647, %v582_v19  ;;  %v1095_v7 = vmul.f32 %v5948_v45, %v839_v52  ;;  %v843_v45 = vand.u32 2147483647, %v587_v4 }
 0x189   : > { %v1349_v44 = vpop.xlane.xlu1 %1348  ;;  %v2356_v10 = vsel %vm2023_vm6, %v2355_v6, %v2351_v59  ;;  %v1347_v24 = vpop.xlane.xlu0 %1346  ;;  %v840_v6 = vand.u32 2147483647, %v584_v62 }
 0x18a   : > { %v2365_v38 = vrot.slane %v1349_v44, %v5872_v54  ;;  %v2360_v3 = vrot.slane %v1347_v24, %v5880_v48  ;;  %v1094_v23 = vmul.f32 %v5960_v8, %v838_v9  ;;  %v589_v8 = vsub.f32 %v6343_v29, %v5982_v46 }
 0x18b   : > { %v1097_v44 = vmul.f32 %v7723_v47, %v841_v55  ;;  %v842_v24 = vand.u32 2147483647, %v586_v34  ;;  %v1099_v52 = vmul.f32 %v7701_v58, %v843_v45 }
 0x18c   : > { %v2361_v2 = vsel %vm2030_vm7, %v2360_v3, %v2356_v10  ;;  %1492 = vadd.xlane.f32.xlu1 %v1091_v37  ;;  %1490 = vadd.xlane.f32.xlu0 %v1090_v50  ;;  %v588_v37 = vsub.f32 %v6343_v29, %v7711_v12  ;;  %v1096_v10 = vmul.f32 %v5988_v21, %v840_v6  ;;  %v845_v12 = vand.u32 2147483647, %v589_v8  ;;  %v6442_v8 = vld [vmem:[%s5082_s5] sm:$0xff] }
 0x18d   : > { %v1353_v20 = vpop.xlane.xlu1 %1352  ;;  %v2366_v17 = vsel %vm2037_vm8, %v2365_v38, %v2361_v2  ;;  %v1351_v40 = vpop.xlane.xlu0 %1350  ;;  %v591_v2 = vsub.f32 %v6343_v29, %v7712_v31  ;;  %v350_v21 = vcombine.high %v7724_v33, %v7724_v33 }
 0x18e   : > { %v2375_v42 = vrot.slane %v1353_v20, %v5906_v43  ;;  %v2370_v26 = vrot.slane %v1351_v40, %v5912_v18  ;;  %v844_v9 = vand.u32 2147483647, %v588_v37  ;;  %v1098_v20 = vmul.f32 %v6019_v41, %v842_v24 }
 0x18f   : > { %v6426_v55 = vrot.slane %v350_v21, %v7716_v15 }
 0x190   : > { %v2371_v32 = vsel %vm7552_vm9, %v2370_v26, %v2366_v17  ;;  %1496 = vadd.xlane.f32.xlu1 %v1093_v16  ;;  %1494 = vadd.xlane.f32.xlu0 %v1092_v35  ;;  %v7725_v17 = vld [vmem:[#allocation33_spill] sm:$0xff]  ;;  %v1100_v41 = vmul.f32 %v6045_v61, %v844_v9 }
 0x191   : > { %v1357_v53 = vpop.xlane.xlu1 %1356  ;;  %v2376_v56 = vsel %vm2051_vm10, %v2375_v42, %v2371_v32  ;;  %v1355_v19 = vpop.xlane.xlu0 %1354  ;;  %v590_v40 = vsub.f32 %v6343_v29, %v7725_v17  ;;  %v847_v32 = vand.u32 2147483647, %v591_v2  ;;  %v7729_v2 = vld [vmem:[#allocation30_spill] sm:$0xff] }
 0x192   : > { %v2385_v59 = vrot.slane %v1357_v53, %v5936_v63  ;;  %v2380_v49 = vrot.slane %v1355_v19, %v5944_v14  ;;  %v593_v53 = vsub.f32 %v6343_v29, %v7692_v57  ;;  %v594_v57 = vsub.f32 %v6426_v55, %v6442_v8 }
 0x193   : > { %v846_v34 = vand.u32 2147483647, %v590_v40 }
 0x194   : > { %v2381_v50 = vsel %vm2058_vm11, %v2380_v49, %v2376_v56  ;;  %1500 = vadd.xlane.f32.xlu1 %v1095_v7  ;;  %1498 = vadd.xlane.f32.xlu0 %v1094_v23  ;;  %v1101_v23 = vmul.f32 %v7693_v25, %v845_v12  ;;  %v6437_v49 = vld [vmem:[%s5082_s5 + $0x18] sm:$0xff]  ;;  %v849_v37 = vand.u32 2147483647, %v593_v53 }
 0x195   : > { %v1361_v38 = vpop.xlane.xlu1 %1360  ;;  %v2386_v3 = vsel %vm2065_vm12, %v2385_v59, %v2381_v50  ;;  %v1359_v16 = vpop.xlane.xlu0 %1358  ;;  %v1103_v59 = vmul.f32 %v7694_v51, %v847_v32  ;;  %v595_v45 = vsub.f32 %v6426_v55, %v6437_v49  ;;  %v6477_v32 = vld [vmem:[%s5082_s5 + $0x78] sm:$0xff] }
 0x196   : > { %v2395_v35 = vrot.slane %v1361_v38, %v5972_v30  ;;  %v2390_v46 = vrot.slane %v1359_v16, %v5975_v39  ;;  %v7727_v38 = vld [vmem:[#allocation32_spill] sm:$0xff]  ;;  %v1105_v33 = vmul.f32 %v7729_v2, %v849_v37  ;;  %7731 = vst [vmem:[#allocation22_spill] sm:$0xff] %v6477_v32  ;;  %v6512_v2 = vld [vmem:[%s5082_s5 + $0xd8] sm:$0xff] }
 0x197   : > { %v851_v16 = vand.u32 2147483647, %v595_v45  ;;  %7736 = vst [vmem:[#allocation23_spill] sm:$0xff] %v6512_v2 }
 0x198   : > { %v2391_v62 = vsel %vm2072_vm13, %v2390_v46, %v2386_v3  ;;  %1504 = vadd.xlane.f32.xlu1 %v1097_v44  ;;  %1502 = vadd.xlane.f32.xlu0 %v1096_v10  ;;  %v7726_v10 = vld [vmem:[#allocation31_spill] sm:$0xff]  ;;  %v6452_v46 = vld [vmem:[%s5082_s5 + $0x48] sm:$0xff] }
 0x199   : > { %v2396_v58 = vsel %vm2079_vm14, %v2395_v35, %v2391_v62  ;;  %v1365_v42 = vpop.xlane.xlu1 %1364  ;;  %v1363_v26 = vpop.xlane.xlu0 %1362  ;;  %v850_v35 = vand.u32 2147483647, %v594_v57  ;;  %7728 = vst [vmem:[#allocation44_spill] sm:$0xff] %v6452_v46  ;;  %v6494_v57 = vld [vmem:[%s5082_s5 + $0x38] sm:$0xff] }
 0x19a   : > { %v2404_v4 = vrot.slane %v1365_v42, %v5804_v60  ;;  %v2400_v31 = vrot.slane %v1363_v26, %v7691_v11  ;;  %v6421_v7 = vsel %vm7498_vm15, %v2396_v58, %v6333_v0  ;;  %v592_v0 = vsub.f32 %v6343_v29, %v7715_v27  ;;  %v6468_v42 = vld [vmem:[%s5082_s5 + $0x20] sm:$0xff] }
 0x19b   : > { %v1102_v29 = vmul.f32 %v6060_v28, %v846_v34  ;;  %v6457_v28 = vld [vmem:[%s5082_s5 + $0x30] sm:$0xff]  ;;  %v1107_v26 = vmul.f32 %v6468_v42, %v851_v16  ;;  %v6482_v34 = vld [vmem:[%s5082_s5 + $0x60] sm:$0xff]  ;;  %vm7551_vm15 = vcmask 1045509  }
 0x19c   : > { %v2405_v6 = vsel %vm1981_vm0, %v2404_v4, %v2400_v31  ;;  %1508 = vadd.xlane.f32.xlu1 %v1099_v52  ;;  %1506 = vadd.xlane.f32.xlu0 %v1098_v20  ;;  %v848_v51 = vand.u32 2147483647, %v592_v0  ;;  %v597_v52 = vsub.f32 %v6426_v55, %v6452_v46  ;;  %v596_v12 = vsub.f32 %v6426_v55, %v6457_v28  ;;  %v6472_v4 = vld [vmem:[%s5082_s5 + $0x8] sm:$0xff] }
 0x19d   : > { %v1369_v56 = vpop.xlane.xlu1 %1368  ;;  %v1367_v25 = vpop.xlane.xlu0 %1366  ;;  %7730 = vst [vmem:[#allocation45_spill] sm:$0xff] %v6472_v4  ;;  %v1106_v31 = vmul.f32 %v6472_v4, %v850_v35  ;;  %7732 = vst [vmem:[#allocation19_spill] sm:$0xff] %v6482_v34  ;;  %v598_v53 = vsub.f32 %v6426_v55, %v6482_v34 }
 0x19e   : > { %v2414_v61 = vrot.slane %v1369_v56, %v5801_v1  ;;  %v2409_v19 = vrot.slane %v1367_v25, %v7705_v22  ;;  %v1104_v21 = vmul.f32 %v7720_v36, %v848_v51  ;;  %v852_v36 = vand.u32 2147483647, %v596_v12 }
 0x1a0   : > { %v2410_v27 = vsel %vm1988_vm1, %v2409_v19, %v2405_v6  ;;  %1512 = vadd.xlane.f32.xlu1 %v1101_v23  ;;  %1510 = vadd.xlane.f32.xlu0 %v1100_v41  ;;  %v853_v23 = vand.u32 2147483647, %v597_v52  ;;  %v599_v6 = vsub.f32 %v6426_v55, %v6477_v32 }
 0x1a1   : > { %v1373_v50 = vpop.xlane.xlu1 %1372  ;;  %v2415_v47 = vsel %vm1995_vm2, %v2414_v61, %v2410_v27  ;;  %v1371_v44 = vpop.xlane.xlu0 %1370  ;;  %v1108_v27 = vmul.f32 %v6494_v57, %v852_v36 }
 0x1a2   : > { %v2424_v24 = vrot.slane %v1373_v50, %v7726_v10  ;;  %v2419_v3 = vrot.slane %v1371_v44, %v7727_v38  ;;  %v855_v50 = vand.u32 2147483647, %v599_v6  ;;  %v6504_v44 = vld [vmem:[%s5082_s5 + $0x90] sm:$0xff] }
 0x1a3   : > { %7735 = vst [vmem:[#allocation35_spill] sm:$0xff] %v6504_v44 }
 0x1a4   : > { %v2420_v9 = vsel %vm2002_vm3, %v2419_v3, %v2415_v47  ;;  %1516 = vadd.xlane.f32.xlu1 %v1103_v59  ;;  %1514 = vadd.xlane.f32.xlu0 %v1102_v29  ;;  %v6490_v59 = vld [vmem:[%s5082_s5 + $0x50] sm:$0xff]  ;;  %v6498_v29 = vld [vmem:[%s5082_s5 + $0xa8] sm:$0xff]  ;;  %v854_v47 = vand.u32 2147483647, %v598_v53 }
 0x1a5   : > { %v1377_v62 = vpop.xlane.xlu1 %1376  ;;  %v2425_v20 = vsel %vm2009_vm4, %v2424_v24, %v2420_v9  ;;  %v1375_v17 = vpop.xlane.xlu0 %1374  ;;  %7733 = vst [vmem:[#allocation26_spill] sm:$0xff] %v6490_v59  ;;  %v1109_v45 = vmul.f32 %v6490_v59, %v853_v23  ;;  %7734 = vst [vmem:[#allocation11_spill] sm:$0xff] %v6498_v29  ;;  %v601_v37 = vsub.f32 %v6426_v55, %v6498_v29 }
 0x1a6   : > { %v2434_v40 = vrot.slane %v1377_v62, %v5847_v13  ;;  %v2429_v58 = vrot.slane %v1375_v17, %v5850_v5  ;;  %v600_v24 = vsub.f32 %v6426_v55, %v6504_v44  ;;  %v6523_v17 = vld [vmem:[%s5082_s5 + $0x80] sm:$0xff] }
 0x1a7   : > { %v857_v9 = vand.u32 2147483647, %v601_v37  ;;  %7738 = vst [vmem:[#allocation25_spill] sm:$0xff] %v6523_v17  ;;  %v6544_v37 = vld [vmem:[%s5082_s5 + $0x98] sm:$0xff] }
 0x1a8   : > { %v2430_v41 = vsel %vm2016_vm5, %v2429_v58, %v2425_v20  ;;  %1520 = vadd.xlane.f32.xlu1 %v1105_v33  ;;  %1518 = vadd.xlane.f32.xlu0 %v1104_v21  ;;  %v603_v33 = vsub.f32 %v6426_v55, %v6512_v2  ;;  %v6517_v21 = vld [vmem:[%s5082_s5 + $0xc0] sm:$0xff]  ;;  %v6527_v58 = vld [vmem:[%s5082_s5 + $0x68] sm:$0xff]  ;;  %7742 = vst [vmem:[#allocation29_spill] sm:$0xff] %v6544_v37 }
 0x1a9   : > { %v1381_v0 = vpop.xlane.xlu1 %1380  ;;  %v2435_v56 = vsel %vm2023_vm6, %v2434_v40, %v2430_v41  ;;  %v1379_v25 = vpop.xlane.xlu0 %1378  ;;  %7737 = vst [vmem:[#allocation41_spill] sm:$0xff] %v6517_v21  ;;  %v602_v62 = vsub.f32 %v6426_v55, %v6517_v21  ;;  %v1111_v40 = vmul.f32 %v6523_v17, %v855_v50  ;;  %7739 = vst [vmem:[#allocation16_spill] sm:$0xff] %v6527_v58  ;;  %v6548_v50 = vld [vmem:[%s5082_s5 + $0xf0] sm:$0xff] }
 0x1aa   : > { %v2444_v61 = vrot.slane %v1381_v0, %v5872_v54  ;;  %v2439_v19 = vrot.slane %v1379_v25, %v5880_v48  ;;  %v6534_v0 = vld [vmem:[%s5082_s5 + $0xb0] sm:$0xff]  ;;  %v859_v25 = vand.u32 2147483647, %v603_v33  ;;  %v6560_v33 = vld [vmem:[%s5082_s5 + $0xc8] sm:$0xff] }
 0x1ab   : > { %7740 = vst [vmem:[#allocation24_spill] sm:$0xff] %v6534_v0 }
 0x1ac   : > { %v2440_v51 = vsel %vm2030_vm7, %v2439_v19, %v2435_v56  ;;  %1524 = vadd.xlane.f32.xlu1 %v1107_v26  ;;  %1522 = vadd.xlane.f32.xlu0 %v1106_v31  ;;  %v1110_v26 = vmul.f32 %v6527_v58, %v854_v47  ;;  %v856_v31 = vand.u32 2147483647, %v600_v24  ;;  %v1113_v56 = vmul.f32 %v6534_v0, %v857_v9  ;;  %v6538_v19 = vld [vmem:[%s5082_s5 + $0x108] sm:$0xff] }
 0x1ad   : > { %v1385_v3 = vpop.xlane.xlu1 %1384  ;;  %v2445_v16 = vsel %vm2037_vm8, %v2444_v61, %v2440_v51  ;;  %v1383_v35 = vpop.xlane.xlu0 %1382  ;;  %v858_v61 = vand.u32 2147483647, %v602_v62  ;;  %7741 = vst [vmem:[#allocation14_spill] sm:$0xff] %v6538_v19  ;;  %v604_v47 = vsub.f32 %v6426_v55, %v6548_v50 }
 0x1ae   : > { %v2454_v52 = vrot.slane %v1385_v3, %v5906_v43  ;;  %v2449_v12 = vrot.slane %v1383_v35, %v5912_v18  ;;  %v1112_v51 = vmul.f32 %v6544_v37, %v856_v31 }
 0x1af   : > { %v1114_v62 = vmul.f32 %v6560_v33, %v858_v61 }
 0x1b0   : > { %v2450_v20 = vsel %vm7552_vm9, %v2449_v12, %v2445_v16  ;;  %1528 = vadd.xlane.f32.xlu1 %v1109_v45  ;;  %1526 = vadd.xlane.f32.xlu0 %v1108_v27  ;;  %v605_v45 = vsub.f32 %v6426_v55, %v6538_v19  ;;  %v6556_v12 = vld [vmem:[%s5082_s5 + $0xe0] sm:$0xff] }
 0x1b1   : > { %v1389_v23 = vpop.xlane.xlu1 %1388  ;;  %v2455_v36 = vsel %vm2051_vm10, %v2454_v52, %v2450_v20  ;;  %v1387_v41 = vpop.xlane.xlu0 %1386  ;;  %v1115_v9 = vmul.f32 %v6556_v12, %v859_v25 }
 0x1b2   : > { %v2464_v6 = vrot.slane %v1389_v23, %v5936_v63  ;;  %v2459_v53 = vrot.slane %v1387_v41, %v5944_v14  ;;  %v861_v20 = vand.u32 2147483647, %v605_v45  ;;  %v860_v23 = vand.u32 2147483647, %v604_v47  ;;  %v6590_v47 = vld [vmem:[%s5082_s5 + $0x168] sm:$0xff] }
 0x1b4   : > { %v2460_v27 = vsel %vm2058_vm11, %v2459_v53, %v2455_v36  ;;  %1532 = vadd.xlane.f32.xlu1 %v1111_v40  ;;  %1530 = vadd.xlane.f32.xlu0 %v1110_v26  ;;  %v7743_v40 = vld [vmem:[#allocation38_spill] sm:$0xff] }
 0x1b5   : > { %v1393_v24 = vpop.xlane.xlu1 %1392  ;;  %v2465_v3 = vsel %vm2065_vm12, %v2464_v6, %v2460_v27  ;;  %v1391_v16 = vpop.xlane.xlu0 %1390  ;;  %v352_v26 = vcombine.high %v7743_v40, %v7743_v40  ;;  %v6567_v36 = vld [vmem:[%s5082_s5 + $0x138] sm:$0xff]  ;;  %v6572_v6 = vld [vmem:[%s5082_s5 + $0x120] sm:$0xff]  ;;  %v6586_v27 = vld [vmem:[%s5082_s5 + $0x110] sm:$0xff] }
 0x1b6   : > { %v2474_v35 = vrot.slane %v1393_v24, %v5972_v30  ;;  %v2469_v52 = vrot.slane %v1391_v16, %v5975_v39  ;;  %7744 = vst [vmem:[#allocation36_spill] sm:$0xff] %v6567_v36  ;;  %v607_v41 = vsub.f32 %v6426_v55, %v6567_v36  ;;  %7745 = vst [vmem:[#allocation37_spill] sm:$0xff] %v6572_v6  ;;  %v6598_v16 = vld [vmem:[%s5082_s5 + $0xf8] sm:$0xff]  ;;  %v6602_v40 = vld [vmem:[%s5082_s5 + $0x150] sm:$0xff] }
 0x1b7   : > { %v606_v53 = vsub.f32 %v6426_v55, %v6572_v6  ;;  %v609_v24 = vsub.f32 %v6426_v55, %v6590_v47  ;;  %v6627_v39 = vld [vmem:[%s5082_s5 + $0x170] sm:$0xff] }
 0x1b8   : > { %v2470_v31 = vsel %vm2072_vm13, %v2469_v52, %v2465_v3  ;;  %1536 = vadd.xlane.f32.xlu1 %v1113_v56  ;;  %1534 = vadd.xlane.f32.xlu0 %v1112_v51  ;;  %v1117_v51 = vmul.f32 %v6586_v27, %v861_v20  ;;  %v6595_v3 = vrot.slane %v352_v26, %v7716_v15 }
 0x1b9   : > { %v6576_v25 = vpop.xlane.xlu1 %1396  ;;  %v6578_v61 = vpop.xlane.xlu0 %1394  ;;  %v2475_v56 = vsel %vm2079_vm14, %v2474_v35, %v2470_v31  ;;  %v863_v35 = vand.u32 2147483647, %v607_v41  ;;  %v862_v52 = vand.u32 2147483647, %v606_v53  ;;  %v608_v20 = vsub.f32 %v6426_v55, %v6602_v40  ;;  %v6617_v41 = vld [vmem:[%s5082_s5 + $0x128] sm:$0xff]  ;;  %7748 = vst [vmem:[#allocation20_spill] sm:$0xff] %v6627_v39 }
 0x1ba   : > { %v6583_v45 = vsel %vm7551_vm15, %v2475_v56, %v6421_v7  ;;  %v1116_v7 = vmul.f32 %v6598_v16, %v860_v23  ;;  %v865_v26 = vand.u32 2147483647, %v609_v24  ;;  %v612_v14 = vsub.f32 %v6595_v3, %v6457_v28 }
 0x1bb   : > { %7746 = vst [vmem:[#allocation17_spill] sm:$0xff] %v6583_v45  ;;  %v1118_v53 = vmul.f32 %v6617_v41, %v862_v52  ;;  %v864_v55 = vand.u32 2147483647, %v608_v20  ;;  %v610_v45 = vsub.f32 %v6595_v3, %v6442_v8  ;;  %v613_v20 = vsub.f32 %v6595_v3, %v6452_v46 }
 0x1bc   : > { %1540 = vadd.xlane.f32.xlu1 %v1115_v9  ;;  %1538 = vadd.xlane.f32.xlu0 %v1114_v62  ;;  %v611_v9 = vsub.f32 %v6595_v3, %v6437_v49  ;;  %v6613_v62 = vld [vmem:[%s5082_s5 + $0x140] sm:$0xff]  ;;  %vm3276_vm15 = vcmask 1046534  }
 0x1bd   : > { %v6606_v31 = vpop.xlane.xlu1 %1400  ;;  %v6608_v56 = vpop.xlane.xlu0 %1398  ;;  %7747 = vst [vmem:[#allocation13_spill] sm:$0xff] %v6613_v62  ;;  %v1119_v23 = vmul.f32 %v6613_v62, %v863_v35  ;;  %v6631_v35 = vld [vmem:[%s5082_s5 + $0x158] sm:$0xff]  ;;  %v866_v52 = vand.u32 2147483647, %v610_v45  ;;  %v869_v45 = vand.u32 2147483647, %v613_v20 }
 0x1be   : > { %7749 = vst [vmem:[#allocation43_spill] sm:$0xff] %v6631_v35  ;;  %v1120_v63 = vmul.f32 %v6631_v35, %v864_v55  ;;  %v614_v55 = vsub.f32 %v6595_v3, %v6482_v34 }
 0x1c0   : > { %1544 = vadd.xlane.f32.xlu1 %v1117_v51  ;;  %1542 = vadd.xlane.f32.xlu0 %v1116_v7  ;;  %v1121_v51 = vmul.f32 %v6627_v39, %v865_v26  ;;  %v867_v7 = vand.u32 2147483647, %v611_v9  ;;  %v615_v9 = vsub.f32 %v6595_v3, %v6477_v32 }
 0x1c1   : > { %v6622_v30 = vpop.xlane.xlu1 %1404  ;;  %v6624_v24 = vpop.xlane.xlu0 %1402 }
 0x1c2   : > { %v1123_v26 = vmul.f32 %v6468_v42, %v867_v7  ;;  %v871_v39 = vand.u32 2147483647, %v615_v9  ;;  %v617_v7 = vsub.f32 %v6595_v3, %v6498_v29 }
 0x1c4   : > { %1548 = vadd.xlane.f32.xlu1 %v1119_v23  ;;  %1546 = vadd.xlane.f32.xlu0 %v1118_v53  ;;  %v1122_v23 = vmul.f32 %v6472_v4, %v866_v52  ;;  %v868_v53 = vand.u32 2147483647, %v612_v14  ;;  %v870_v52 = vand.u32 2147483647, %v614_v55  ;;  %v616_v14 = vsub.f32 %v6595_v3, %v6504_v44  ;;  %v7751_v4 = vld [vmem:[#allocation34_spill] sm:$0xff] }
 0x1c5   : > { %v6638_v43 = vpop.xlane.xlu1 %1408  ;;  %v6640_v18 = vpop.xlane.xlu0 %1406  ;;  %v305_v9 = vcombine.high %v7751_v4, %v7751_v4  ;;  %v1127_v32 = vmul.f32 %v6523_v17, %v871_v39  ;;  %v873_v29 = vand.u32 2147483647, %v617_v7  ;;  %v621_v39 = vsub.f32 %v6595_v3, %v6538_v19 }
 0x1c7   : > { %v1129_v7 = vmul.f32 %v6534_v0, %v873_v29  ;;  %v2479_v29 = vrot.slane %v6578_v61, %v7691_v11 }
 0x1c8   : > { %1552 = vadd.xlane.f32.xlu1 %v1121_v51  ;;  %1550 = vadd.xlane.f32.xlu0 %v1120_v63  ;;  %v1125_v51 = vmul.f32 %v6490_v59, %v869_v45  ;;  %v1124_v63 = vmul.f32 %v6494_v57, %v868_v53  ;;  %v619_v45 = vsub.f32 %v6595_v3, %v6512_v2 }
 0x1c9   : > { %v6648_v54 = vpop.xlane.xlu1 %1412  ;;  %v6650_v35 = vpop.xlane.xlu0 %1410  ;;  %v618_v53 = vsub.f32 %v6595_v3, %v6517_v21 }
 0x1cc   : > { %1556 = vadd.xlane.f32.xlu1 %v1123_v26  ;;  %1554 = vadd.xlane.f32.xlu0 %v1122_v23  ;;  %v1126_v26 = vmul.f32 %v6527_v58, %v870_v52  ;;  %v872_v23 = vand.u32 2147483647, %v616_v14  ;;  %v874_v52 = vand.u32 2147483647, %v618_v53  ;;  %v620_v14 = vsub.f32 %v6595_v3, %v6548_v50 }
 0x1cd   : > { %v6658_v20 = vpop.xlane.xlu1 %1416  ;;  %v6660_v34 = vpop.xlane.xlu0 %1414 }
 0x1ce   : > { %7750 = vst [vmem:[#allocation18_spill] sm:$0xff] %v6658_v20  ;;  %v7752_v20 = vld [vmem:[#allocation12_spill] sm:$0xff] }
 0x1cf   : > { %v6675_v4 = vrot.slane %v305_v9, %v7752_v20  ;;  %v623_v9 = vsub.f32 %v6595_v3, %v6567_v36  ;;  %v1130_v36 = vmul.f32 %v6560_v33, %v874_v52 }
 0x1d0   : > { %1560 = vadd.xlane.f32.xlu1 %v1125_v51  ;;  %1558 = vadd.xlane.f32.xlu0 %v1124_v63  ;;  %v1128_v51 = vmul.f32 %v6544_v37, %v872_v23  ;;  %v875_v63 = vand.u32 2147483647, %v619_v45  ;;  %v622_v23 = vsub.f32 %v6595_v3, %v6572_v6  ;;  %v2488_v45 = vrot.slane %v6608_v56, %v7705_v22 }
 0x1d1   : > { %v6670_v55 = vpop.xlane.xlu1 %1420  ;;  %v6672_v44 = vpop.xlane.xlu0 %1418  ;;  %v6691_v19 = vrot.slane %v6675_v4, %v7752_v20  ;;  %v876_v20 = vand.u32 2147483647, %v620_v14  ;;  %v2493_v6 = vrot.slane %v6606_v31, %v5801_v1  ;;  %v624_v31 = vsub.f32 %v6595_v3, %v6602_v40 }
 0x1d2   : > { %v1131_v53 = vmul.f32 %v6556_v12, %v875_v63  ;;  %v2498_v63 = vrot.slane %v6624_v24, %v7727_v38 }
 0x1d3   : > { %v6705_v61 = vrot.slane %v6691_v19, %v7716_v15 }
 0x1d4   : > { %1564 = vadd.xlane.f32.xlu1 %v1127_v32  ;;  %1562 = vadd.xlane.f32.xlu0 %v1126_v26  ;;  %v2483_v32 = vrot.slane %v6576_v25, %v5804_v60  ;;  %v877_v26 = vand.u32 2147483647, %v621_v39  ;;  %v879_v25 = vand.u32 2147483647, %v623_v9  ;;  %v1132_v9 = vmul.f32 %v6598_v16, %v876_v20 }
 0x1d5   : > { %v6683_v58 = vpop.xlane.xlu1 %1424  ;;  %v6685_v17 = vpop.xlane.xlu0 %1422  ;;  %v627_v24 = vsub.f32 %v6705_v61, %v6437_v49 }
 0x1d6   : > { %v2484_v39 = vsel %vm1981_vm0, %v2483_v32, %v2479_v29  ;;  %v1133_v56 = vmul.f32 %v6586_v27, %v877_v26  ;;  %v625_v32 = vsub.f32 %v6595_v3, %v6590_v47  ;;  %v2508_v3 = vrot.slane %v6640_v18, %v5850_v5 }
 0x1d7   : > { %v628_v18 = vsub.f32 %v6705_v61, %v6457_v28 }
 0x1d8   : > { %1568 = vadd.xlane.f32.xlu1 %v1129_v7  ;;  %1566 = vadd.xlane.f32.xlu0 %v1128_v51  ;;  %v878_v7 = vand.u32 2147483647, %v622_v23  ;;  %v2489_v51 = vsel %vm1988_vm1, %v2488_v45, %v2484_v39  ;;  %v1135_v23 = vmul.f32 %v6613_v62, %v879_v25  ;;  %v880_v62 = vand.u32 2147483647, %v624_v31 }
 0x1d9   : > { %v1429_v37 = vpop.xlane.xlu1 %1428  ;;  %v1427_v0 = vpop.xlane.xlu0 %1426 }
 0x1da   : > { %v2562_v52 = vrot.slane %v1429_v37, %v5804_v60  ;;  %v2558_v14 = vrot.slane %v1427_v0, %v7691_v11  ;;  %v2503_v0 = vrot.slane %v6622_v30, %v7726_v10  ;;  %v2494_v37 = vsel %vm1995_vm2, %v2493_v6, %v2489_v51 }
 0x1db   : > { %v1134_v20 = vmul.f32 %v6617_v41, %v878_v7  ;;  %v2499_v45 = vsel %vm2002_vm3, %v2498_v63, %v2494_v37  ;;  %v881_v30 = vand.u32 2147483647, %v625_v32  ;;  %v626_v6 = vsub.f32 %v6705_v61, %v6442_v8  ;;  %v7753_v37 = vld [vmem:[#allocation20_spill] sm:$0xff] }
 0x1dc   : > { %1572 = vadd.xlane.f32.xlu1 %v1131_v53  ;;  %1570 = vadd.xlane.f32.xlu0 %v1130_v36  ;;  %v2563_v53 = vsel %vm1981_vm0, %v2562_v52, %v2558_v14  ;;  %v629_v63 = vsub.f32 %v6705_v61, %v6452_v46  ;;  %v2513_v52 = vrot.slane %v6638_v43, %v5847_v13  ;;  %v7754_v43 = vld [vmem:[#allocation43_spill] sm:$0xff]  ;;  %v884_v46 = vand.u32 2147483647, %v628_v18 }
 0x1dd   : > { %v1433_v29 = vpop.xlane.xlu1 %1432  ;;  %v1431_v26 = vpop.xlane.xlu0 %1430  ;;  %v2518_v32 = vrot.slane %v6650_v35, %v5880_v48  ;;  %v7755_v35 = vld [vmem:[#allocation42_spill] sm:$0xff] }
 0x1de   : > { %v2567_v36 = vrot.slane %v1431_v26, %v7705_v22  ;;  %v2572_v25 = vrot.slane %v1433_v29, %v5801_v1  ;;  %v883_v26 = vand.u32 2147483647, %v627_v24 }
 0x1e0   : > { %v2568_v39 = vsel %vm1988_vm1, %v2567_v36, %v2563_v53  ;;  %1576 = vadd.xlane.f32.xlu1 %v1133_v56  ;;  %1574 = vadd.xlane.f32.xlu0 %v1132_v9  ;;  %v2504_v56 = vsel %vm2009_vm4, %v2503_v0, %v2499_v45  ;;  %v1137_v36 = vmul.f32 %v7753_v37, %v881_v30  ;;  %v882_v0 = vand.u32 2147483647, %v626_v6 }
 0x1e1   : > { %v1437_v51 = vpop.xlane.xlu1 %1436  ;;  %v1435_v7 = vpop.xlane.xlu0 %1434  ;;  %v2509_v9 = vsel %vm2016_vm5, %v2508_v3, %v2504_v56  ;;  %v2573_v29 = vsel %vm1995_vm2, %v2572_v25, %v2568_v39  ;;  %v1136_v53 = vmul.f32 %v7754_v43, %v880_v62  ;;  %v1139_v3 = vmul.f32 %v6468_v42, %v883_v26  ;;  %v7757_v62 = vld [vmem:[#allocation27_spill] sm:$0xff] }
 0x1e2   : > { %v2577_v14 = vrot.slane %v1435_v7, %v7727_v38  ;;  %v2582_v31 = vrot.slane %v1437_v51, %v7726_v10  ;;  %v885_v56 = vand.u32 2147483647, %v629_v63  ;;  %v2523_v51 = vrot.slane %v6648_v54, %v7755_v35  ;;  %v7758_v54 = vld [vmem:[#allocation45_spill] sm:$0xff] }
 0x1e3   : > { %v2514_v25 = vsel %vm2023_vm6, %v2513_v52, %v2509_v9  ;;  %v2528_v6 = vrot.slane %v6660_v34, %v7757_v62  ;;  %v1138_v18 = vmul.f32 %v7758_v54, %v882_v0  ;;  %v7759_v52 = vld [vmem:[#allocation19_spill] sm:$0xff]  ;;  %v7760_v34 = vld [vmem:[#allocation21_spill] sm:$0xff] }
 0x1e4   : > { %v2578_v24 = vsel %vm2002_vm3, %v2577_v14, %v2573_v29  ;;  %1580 = vadd.xlane.f32.xlu1 %v1135_v23  ;;  %1578 = vadd.xlane.f32.xlu0 %v1134_v20  ;;  %v7756_v23 = vld [vmem:[#allocation22_spill] sm:$0xff]  ;;  %v2519_v30 = vsel %vm2030_vm7, %v2518_v32, %v2514_v25  ;;  %v630_v9 = vsub.f32 %v6705_v61, %v7759_v52  ;;  %v7762_v0 = vld [vmem:[#allocation39_spill] sm:$0xff] }
 0x1e5   : > { %v1441_v45 = vpop.xlane.xlu1 %1440  ;;  %v1439_v7 = vpop.xlane.xlu0 %1438  ;;  %v631_v20 = vsub.f32 %v6705_v61, %v7756_v23  ;;  %v2583_v26 = vsel %vm2009_vm4, %v2582_v31, %v2578_v24  ;;  %v1141_v32 = vmul.f32 %v6490_v59, %v885_v56  ;;  %v1140_v25 = vmul.f32 %v6494_v57, %v884_v46  ;;  %v7761_v23 = vld [vmem:[#allocation18_spill] sm:$0xff] }
 0x1e6   : > { %v2587_v39 = vrot.slane %v1439_v7, %v5850_v5  ;;  %v2592_v14 = vrot.slane %v1441_v45, %v5847_v13  ;;  %v2533_v45 = vrot.slane %v7761_v23, %v7760_v34  ;;  %v2524_v31 = vsel %vm2037_vm8, %v2523_v51, %v2519_v30  ;;  %v7763_v23 = vld [vmem:[#allocation11_spill] sm:$0xff] }
 0x1e7   : > { %v886_v46 = vand.u32 2147483647, %v630_v9  ;;  %v633_v51 = vsub.f32 %v6705_v61, %v7763_v23  ;;  %v7764_v30 = vld [vmem:[#allocation35_spill] sm:$0xff] }
 0x1e8   : > { %v2588_v63 = vsel %vm2016_vm5, %v2587_v39, %v2583_v26  ;;  %1584 = vadd.xlane.f32.xlu1 %v1137_v36  ;;  %1582 = vadd.xlane.f32.xlu0 %v1136_v53  ;;  %v887_v36 = vand.u32 2147483647, %v631_v20  ;;  %v2529_v53 = vsel %vm7552_vm9, %v2528_v6, %v2524_v31  ;;  %v2538_v39 = vrot.slane %v6672_v44, %v7762_v0 }
 0x1e9   : > { %v1445_v29 = vpop.xlane.xlu1 %1444  ;;  %v1443_v7 = vpop.xlane.xlu0 %1442  ;;  %v2593_v52 = vsel %vm2023_vm6, %v2592_v14, %v2588_v63  ;;  %v632_v20 = vsub.f32 %v6705_v61, %v7764_v30  ;;  %v635_v44 = vsub.f32 %v6705_v61, %v6512_v2  ;;  %v7765_v14 = vld [vmem:[#allocation28_spill] sm:$0xff] }
 0x1ea   : > { %v2597_v24 = vrot.slane %v1443_v7, %v5880_v48  ;;  %v2602_v26 = vrot.slane %v1445_v29, %v7755_v35  ;;  %v634_v29 = vsub.f32 %v6705_v61, %v6517_v21  ;;  %v2543_v63 = vrot.slane %v6670_v55, %v7765_v14  ;;  %v7768_v55 = vld [vmem:[#allocation16_spill] sm:$0xff] }
 0x1eb   : > { %v1142_v59 = vmul.f32 %v7768_v55, %v886_v46 }
 0x1ec   : > { %v2598_v56 = vsel %vm2030_vm7, %v2597_v24, %v2593_v52  ;;  %1588 = vadd.xlane.f32.xlu1 %v1139_v3  ;;  %1586 = vadd.xlane.f32.xlu0 %v1138_v18  ;;  %v2534_v3 = vsel %vm2051_vm10, %v2533_v45, %v2529_v53  ;;  %v7766_v52 = vld [vmem:[#allocation25_spill] sm:$0xff]  ;;  %v7767_v24 = vld [vmem:[#allocation15_spill] sm:$0xff]  ;;  %v889_v45 = vand.u32 2147483647, %v633_v51  ;;  %v888_v53 = vand.u32 2147483647, %v632_v20 }
 0x1ed   : > { %v1449_v7 = vpop.xlane.xlu1 %1448  ;;  %v1447_v6 = vpop.xlane.xlu0 %1446  ;;  %v1143_v9 = vmul.f32 %v7766_v52, %v887_v36  ;;  %v2539_v31 = vsel %vm2058_vm11, %v2538_v39, %v2534_v3  ;;  %v2548_v23 = vrot.slane %v6685_v17, %v7767_v24  ;;  %v2603_v2 = vsel %vm2037_vm8, %v2602_v26, %v2598_v56  ;;  %v7769_v39 = vld [vmem:[#allocation14_spill] sm:$0xff]  ;;  %v7770_v17 = vld [vmem:[#allocation40_spill] sm:$0xff] }
 0x1ee   : > { %v2607_v18 = vrot.slane %v1447_v6, %v7757_v62  ;;  %v2612_v30 = vrot.slane %v1449_v7, %v7760_v34  ;;  %v891_v36 = vand.u32 2147483647, %v635_v44  ;;  %v890_v52 = vand.u32 2147483647, %v634_v29  ;;  %v7772_v29 = vld [vmem:[#allocation29_spill] sm:$0xff] }
 0x1ef   : > { %v637_v3 = vsub.f32 %v6705_v61, %v7769_v39  ;;  %v2553_v7 = vrot.slane %v6683_v58, %v7770_v17  ;;  %v2544_v26 = vsel %vm2065_vm12, %v2543_v63, %v2539_v31  ;;  %v321_v51 = vcombine.high %v6675_v4, %v6675_v4  ;;  %v7771_v58 = vld [vmem:[#allocation24_spill] sm:$0xff] }
 0x1f0   : > { %v2608_v21 = vsel %vm7552_vm9, %v2607_v18, %v2603_v2  ;;  %1592 = vadd.xlane.f32.xlu1 %v1141_v32  ;;  %1590 = vadd.xlane.f32.xlu0 %v1140_v25  ;;  %v636_v32 = vsub.f32 %v6705_v61, %v6548_v50  ;;  %v2549_v25 = vsel %vm2072_vm13, %v2548_v23, %v2544_v26  ;;  %vm7553_vm9 = vcmask 1047559  }
 0x1f1   : > { %v1453_v6 = vpop.xlane.xlu1 %1452  ;;  %v1451_v62 = vpop.xlane.xlu0 %1450  ;;  %v2613_v46 = vsel %vm2051_vm10, %v2612_v30, %v2608_v21  ;;  %v1145_v44 = vmul.f32 %v7771_v58, %v889_v45  ;;  %v893_v23 = vand.u32 2147483647, %v637_v3  ;;  %v2554_v30 = vsel %vm2079_vm14, %v2553_v7, %v2549_v25  ;;  %v7774_v7 = vld [vmem:[#allocation36_spill] sm:$0xff]  ;;  %v7775_v25 = vld [vmem:[#allocation37_spill] sm:$0xff] }
 0x1f2   : > { %v2617_v2 = vrot.slane %v1451_v62, %v7762_v0  ;;  %v2622_v56 = vrot.slane %v1453_v6, %v7765_v14  ;;  %v1144_v62 = vmul.f32 %v7772_v29, %v888_v53  ;;  %v1147_v4 = vmul.f32 %v6556_v12, %v891_v36  ;;  %v7773_v53 = vld [vmem:[#allocation12_spill] sm:$0xff] }
 0x1f3   : > { %v892_v45 = vand.u32 2147483647, %v636_v32  ;;  %v6824_v6 = vrot.slane %v321_v51, %v7773_v53  ;;  %v639_v36 = vsub.f32 %v6705_v61, %v7774_v7  ;;  %v7776_v51 = vld [vmem:[#allocation17_spill] sm:$0xff]  ;;  %v641_v53 = vsub.f32 %v6705_v61, %v6590_v47 }
 0x1f4   : > { %v2618_v20 = vsel %vm2058_vm11, %v2617_v2, %v2613_v46  ;;  %1596 = vadd.xlane.f32.xlu1 %v1143_v9  ;;  %1594 = vadd.xlane.f32.xlu0 %v1142_v59  ;;  %v1146_v9 = vmul.f32 %v6560_v33, %v890_v52  ;;  %v6826_v3 = vpop.f32.mrb[0].mxu1  ;;  %v6829_v2 = vpop.f32.mrb[0].mxu0 }
 0x1f5   : > { %v1457_v63 = vpop.xlane.xlu1 %1456  ;;  %v1455_v18 = vpop.xlane.xlu0 %1454  ;;  %v2623_v59 = vsel %vm2065_vm12, %v2622_v56, %v2618_v20  ;;  %v638_v56 = vsub.f32 %v6705_v61, %v7775_v25  ;;  %v3277_v20 = vsel %vm3276_vm15, %v2554_v30, %v7776_v51  ;;  %v6848_v30 = vrot.slane %v6824_v6, %v7716_v15 }
 0x1f6   : > { %v2632_v31 = vrot.slane %v1457_v63, %v7770_v17  ;;  %v2627_v21 = vrot.slane %v1455_v18, %v7767_v24 }
 0x1f8   : > { %1600 = vadd.xlane.f32.xlu1 %v1145_v44  ;;  %1598 = vadd.xlane.f32.xlu0 %v1144_v62  ;;  %v2628_v26 = vsel %vm2072_vm13, %v2627_v21, %v2623_v59  ;;  %v1149_v44 = vmul.f32 %v6586_v27, %v893_v23  ;;  %v3647_v21 = vpop.f32.mrb[1].mxu1  ;;  %v3963_v59 = vpop.f32.mrb[1].mxu0  ;;  %v351_v23 = vcombine.high %v6691_v19, %v6691_v19 }
 0x1f9   : > { %v1461_v46 = vpop.xlane.xlu1 %1460  ;;  %v1459_v52 = vpop.xlane.xlu0 %1458  ;;  %v2633_v32 = vsel %vm2079_vm14, %v2632_v31, %v2628_v26  ;;  %v1148_v31 = vmul.f32 %v6598_v16, %v892_v45  ;;  %v643_v19 = vsub.f32 %v6848_v30, %v6437_v49 }
 0x1fa   : > { %v2641_v62 = vrot.slane %v1461_v46, %v5804_v60  ;;  %v2637_v63 = vrot.slane %v1459_v52, %v7691_v11  ;;  %v3279_v18 = vsel %vm7553_vm9, %v2633_v32, %v3277_v20  ;;  %v895_v46 = vand.u32 2147483647, %v639_v36 }
 0x1fb   : > { %v4614_v7 = vadd.f32 %v3647_v21, %v3279_v18  ;;  %v894_v52 = vand.u32 2147483647, %v638_v56  ;;  %v640_v32 = vsub.f32 %v6705_v61, %v6602_v40  ;;  %v897_v21 = vand.u32 2147483647, %v641_v53 }
 0x1fc   : > { %v2642_v26 = vsel %vm1981_vm0, %v2641_v62, %v2637_v63  ;;  %1604 = vadd.xlane.f32.xlu1 %v1147_v4  ;;  %1602 = vadd.xlane.f32.xlu0 %v1146_v9  ;;  %v642_v4 = vsub.f32 %v6848_v30, %v6442_v8  ;;  %v6865_v40 = vrot.slane %v351_v23, %v7716_v15  ;;  %v7777_v9 = vld [vmem:[#allocation13_spill] sm:$0xff]  ;;  %vm7781_vm9 = vcmask 720512  }
 0x1fd   : > { %v4615_v47 = vadd.f32 %v4614_v7, %v3963_v59  ;;  %v1465_v51 = vpop.xlane.xlu1 %1464  ;;  %v1463_v20 = vpop.xlane.xlu0 %1462  ;;  %v1151_v36 = vmul.f32 %v7777_v9, %v895_v46  ;;  %v1150_v56 = vmul.f32 %v6617_v41, %v894_v52  ;;  %v896_v62 = vand.u32 2147483647, %v640_v32 }
 0x1fe   : > { %v2651_v45 = vrot.slane %v1465_v51, %v5801_v1  ;;  %v2646_v18 = vrot.slane %v1463_v20, %v7705_v22  ;;  %v1153_v23 = vmul.f32 %v7753_v37, %v897_v21  ;;  %v899_v51 = vand.u32 2147483647, %v643_v19 }
 0x1ff   : > { %3973 = vst [vmem:[%s6857_s14] sm:$0xff] %v4615_v47  ;;  %v898_v20 = vand.u32 2147483647, %v642_v4  ;;  %v1152_v46 = vmul.f32 %v7754_v43, %v896_v62  ;;  %v644_v52 = vsub.f32 %v6848_v30, %v6457_v28  ;;  %v659_v62 = vsub.f32 %v6865_v40, %v6437_v49 }
 0x200   : > { %v2647_v61 = vsel %vm1988_vm1, %v2646_v18, %v2642_v26  ;;  %1608 = vadd.xlane.f32.xlu1 %v1149_v44  ;;  %1606 = vadd.xlane.f32.xlu0 %v1148_v31  ;;  %v658_v44 = vsub.f32 %v6865_v40, %v6442_v8  ;;  %v353_v31 = vcombine.high %v6824_v6, %v6824_v6 }
 0x201   : > { %v1469_v63 = vpop.xlane.xlu1 %1468  ;;  %v2652_v59 = vsel %vm1995_vm2, %v2651_v45, %v2647_v61  ;;  %v1467_v53 = vpop.xlane.xlu0 %1466  ;;  %v1155_v19 = vmul.f32 %v6468_v42, %v899_v51  ;;  %v1154_v6 = vmul.f32 %v7758_v54, %v898_v20  ;;  %v900_v9 = vand.u32 2147483647, %v644_v52 }
 0x202   : > { %v2661_v7 = vrot.slane %v1469_v63, %v7726_v10  ;;  %v2656_v47 = vrot.slane %v1467_v53, %v7727_v38  ;;  %v914_v4 = vand.u32 2147483647, %v658_v44  ;;  %v6888_v61 = vrot.slane %v353_v31, %v7716_v15 }
 0x203   : > { %v660_v51 = vsub.f32 %v6865_v40, %v6457_v28  ;;  %v1156_v44 = vmul.f32 %v6494_v57, %v900_v9  ;;  %v7782_v9 = vld [vmem:[#allocation26_spill] sm:$0xff] }
 0x204   : > { %v2657_v26 = vsel %vm2002_vm3, %v2656_v47, %v2652_v59  ;;  %1612 = vadd.xlane.f32.xlu1 %v1151_v36  ;;  %1610 = vadd.xlane.f32.xlu0 %v1150_v56  ;;  %v7778_v36 = vld [vmem:[#allocation44_spill] sm:$0xff]  ;;  %v1170_v47 = vmul.f32 %v7758_v54, %v914_v4  ;;  %v7780_v4 = vld [vmem:[#allocation19_spill] sm:$0xff] }
 0x205   : > { %v1473_v32 = vpop.xlane.xlu1 %1472  ;;  %v2662_v37 = vsel %vm2009_vm4, %v2661_v7, %v2657_v26  ;;  %v1471_v45 = vpop.xlane.xlu0 %1470  ;;  %v645_v56 = vsub.f32 %v6848_v30, %v7778_v36  ;;  %v915_v26 = vand.u32 2147483647, %v659_v62 }
 0x206   : > { %v2671_v18 = vrot.slane %v1473_v32, %v5847_v13  ;;  %v2666_v21 = vrot.slane %v1471_v45, %v5850_v5  ;;  %v7779_v45 = vld [vmem:[#allocation27_spill] sm:$0xff] }
 0x207   : > { %v901_v31 = vand.u32 2147483647, %v645_v56  ;;  %v1171_v62 = vmul.f32 %v6468_v42, %v915_v26 }
 0x208   : > { %v2667_v43 = vsel %vm2016_vm5, %v2666_v21, %v2662_v37  ;;  %1616 = vadd.xlane.f32.xlu1 %v1153_v23  ;;  %1614 = vadd.xlane.f32.xlu0 %v1152_v46  ;;  %v674_v23 = vsub.f32 %v6888_v61, %v6442_v8  ;;  %v916_v21 = vand.u32 2147483647, %v660_v51 }
 0x209   : > { %v1477_v63 = vpop.xlane.xlu1 %1476  ;;  %v2672_v59 = vsel %vm2023_vm6, %v2671_v18, %v2667_v43  ;;  %v1475_v53 = vpop.xlane.xlu0 %1474  ;;  %v646_v43 = vsub.f32 %v6848_v30, %v7780_v4  ;;  %v1157_v56 = vmul.f32 %v7782_v9, %v901_v31  ;;  %v661_v31 = vsub.f32 %v6865_v40, %v7778_v36 }
 0x20a   : > { %v2681_v7 = vrot.slane %v1477_v63, %v7755_v35  ;;  %v2676_v15 = vrot.slane %v1475_v53, %v5880_v48  ;;  %v930_v8 = vand.u32 2147483647, %v674_v23 }
 0x20b   : > { %v902_v51 = vand.u32 2147483647, %v646_v43  ;;  %v917_v43 = vand.u32 2147483647, %v661_v31 }
 0x20c   : > { %v2677_v20 = vsel %vm2030_vm7, %v2676_v15, %v2672_v59  ;;  %1620 = vadd.xlane.f32.xlu1 %v1155_v19  ;;  %1618 = vadd.xlane.f32.xlu0 %v1154_v6  ;;  %v675_v19 = vsub.f32 %v6888_v61, %v6437_v49  ;;  %v1186_v23 = vmul.f32 %v7758_v54, %v930_v8 }
 0x20d   : > { %v1481_v46 = vpop.xlane.xlu1 %1480  ;;  %v2682_v52 = vsel %vm2037_vm8, %v2681_v7, %v2677_v20  ;;  %v1479_v32 = vpop.xlane.xlu0 %1478  ;;  %v1172_v49 = vmul.f32 %v6494_v57, %v916_v21  ;;  %v662_v8 = vsub.f32 %v6865_v40, %v7780_v4 }
 0x20e   : > { %v2691_v37 = vrot.slane %v1481_v46, %v7760_v34  ;;  %v2686_v18 = vrot.slane %v1479_v32, %v7779_v45  ;;  %v931_v20 = vand.u32 2147483647, %v675_v19  ;;  %v7783_v19 = vld [vmem:[#allocation22_spill] sm:$0xff] }
 0x210   : > { %v2687_v6 = vsel %vm7781_vm9, %v2686_v18, %v2682_v52  ;;  %1650 = vadd.xlane.f32.xlu1 %v1170_v47  ;;  %1622 = vadd.xlane.f32.xlu0 %v1156_v44  ;;  %v676_v44 = vsub.f32 %v6888_v61, %v6457_v28  ;;  %v1187_v18 = vmul.f32 %v6468_v42, %v931_v20 }
 0x211   : > { %v1485_v63 = vpop.xlane.xlu1 %1484  ;;  %v2692_v59 = vsel %vm2051_vm10, %v2691_v37, %v2687_v6  ;;  %v1483_v53 = vpop.xlane.xlu0 %1482  ;;  %v1158_v37 = vmul.f32 %v7768_v55, %v902_v51  ;;  %v647_v6 = vsub.f32 %v6848_v30, %v7783_v19  ;;  %v1173_v20 = vmul.f32 %v7782_v9, %v917_v43 }
 0x212   : > { %v2701_v7 = vrot.slane %v1485_v63, %v7765_v14  ;;  %v2696_v15 = vrot.slane %v1483_v53, %v7762_v0  ;;  %v932_v21 = vand.u32 2147483647, %v676_v44  ;;  %v918_v53 = vand.u32 2147483647, %v662_v8 }
 0x213   : > { %v663_v8 = vsub.f32 %v6865_v40, %v7783_v19 }
 0x214   : > { %v2697_v47 = vsel %vm2058_vm11, %v2696_v15, %v2692_v59  ;;  %1624 = vadd.xlane.f32.xlu1 %v1157_v56  ;;  %1652 = vadd.xlane.f32.xlu0 %v1171_v62  ;;  %v1188_v51 = vmul.f32 %v6494_v57, %v932_v21  ;;  %v7785_v57 = vld [vmem:[#allocation25_spill] sm:$0xff] }
 0x215   : > { %v1489_v26 = vpop.xlane.xlu1 %1488  ;;  %v2702_v46 = vsel %vm2065_vm12, %v2701_v7, %v2697_v47  ;;  %v1487_v52 = vpop.xlane.xlu0 %1486  ;;  %v7784_v7 = vld [vmem:[#allocation35_spill] sm:$0xff]  ;;  %v903_v47 = vand.u32 2147483647, %v647_v6 }
 0x216   : > { %v2711_v54 = vrot.slane %v1489_v26, %v7770_v17  ;;  %v2706_v32 = vrot.slane %v1487_v52, %v7767_v24  ;;  %v648_v15 = vsub.f32 %v6848_v30, %v7784_v7  ;;  %v1174_v52 = vmul.f32 %v7768_v55, %v918_v53 }
 0x217   : > { %v919_v53 = vand.u32 2147483647, %v663_v8 }
 0x218   : > { %v2707_v28 = vsel %vm2072_vm13, %v2706_v32, %v2702_v46  ;;  %1682 = vadd.xlane.f32.xlu1 %v1186_v23  ;;  %1654 = vadd.xlane.f32.xlu0 %v1172_v49  ;;  %v677_v23 = vsub.f32 %v6888_v61, %v7778_v36  ;;  %v678_v36 = vsub.f32 %v6888_v61, %v7780_v4 }
 0x219   : > { %v6936_v56 = vsel %vm2079_vm14, %v2711_v54, %v2707_v28  ;;  %v1493_v62 = vpop.xlane.xlu1 %1492  ;;  %v1491_v63 = vpop.xlane.xlu0 %1490  ;;  %v904_v54 = vand.u32 2147483647, %v648_v15  ;;  %v664_v15 = vsub.f32 %v6865_v40, %v7784_v7 }
 0x21a   : > { %v2720_v59 = vrot.slane %v1493_v62, %v5804_v60  ;;  %v2716_v42 = vrot.slane %v1491_v63, %v7691_v11  ;;  %v933_v32 = vand.u32 2147483647, %v677_v23  ;;  %v7786_v23 = vld [vmem:[#allocation11_spill] sm:$0xff] }
 0x21b   : > { %v1160_v63 = vmul.f32 %v7772_v29, %v904_v54 }
 0x21c   : > { %v2721_v49 = vsel %vm1981_vm0, %v2720_v59, %v2716_v42  ;;  %1626 = vadd.xlane.f32.xlu1 %v1158_v37  ;;  %1684 = vadd.xlane.f32.xlu0 %v1187_v18  ;;  %v1159_v18 = vmul.f32 %v7785_v57, %v903_v47  ;;  %v1189_v4 = vmul.f32 %v7782_v9, %v933_v32  ;;  %v934_v59 = vand.u32 2147483647, %v678_v36 }
 0x21d   : > { %v1497_v44 = vpop.xlane.xlu1 %1496  ;;  %v1495_v31 = vpop.xlane.xlu0 %1494  ;;  %v1175_v32 = vmul.f32 %v7785_v57, %v919_v53  ;;  %v920_v36 = vand.u32 2147483647, %v664_v15 }
 0x21e   : > { %v2730_v26 = vrot.slane %v1497_v44, %v5801_v1  ;;  %v2725_v46 = vrot.slane %v1495_v31, %v7705_v22  ;;  %v1190_v31 = vmul.f32 %v7768_v55, %v934_v59 }
 0x220   : > { %v2726_v37 = vsel %vm1988_vm1, %v2725_v46, %v2721_v49  ;;  %1686 = vadd.xlane.f32.xlu1 %v1188_v51  ;;  %1656 = vadd.xlane.f32.xlu0 %v1173_v20  ;;  %v649_v49 = vsub.f32 %v6848_v30, %v7786_v23 }
 0x221   : > { %v1501_v28 = vpop.xlane.xlu1 %1500  ;;  %v2731_v21 = vsel %vm1995_vm2, %v2730_v26, %v2726_v37  ;;  %v1499_v43 = vpop.xlane.xlu0 %1498  ;;  %v7787_v26 = vld [vmem:[#allocation41_spill] sm:$0xff] }
 0x222   : > { %v2740_v6 = vrot.slane %v1501_v28, %v7726_v10  ;;  %v2735_v62 = vrot.slane %v1499_v43, %v7727_v38  ;;  %v650_v46 = vsub.f32 %v6848_v30, %v7787_v26  ;;  %v905_v37 = vand.u32 2147483647, %v649_v49 }
 0x224   : > { %v2736_v42 = vsel %vm2002_vm3, %v2735_v62, %v2731_v21  ;;  %1658 = vadd.xlane.f32.xlu1 %v1174_v52  ;;  %1628 = vadd.xlane.f32.xlu0 %v1159_v18  ;;  %v679_v52 = vsub.f32 %v6888_v61, %v7783_v19  ;;  %v906_v43 = vand.u32 2147483647, %v650_v46  ;;  %v680_v19 = vsub.f32 %v6888_v61, %v7784_v7  ;;  %v7788_v46 = vld [vmem:[#allocation23_spill] sm:$0xff] }
 0x225   : > { %v1505_v51 = vpop.xlane.xlu1 %1504  ;;  %v2741_v20 = vsel %vm2009_vm4, %v2740_v6, %v2736_v42  ;;  %v1503_v47 = vpop.xlane.xlu0 %1502  ;;  %v665_v62 = vsub.f32 %v6865_v40, %v7786_v23  ;;  %v1161_v59 = vmul.f32 %v7771_v58, %v905_v37 }
 0x226   : > { %v2750_v44 = vrot.slane %v1505_v51, %v5847_v13  ;;  %v2745_v9 = vrot.slane %v1503_v47, %v5850_v5  ;;  %v935_v6 = vand.u32 2147483647, %v679_v52  ;;  %v1162_v7 = vmul.f32 %v6560_v33, %v906_v43 }
 0x227   : > { %v936_v47 = vand.u32 2147483647, %v680_v19  ;;  %v651_v52 = vsub.f32 %v6848_v30, %v7788_v46 }
 0x228   : > { %v2746_v54 = vsel %vm2016_vm5, %v2745_v9, %v2741_v20  ;;  %1630 = vadd.xlane.f32.xlu1 %v1160_v63  ;;  %1688 = vadd.xlane.f32.xlu0 %v1189_v4  ;;  %v1176_v4 = vmul.f32 %v7772_v29, %v920_v36  ;;  %v1191_v20 = vmul.f32 %v7785_v57, %v935_v6 }
 0x229   : > { %v1509_v18 = vpop.xlane.xlu1 %1508  ;;  %v2751_v8 = vsel %vm2023_vm6, %v2750_v44, %v2746_v54  ;;  %v1507_v28 = vpop.xlane.xlu0 %1506  ;;  %v921_v44 = vand.u32 2147483647, %v665_v62  ;;  %v907_v43 = vand.u32 2147483647, %v651_v52  ;;  %v681_v6 = vsub.f32 %v6888_v61, %v7786_v23 }
 0x22a   : > { %v2760_v55 = vrot.slane %v1509_v18, %v7755_v35  ;;  %v2755_v21 = vrot.slane %v1507_v28, %v5880_v48  ;;  %v1192_v18 = vmul.f32 %v7772_v29, %v936_v47  ;;  %v652_v28 = vsub.f32 %v6848_v30, %v6548_v50 }
 0x22c   : > { %v2756_v63 = vsel %vm2030_vm7, %v2755_v21, %v2751_v8  ;;  %1690 = vadd.xlane.f32.xlu1 %v1190_v31  ;;  %1660 = vadd.xlane.f32.xlu0 %v1175_v32  ;;  %v666_v31 = vsub.f32 %v6865_v40, %v7787_v26  ;;  %v1177_v8 = vmul.f32 %v7771_v58, %v921_v44 }
 0x22d   : > { %v1513_v42 = vpop.xlane.xlu1 %1512  ;;  %v2761_v53 = vsel %vm2037_vm8, %v2760_v55, %v2756_v63  ;;  %v1511_v15 = vpop.xlane.xlu0 %1510 }
 0x22e   : > { %v2770_v49 = vrot.slane %v1513_v42, %v7760_v34  ;;  %v2765_v51 = vrot.slane %v1511_v15, %v7779_v45  ;;  %v922_v21 = vand.u32 2147483647, %v666_v31  ;;  %v682_v42 = vsub.f32 %v6888_v61, %v7787_v26 }
 0x230   : > { %v2766_v9 = vsel %vm7781_vm9, %v2765_v51, %v2761_v53  ;;  %1662 = vadd.xlane.f32.xlu1 %v1176_v4  ;;  %1632 = vadd.xlane.f32.xlu0 %v1161_v59  ;;  %v908_v59 = vand.u32 2147483647, %v652_v28  ;;  %v667_v53 = vsub.f32 %v6865_v40, %v7788_v46  ;;  %v1178_v23 = vmul.f32 %v6560_v33, %v922_v21 }
 0x231   : > { %v1517_v54 = vpop.xlane.xlu1 %1516  ;;  %v2771_v32 = vsel %vm2051_vm10, %v2770_v49, %v2766_v9  ;;  %v1515_v36 = vpop.xlane.xlu0 %1514  ;;  %v1163_v49 = vmul.f32 %v6556_v12, %v907_v43  ;;  %v937_v51 = vand.u32 2147483647, %v681_v6  ;;  %vm7789_vm9 = vcmask 1041409   ;;  %v4751_v43 = vld [vmem:[%s5082_s5 + $0xd8] sm:$0xff] }
 0x232   : > { %v2780_v37 = vrot.slane %v1517_v54, %v7765_v14  ;;  %v2775_v57 = vrot.slane %v1515_v36, %v7762_v0  ;;  %v1164_v31 = vmul.f32 %v6598_v16, %v908_v59  ;;  %v938_v46 = vand.u32 2147483647, %v682_v42  ;;  %v4753_v42 = vld [vmem:[%s5082_s5 + $0x108] sm:$0xff] }
 0x233   : > { %v923_v52 = vand.u32 2147483647, %v667_v53  ;;  %v668_v54 = vsub.f32 %v6865_v40, %v6548_v50  ;;  %v1193_v36 = vmul.f32 %v7771_v58, %v937_v51  ;;  %v683_v6 = vsub.f32 %v6888_v61, %v4751_v43 }
 0x234   : > { %v2776_v55 = vsel %vm2058_vm11, %v2775_v57, %v2771_v32  ;;  %1634 = vadd.xlane.f32.xlu1 %v1162_v7  ;;  %1692 = vadd.xlane.f32.xlu0 %v1191_v20  ;;  %v1194_v28 = vmul.f32 %v6560_v33, %v938_v46 }
 0x235   : > { %v1521_v19 = vpop.xlane.xlu1 %1520  ;;  %v2781_v62 = vsel %vm2065_vm12, %v2780_v37, %v2776_v55  ;;  %v1519_v63 = vpop.xlane.xlu0 %1518  ;;  %v1179_v50 = vmul.f32 %v6556_v12, %v923_v52  ;;  %v924_v55 = vand.u32 2147483647, %v668_v54  ;;  %v7055_v52 = vld [vmem:[%s5082_s5 + $0x138] sm:$0xff] }
 0x236   : > { %v2790_v29 = vrot.slane %v1521_v19, %v7770_v17  ;;  %v2785_v4 = vrot.slane %v1519_v63, %v7767_v24 }
 0x238   : > { %v2786_v15 = vsel %vm2072_vm13, %v2785_v4, %v2781_v62  ;;  %1694 = vadd.xlane.f32.xlu1 %v1192_v18  ;;  %1664 = vadd.xlane.f32.xlu0 %v1177_v8  ;;  %v4752_v4 = vld [vmem:[%s5082_s5 + $0xf0] sm:$0xff] }
 0x239   : > { %v2791_v7 = vsel %vm2079_vm14, %v2790_v29, %v2786_v15  ;;  %v1525_v20 = vpop.xlane.xlu1 %1524  ;;  %v1523_v47 = vpop.xlane.xlu0 %1522  ;;  %v1180_v29 = vmul.f32 %v6598_v16, %v924_v55  ;;  %v684_v59 = vsub.f32 %v6888_v61, %v4752_v4 }
 0x23a   : > { %v7019_v44 = vsel %vm7789_vm9, %v2791_v7, %v6936_v56  ;;  %v2799_v26 = vrot.slane %v1525_v20, %v5804_v60  ;;  %v2795_v9 = vrot.slane %v1523_v47, %v7691_v11  ;;  %v653_v56 = vsub.f32 %v6848_v30, %v7769_v39 }
 0x23b   : > { %v654_v39 = vsub.f32 %v6848_v30, %v7775_v25  ;;  %v669_v25 = vsub.f32 %v6865_v40, %v4753_v42  ;;  %vm7790_vm9 = vcmask 720512  }
 0x23c   : > { %v2800_v32 = vsel %vm1981_vm0, %v2799_v26, %v2795_v9  ;;  %1666 = vadd.xlane.f32.xlu1 %v1178_v23  ;;  %1636 = vadd.xlane.f32.xlu0 %v1163_v49  ;;  %v909_v58 = vand.u32 2147483647, %v653_v56  ;;  %v939_v49 = vand.u32 2147483647, %v683_v6  ;;  %v940_v26 = vand.u32 2147483647, %v684_v59 }
 0x23d   : > { %v1529_v37 = vpop.xlane.xlu1 %1528  ;;  %v1527_v57 = vpop.xlane.xlu0 %1526  ;;  %v910_v23 = vand.u32 2147483647, %v654_v39  ;;  %v925_v9 = vand.u32 2147483647, %v669_v25  ;;  %v7069_v6 = vld [vmem:[%s5082_s5 + $0x150] sm:$0xff]  ;;  %v4760_v59 = vld [vmem:[%s5082_s5 + $0x128] sm:$0xff] }
 0x23e   : > { %v2809_v18 = vrot.slane %v1529_v37, %v5801_v1  ;;  %v2804_v8 = vrot.slane %v1527_v57, %v7705_v22  ;;  %v1165_v15 = vmul.f32 %v6586_v27, %v909_v58  ;;  %v655_v27 = vsub.f32 %v6848_v30, %v7055_v52 }
 0x240   : > { %v2805_v21 = vsel %vm1988_vm1, %v2804_v8, %v2800_v32  ;;  %1638 = vadd.xlane.f32.xlu1 %v1164_v31  ;;  %1696 = vadd.xlane.f32.xlu0 %v1193_v36  ;;  %v4754_v31 = vld [vmem:[%s5082_s5 + $0x120] sm:$0xff]  ;;  %v1166_v32 = vmul.f32 %v6617_v41, %v910_v23  ;;  %v911_v43 = vand.u32 2147483647, %v655_v27  ;;  %v4762_v27 = vld [vmem:[%s5082_s5 + $0x168] sm:$0xff] }
 0x241   : > { %v1533_v19 = vpop.xlane.xlu1 %1532  ;;  %v2810_v62 = vsel %vm1995_vm2, %v2809_v18, %v2805_v21  ;;  %v1531_v33 = vpop.xlane.xlu0 %1530  ;;  %v670_v46 = vsub.f32 %v6865_v40, %v4754_v31  ;;  %v4756_v36 = vld [vmem:[%s5082_s5 + $0xe0] sm:$0xff]  ;;  %v4758_v21 = vld [vmem:[%s5082_s5 + $0x110] sm:$0xff]  ;;  %v686_v23 = vsub.f32 %v6888_v61, %v4754_v31  ;;  %v672_v31 = vsub.f32 %v6865_v40, %v7069_v6 }
 0x242   : > { %v2819_v63 = vrot.slane %v1533_v19, %v7726_v10  ;;  %v2814_v12 = vrot.slane %v1531_v33, %v7727_v38  ;;  %v1195_v56 = vmul.f32 %v4756_v36, %v939_v49  ;;  %v1181_v58 = vmul.f32 %v4758_v21, %v925_v9  ;;  %v4763_v36 = vld [vmem:[%s5082_s5 + $0x158] sm:$0xff] }
 0x243   : > { %v926_v39 = vand.u32 2147483647, %v670_v46  ;;  %v656_v19 = vsub.f32 %v6848_v30, %v7069_v6  ;;  %v942_v46 = vand.u32 2147483647, %v686_v23 }
 0x244   : > { %v2815_v53 = vsel %vm2002_vm3, %v2814_v12, %v2810_v62  ;;  %1698 = vadd.xlane.f32.xlu1 %v1194_v28  ;;  %1668 = vadd.xlane.f32.xlu0 %v1179_v50  ;;  %v4757_v50 = vld [vmem:[%s5082_s5 + $0xf8] sm:$0xff]  ;;  %v685_v62 = vsub.f32 %v6888_v61, %v4753_v42 }
 0x245   : > { %v1537_v51 = vpop.xlane.xlu1 %1536  ;;  %v2820_v16 = vsel %vm2009_vm4, %v2819_v63, %v2815_v53  ;;  %v1535_v7 = vpop.xlane.xlu0 %1534  ;;  %v1196_v55 = vmul.f32 %v4757_v50, %v940_v26  ;;  %v1182_v25 = vmul.f32 %v4760_v59, %v926_v39  ;;  %v7079_v53 = vld [vmem:[%s5082_s5 + $0x140] sm:$0xff]  ;;  %v912_v42 = vand.u32 2147483647, %v656_v19 }
 0x246   : > { %v2829_v20 = vrot.slane %v1537_v51, %v5847_v13  ;;  %v2824_v47 = vrot.slane %v1535_v7, %v5850_v5  ;;  %v941_v51 = vand.u32 2147483647, %v685_v62  ;;  %v928_v39 = vand.u32 2147483647, %v672_v31 }
 0x247   : > { %v687_v19 = vsub.f32 %v6888_v61, %v7055_v52 }
 0x248   : > { %v2825_v54 = vsel %vm2016_vm5, %v2824_v47, %v2820_v16  ;;  %1670 = vadd.xlane.f32.xlu1 %v1180_v29  ;;  %1640 = vadd.xlane.f32.xlu0 %v1165_v15  ;;  %v1167_v15 = vmul.f32 %v7079_v53, %v911_v43  ;;  %v671_v16 = vsub.f32 %v6865_v40, %v7055_v52 }
 0x249   : > { %v1541_v37 = vpop.xlane.xlu1 %1540  ;;  %v2830_v57 = vsel %vm2023_vm6, %v2829_v20, %v2825_v54  ;;  %v1539_v18 = vpop.xlane.xlu0 %1538  ;;  %v657_v54 = vsub.f32 %v6848_v30, %v4762_v27  ;;  %v673_v43 = vsub.f32 %v6865_v40, %v4762_v27  ;;  %v943_v52 = vand.u32 2147483647, %v687_v19 }
 0x24a   : > { %v2839_v8 = vrot.slane %v1541_v37, %v7755_v35  ;;  %v2834_v28 = vrot.slane %v1539_v18, %v5880_v48  ;;  %v1197_v37 = vmul.f32 %v4758_v21, %v941_v51 }
 0x24b   : > { %v913_v30 = vand.u32 2147483647, %v657_v54 }
 0x24c   : > { %v2835_v41 = vsel %vm2030_vm7, %v2834_v28, %v2830_v57  ;;  %1642 = vadd.xlane.f32.xlu1 %v1166_v32  ;;  %1700 = vadd.xlane.f32.xlu0 %v1195_v56  ;;  %v1168_v56 = vmul.f32 %v4763_v36, %v912_v42  ;;  %v927_v57 = vand.u32 2147483647, %v671_v16  ;;  %v689_v42 = vsub.f32 %v6888_v61, %v4762_v27 }
 0x24d   : > { %v1545_v33 = vpop.xlane.xlu1 %1544  ;;  %v2840_v63 = vsel %vm2037_vm8, %v2839_v8, %v2835_v41  ;;  %v1543_v12 = vpop.xlane.xlu0 %1542 }
 0x24e   : > { %v2849_v29 = vrot.slane %v1545_v33, %v7760_v34  ;;  %v2844_v4 = vrot.slane %v1543_v12, %v7779_v45  ;;  %v1183_v21 = vmul.f32 %v7079_v53, %v927_v57 }
 0x250   : > { %v2845_v49 = vsel %vm7790_vm9, %v2844_v4, %v2840_v63  ;;  %1702 = vadd.xlane.f32.xlu1 %v1196_v55  ;;  %1672 = vadd.xlane.f32.xlu0 %v1181_v58  ;;  %v1198_v58 = vmul.f32 %v4760_v59, %v942_v46  ;;  %vm7791_vm9 = vcmask 1042434   ;;  %v1184_v4 = vmul.f32 %v4763_v36, %v928_v39  ;;  %v4764_v59 = vld [vmem:[%s5082_s5 + $0x170] sm:$0xff] }
 0x251   : > { %v1549_v7 = vpop.xlane.xlu1 %1548  ;;  %v2850_v20 = vsel %vm2051_vm10, %v2849_v29, %v2845_v49  ;;  %v1547_v47 = vpop.xlane.xlu0 %1546  ;;  %v688_v49 = vsub.f32 %v6888_v61, %v7069_v6  ;;  %v945_v46 = vand.u32 2147483647, %v689_v42 }
 0x252   : > { %v2859_v26 = vrot.slane %v1549_v7, %v7765_v14  ;;  %v2854_v9 = vrot.slane %v1547_v47, %v7762_v0 }
 0x254   : > { %v2855_v32 = vsel %vm2058_vm11, %v2854_v9, %v2850_v20  ;;  %1674 = vadd.xlane.f32.xlu1 %v1182_v25  ;;  %1644 = vadd.xlane.f32.xlu0 %v1167_v15  ;;  %v1169_v25 = vmul.f32 %v4764_v59, %v913_v30  ;;  %v929_v15 = vand.u32 2147483647, %v673_v43  ;;  %v944_v9 = vand.u32 2147483647, %v688_v49 }
 0x255   : > { %v1553_v18 = vpop.xlane.xlu1 %1552  ;;  %v2860_v8 = vsel %vm2065_vm12, %v2859_v26, %v2855_v32  ;;  %v1551_v28 = vpop.xlane.xlu0 %1550  ;;  %v1199_v26 = vmul.f32 %v7079_v53, %v943_v52 }
 0x256   : > { %v2869_v50 = vrot.slane %v1553_v18, %v7770_v17  ;;  %v2864_v55 = vrot.slane %v1551_v28, %v7767_v24  ;;  %v1185_v20 = vmul.f32 %v4764_v59, %v929_v15 }
 0x258   : > { %v2865_v41 = vsel %vm2072_vm13, %v2864_v55, %v2860_v8  ;;  %1646 = vadd.xlane.f32.xlu1 %v1168_v56  ;;  %1704 = vadd.xlane.f32.xlu0 %v1197_v37  ;;  %v1200_v56 = vmul.f32 %v4763_v36, %v944_v9  ;;  %v1201_v37 = vmul.f32 %v4764_v59, %v945_v46 }
 0x259   : > { %v2870_v62 = vsel %vm2079_vm14, %v2869_v50, %v2865_v41  ;;  %v1557_v33 = vpop.xlane.xlu1 %1556  ;;  %v1555_v63 = vpop.xlane.xlu0 %1554 }
 0x25a   : > { %v7106_v12 = vsel %vm7791_vm9, %v2870_v62, %v7019_v44  ;;  %v2878_v29 = vrot.slane %v1557_v33, %v5804_v60  ;;  %v2874_v40 = vrot.slane %v1555_v63, %v7691_v11  ;;  %vm7792_vm9 = vcmask 720512  }
 0x25c   : > { %v2879_v23 = vsel %vm1981_vm0, %v2878_v29, %v2874_v40  ;;  %1706 = vadd.xlane.f32.xlu1 %v1198_v58  ;;  %1676 = vadd.xlane.f32.xlu0 %v1183_v21 }
 0x25d   : > { %v1561_v44 = vpop.xlane.xlu1 %1560  ;;  %v1559_v51 = vpop.xlane.xlu0 %1558 }
 0x25e   : > { %v2888_v16 = vrot.slane %v1561_v44, %v5801_v1  ;;  %v2883_v7 = vrot.slane %v1559_v51, %v7705_v22 }
 0x260   : > { %v2884_v47 = vsel %vm1988_vm1, %v2883_v7, %v2879_v23  ;;  %1678 = vadd.xlane.f32.xlu1 %v1184_v4  ;;  %1648 = vadd.xlane.f32.xlu0 %v1169_v25 }
 0x261   : > { %v1565_v31 = vpop.xlane.xlu1 %1564  ;;  %v2889_v6 = vsel %vm1995_vm2, %v2888_v16, %v2884_v47  ;;  %v1563_v54 = vpop.xlane.xlu0 %1562 }
 0x262   : > { %v2898_v61 = vrot.slane %v1565_v31, %v7726_v10  ;;  %v2893_v27 = vrot.slane %v1563_v54, %v7727_v38 }
 0x264   : > { %v2894_v32 = vsel %vm2002_vm3, %v2893_v27, %v2889_v6  ;;  %1680 = vadd.xlane.f32.xlu1 %v1185_v20  ;;  %1708 = vadd.xlane.f32.xlu0 %v1199_v26 }
 0x265   : > { %v1569_v57 = vpop.xlane.xlu1 %1568  ;;  %v2899_v18 = vsel %vm2009_vm4, %v2898_v61, %v2894_v32  ;;  %v1567_v53 = vpop.xlane.xlu0 %1566 }
 0x266   : > { %v2908_v8 = vrot.slane %v1569_v57, %v5847_v13  ;;  %v2903_v28 = vrot.slane %v1567_v53, %v5850_v5 }
 0x268   : > { %v2904_v50 = vsel %vm2016_vm5, %v2903_v28, %v2899_v18  ;;  %1710 = vadd.xlane.f32.xlu0 %v1200_v56  ;;  %1712 = vadd.xlane.f32.xlu1 %v1201_v37 }
 0x269   : > { %v1573_v55 = vpop.xlane.xlu1 %1572  ;;  %v2909_v58 = vsel %vm2023_vm6, %v2908_v8, %v2904_v50  ;;  %v1571_v39 = vpop.xlane.xlu0 %1570 }
 0x26a   : > { %v2918_v30 = vrot.slane %v1573_v55, %v7755_v35  ;;  %v2913_v36 = vrot.slane %v1571_v39, %v5880_v48 }
 0x26c   : > { %v2914_v43 = vsel %vm2030_vm7, %v2913_v36, %v2909_v58 }
 0x26d   : > { %v1577_v41 = vpop.xlane.xlu1 %1576  ;;  %v2919_v21 = vsel %vm2037_vm8, %v2918_v30, %v2914_v43  ;;  %v1575_v19 = vpop.xlane.xlu0 %1574 }
 0x26e   : > { %v2928_v62 = vrot.slane %v1577_v41, %v7760_v34  ;;  %v2923_v33 = vrot.slane %v1575_v19, %v7779_v45 }
 0x270   : > { %v2924_v63 = vsel %vm7792_vm9, %v2923_v33, %v2919_v21  ;;  %vm7793_vm9 = vcmask 1043459  }
 0x271   : > { %v1581_v29 = vpop.xlane.xlu1 %1580  ;;  %v2929_v40 = vsel %vm2051_vm10, %v2928_v62, %v2924_v63  ;;  %v1579_v4 = vpop.xlane.xlu0 %1578 }
 0x272   : > { %v2938_v59 = vrot.slane %v1581_v29, %v7765_v14  ;;  %v2933_v25 = vrot.slane %v1579_v4, %v7762_v0 }
 0x274   : > { %v2934_v15 = vsel %vm2058_vm11, %v2933_v25, %v2929_v40 }
 0x275   : > { %v1585_v23 = vpop.xlane.xlu1 %1584  ;;  %v2939_v52 = vsel %vm2065_vm12, %v2938_v59, %v2934_v15  ;;  %v1583_v49 = vpop.xlane.xlu0 %1582 }
 0x276   : > { %v2948_v42 = vrot.slane %v1585_v23, %v7770_v17  ;;  %v2943_v44 = vrot.slane %v1583_v49, %v7767_v24 }
 0x278   : > { %v2944_v51 = vsel %vm2072_vm13, %v2943_v44, %v2939_v52 }
 0x279   : > { %v2949_v16 = vsel %vm2079_vm14, %v2948_v42, %v2944_v51  ;;  %v1589_v7 = vpop.xlane.xlu1 %1588  ;;  %v1587_v20 = vpop.xlane.xlu0 %1586 }
 0x27a   : > { %v3282_v47 = vsel %vm7793_vm9, %v2949_v16, %v7106_v12  ;;  %v2957_v26 = vrot.slane %v1589_v7, %v5804_v60  ;;  %v2953_v9 = vrot.slane %v1587_v20, %v7691_v11  ;;  %vm7794_vm9 = vcmask 720512  }
 0x27c   : > { %v2958_v46 = vsel %vm1981_vm0, %v2957_v26, %v2953_v9 }
 0x27d   : > { %v1593_v31 = vpop.xlane.xlu1 %1592  ;;  %v1591_v6 = vpop.xlane.xlu0 %1590 }
 0x27e   : > { %v2967_v54 = vrot.slane %v1593_v31, %v5801_v1  ;;  %v2962_v61 = vrot.slane %v1591_v6, %v7705_v22 }
 0x280   : > { %v2963_v27 = vsel %vm1988_vm1, %v2962_v61, %v2958_v46 }
 0x281   : > { %v1597_v32 = vpop.xlane.xlu1 %1596  ;;  %v2968_v56 = vsel %vm1995_vm2, %v2967_v54, %v2963_v27  ;;  %v1595_v37 = vpop.xlane.xlu0 %1594 }
 0x282   : > { %v2977_v12 = vrot.slane %v1597_v32, %v7726_v10  ;;  %v2972_v57 = vrot.slane %v1595_v37, %v7727_v38 }
 0x284   : > { %v2973_v18 = vsel %vm2002_vm3, %v2972_v57, %v2968_v56 }
 0x285   : > { %v1601_v53 = vpop.xlane.xlu1 %1600  ;;  %v2978_v8 = vsel %vm2009_vm4, %v2977_v12, %v2973_v18  ;;  %v1599_v28 = vpop.xlane.xlu0 %1598 }
 0x286   : > { %v2987_v50 = vrot.slane %v1601_v53, %v5847_v13  ;;  %v2982_v55 = vrot.slane %v1599_v28, %v5850_v5 }
 0x288   : > { %v2983_v58 = vsel %vm2016_vm5, %v2982_v55, %v2978_v8 }
 0x289   : > { %v1605_v39 = vpop.xlane.xlu1 %1604  ;;  %v2988_v30 = vsel %vm2023_vm6, %v2987_v50, %v2983_v58  ;;  %v1603_v36 = vpop.xlane.xlu0 %1602 }
 0x28a   : > { %v2997_v43 = vrot.slane %v1605_v39, %v7755_v35  ;;  %v2992_v41 = vrot.slane %v1603_v36, %v5880_v48 }
 0x28c   : > { %v2993_v21 = vsel %vm2030_vm7, %v2992_v41, %v2988_v30 }
 0x28d   : > { %v1609_v19 = vpop.xlane.xlu1 %1608  ;;  %v2998_v62 = vsel %vm2037_vm8, %v2997_v43, %v2993_v21  ;;  %v1607_v33 = vpop.xlane.xlu0 %1606 }
 0x28e   : > { %v3007_v63 = vrot.slane %v1609_v19, %v7760_v34  ;;  %v3002_v29 = vrot.slane %v1607_v33, %v7779_v45 }
 0x290   : > { %v3003_v40 = vsel %vm7794_vm9, %v3002_v29, %v2998_v62  ;;  %vm7795_vm9 = vcmask 1044484  }
 0x291   : > { %v1613_v4 = vpop.xlane.xlu1 %1612  ;;  %v3008_v59 = vsel %vm2051_vm10, %v3007_v63, %v3003_v40  ;;  %v1611_v25 = vpop.xlane.xlu0 %1610 }
 0x292   : > { %v3017_v15 = vrot.slane %v1613_v4, %v7765_v14  ;;  %v3012_v23 = vrot.slane %v1611_v25, %v7762_v0 }
 0x294   : > { %v3013_v52 = vsel %vm2058_vm11, %v3012_v23, %v3008_v59 }
 0x295   : > { %v1617_v49 = vpop.xlane.xlu1 %1616  ;;  %v3018_v42 = vsel %vm2065_vm12, %v3017_v15, %v3013_v52  ;;  %v1615_v44 = vpop.xlane.xlu0 %1614 }
 0x296   : > { %v3027_v51 = vrot.slane %v1617_v49, %v7770_v17  ;;  %v3022_v16 = vrot.slane %v1615_v44, %v7767_v24 }
 0x298   : > { %v3023_v7 = vsel %vm2072_vm13, %v3022_v16, %v3018_v42 }
 0x299   : > { %v3028_v20 = vsel %vm2079_vm14, %v3027_v51, %v3023_v7  ;;  %v1621_v26 = vpop.xlane.xlu1 %1620  ;;  %v1619_v9 = vpop.xlane.xlu0 %1618 }
 0x29a   : > { %v3036_v46 = vrot.slane %v1621_v26, %v5804_v60  ;;  %v3032_v31 = vrot.slane %v1619_v9, %v7691_v11  ;;  %v7180_v6 = vsel %vm7795_vm9, %v3028_v20, %v3282_v47 }
 0x29c   : > { %v3037_v54 = vsel %vm1981_vm0, %v3036_v46, %v3032_v31 }
 0x29d   : > { %v1651_v61 = vpop.xlane.xlu1 %1650  ;;  %v1623_v27 = vpop.xlane.xlu0 %1622 }
 0x29e   : > { %v3041_v32 = vrot.slane %v1623_v27, %v7705_v22  ;;  %v3111_v57 = vrot.slane %v1651_v61, %v7691_v11 }
 0x2a0   : > { %v3042_v56 = vsel %vm1988_vm1, %v3041_v32, %v3037_v54 }
 0x2a1   : > { %v1625_v37 = vpop.xlane.xlu1 %1624  ;;  %v1653_v12 = vpop.xlane.xlu0 %1652 }
 0x2a2   : > { %v3046_v18 = vrot.slane %v1625_v37, %v5801_v1  ;;  %v3115_v53 = vrot.slane %v1653_v12, %v5804_v60 }
 0x2a4   : > { %v3047_v8 = vsel %vm1995_vm2, %v3046_v18, %v3042_v56  ;;  %v3116_v47 = vsel %vm1981_vm0, %v3115_v53, %v3111_v57 }
 0x2a5   : > { %v1683_v28 = vpop.xlane.xlu1 %1682  ;;  %v1655_v50 = vpop.xlane.xlu0 %1654 }
 0x2a6   : > { %v3120_v55 = vrot.slane %v1655_v50, %v7705_v22  ;;  %v3190_v27 = vrot.slane %v1683_v28, %v7691_v11 }
 0x2a8   : > { %v3121_v58 = vsel %vm1988_vm1, %v3120_v55, %v3116_v47 }
 0x2a9   : > { %v1627_v39 = vpop.xlane.xlu1 %1626  ;;  %v1685_v30 = vpop.xlane.xlu0 %1684 }
 0x2aa   : > { %v3194_v31 = vrot.slane %v1685_v30, %v5804_v60  ;;  %v3051_v54 = vrot.slane %v1627_v39, %v7727_v38 }
 0x2ac   : > { %v3195_v18 = vsel %vm1981_vm0, %v3194_v31, %v3190_v27  ;;  %v3052_v47 = vsel %vm2002_vm3, %v3051_v54, %v3047_v8  ;;  %vm7796_vm0 = vcmask 720512  }
 0x2ad   : > { %v1687_v36 = vpop.xlane.xlu1 %1686  ;;  %v1657_v43 = vpop.xlane.xlu0 %1656 }
 0x2ae   : > { %v3199_v61 = vrot.slane %v1687_v36, %v7705_v22  ;;  %v3125_v32 = vrot.slane %v1657_v43, %v5801_v1 }
 0x2b0   : > { %v3200_v22 = vsel %vm1988_vm1, %v3199_v61, %v3195_v18  ;;  %v3126_v50 = vsel %vm1995_vm2, %v3125_v32, %v3121_v58  ;;  %vm7797_vm1 = vmmov %vm7796_vm0 }
 0x2b1   : > { %v1659_v41 = vpop.xlane.xlu1 %1658  ;;  %v1629_v21 = vpop.xlane.xlu0 %1628 }
 0x2b2   : > { %v3130_v12 = vrot.slane %v1659_v41, %v7727_v38  ;;  %v3056_v57 = vrot.slane %v1629_v21, %v7726_v10 }
 0x2b4   : > { %v3057_v8 = vsel %vm2009_vm4, %v3056_v57, %v3052_v47 }
 0x2b5   : > { %v1631_v19 = vpop.xlane.xlu1 %1630  ;;  %v1689_v62 = vpop.xlane.xlu0 %1688 }
 0x2b6   : > { %v3061_v53 = vrot.slane %v1631_v19, %v5850_v5  ;;  %v3204_v60 = vrot.slane %v1689_v62, %v5801_v1  ;;  %v3131_v1 = vsel %vm2002_vm3, %v3130_v12, %v3126_v50 }
 0x2b8   : > { %v3062_v19 = vsel %vm2016_vm5, %v3061_v53, %v3057_v8  ;;  %v3205_v58 = vsel %vm1995_vm2, %v3204_v60, %v3200_v22  ;;  %vm7798_vm2 = vcmask 1045509  }
 0x2b9   : > { %v1691_v33 = vpop.xlane.xlu1 %1690  ;;  %v1661_v63 = vpop.xlane.xlu0 %1660 }
 0x2ba   : > { %v3135_v11 = vrot.slane %v1661_v63, %v7726_v10  ;;  %v3209_v55 = vrot.slane %v1691_v33, %v7727_v38 }
 0x2bc   : > { %v3136_v33 = vsel %vm2009_vm4, %v3135_v11, %v3131_v1 }
 0x2bd   : > { %v1663_v29 = vpop.xlane.xlu1 %1662  ;;  %v1633_v40 = vpop.xlane.xlu0 %1632 }
 0x2be   : > { %v3066_v28 = vrot.slane %v1633_v40, %v5847_v13  ;;  %v3140_v39 = vrot.slane %v1663_v29, %v5850_v5 }
 0x2c0   : > { %v3067_v63 = vsel %vm2023_vm6, %v3066_v28, %v3062_v19 }
 0x2c1   : > { %v1635_v4 = vpop.xlane.xlu1 %1634  ;;  %v1693_v59 = vpop.xlane.xlu0 %1692 }
 0x2c2   : > { %v3071_v30 = vrot.slane %v1635_v4, %v5880_v48  ;;  %v3214_v41 = vrot.slane %v1693_v59, %v7726_v10  ;;  %v3210_v10 = vsel %vm2002_vm3, %v3209_v55, %v3205_v58  ;;  %v3141_v4 = vsel %vm2016_vm5, %v3140_v39, %v3136_v33  ;;  %vm7799_vm3 = vmmov %vm7796_vm0 }
 0x2c4   : > { %v3072_v59 = vsel %vm2030_vm7, %v3071_v30, %v3067_v63 }
 0x2c5   : > { %v7192_v25 = vpop.xlane.xlu1 %1694  ;;  %v1665_v15 = vpop.xlane.xlu0 %1664 }
 0x2c6   : > { %v3145_v38 = vrot.slane %v1665_v15, %v5847_v13  ;;  %v3219_v12 = vrot.slane %v7192_v25, %v5850_v5 }
 0x2c9   : > { %v7194_v23 = vpop.xlane.xlu1 %1666  ;;  %v1637_v52 = vpop.xlane.xlu0 %1636 }
 0x2ca   : > { %v3076_v21 = vrot.slane %v1637_v52, %v7755_v35  ;;  %v3150_v29 = vrot.slane %v7194_v23, %v5880_v48 }
 0x2cc   : > { %v3077_v54 = vsel %vm2037_vm8, %v3076_v21, %v3072_v59 }
 0x2cd   : > { %v1639_v49 = vpop.xlane.xlu1 %1638  ;;  %v7196_v42 = vpop.xlane.xlu0 %1696 }
 0x2ce   : > { %v3081_v62 = vrot.slane %v1639_v49, %v7779_v45  ;;  %v3215_v49 = vsel %vm2009_vm4, %v3214_v41, %v3210_v10  ;;  %vm7800_vm4 = vcmask 1047559  }
 0x2d0   : > { %v3082_v27 = vsel %vm7796_vm0, %v3081_v62, %v3077_v54 }
 0x2d1   : > { %v7198_v44 = vpop.xlane.xlu1 %1698  ;;  %v7200_v51 = vpop.xlane.xlu0 %1668 }
 0x2d2   : > { %v3155_v61 = vrot.slane %v7200_v51, %v7755_v35  ;;  %v3229_v53 = vrot.slane %v7198_v44, %v5880_v48 }
 0x2d5   : > { %v7202_v16 = vpop.xlane.xlu1 %1670  ;;  %v1641_v7 = vpop.xlane.xlu0 %1640 }
 0x2d6   : > { %v3086_v40 = vrot.slane %v1641_v7, %v7760_v34  ;;  %v3146_v7 = vsel %vm2023_vm6, %v3145_v38, %v3141_v4  ;;  %v3160_v32 = vrot.slane %v7202_v16, %v7779_v45 }
 0x2d7   : > { %v3151_v57 = vsel %vm2030_vm7, %v3150_v29, %v3146_v7 }
 0x2d8   : > { %v3087_v18 = vsel %vm2051_vm10, %v3086_v40, %v3082_v27  ;;  %v3156_v25 = vsel %vm2037_vm8, %v3155_v61, %v3151_v57 }
 0x2d9   : > { %v1643_v20 = vpop.xlane.xlu1 %1642  ;;  %v7204_v26 = vpop.xlane.xlu0 %1700 }
 0x2da   : > { %v3091_v52 = vrot.slane %v1643_v20, %v7762_v0  ;;  %v3234_v48 = vrot.slane %v7204_v26, %v7755_v35 }
 0x2dc   : > { %v3092_v16 = vsel %vm2058_vm11, %v3091_v52, %v3087_v18 }
 0x2dd   : > { %v7206_v9 = vpop.xlane.xlu1 %1702  ;;  %v7208_v46 = vpop.xlane.xlu0 %1672 }
 0x2de   : > { %v3165_v51 = vrot.slane %v7208_v46, %v7760_v34  ;;  %v3239_v28 = vrot.slane %v7206_v9, %v7779_v45 }
 0x2e1   : > { %v7215_v56 = vpop.xlane.xlu1 %1674  ;;  %v1645_v37 = vpop.xlane.xlu0 %1644 }
 0x2e2   : > { %v3096_v23 = vrot.slane %v1645_v37, %v7765_v14  ;;  %v3224_v37 = vrot.slane %v7196_v42, %v5847_v13  ;;  %v3170_v60 = vrot.slane %v7215_v56, %v7762_v0  ;;  %v3161_v13 = vsel %vm7797_vm1, %v3160_v32, %v3156_v25 }
 0x2e3   : > { %v3220_v56 = vsel %vm2016_vm5, %v3219_v12, %v3215_v49  ;;  %v3166_v50 = vsel %vm2051_vm10, %v3165_v51, %v3161_v13 }
 0x2e4   : > { %v3097_v22 = vsel %vm2065_vm12, %v3096_v23, %v3092_v16  ;;  %v3225_v39 = vsel %vm2023_vm6, %v3224_v37, %v3220_v56  ;;  %v3171_v30 = vsel %vm2058_vm11, %v3170_v60, %v3166_v50 }
 0x2e5   : > { %v1647_v36 = vpop.xlane.xlu1 %1646  ;;  %v7230_v43 = vpop.xlane.xlu0 %1704  ;;  %v3230_v8 = vsel %vm2030_vm7, %v3229_v53, %v3225_v39 }
 0x2e6   : > { %v3101_v20 = vrot.slane %v1647_v36, %v7767_v24  ;;  %v3244_v35 = vrot.slane %v7230_v43, %v7760_v34  ;;  %v3235_v21 = vsel %vm2037_vm8, %v3234_v48, %v3230_v8 }
 0x2e8   : > { %v3102_v42 = vsel %vm2072_vm13, %v3101_v20, %v3097_v22 }
 0x2e9   : > { %v1707_v15 = vpop.xlane.xlu1 %1706  ;;  %v1677_v31 = vpop.xlane.xlu0 %1676 }
 0x2ea   : > { %v3175_v11 = vrot.slane %v1677_v31, %v7765_v14  ;;  %v3249_v45 = vrot.slane %v1707_v15, %v7762_v0 }
 0x2ec   : > { %v3176_v9 = vsel %vm2065_vm12, %v3175_v11, %v3171_v30 }
 0x2ed   : > { %v1679_v47 = vpop.xlane.xlu1 %1678  ;;  %v1649_v5 = vpop.xlane.xlu0 %1648 }
 0x2ee   : > { %v3106_v46 = vrot.slane %v1649_v5, %v7770_v17  ;;  %v3180_v44 = vrot.slane %v1679_v47, %v7767_v24 }
 0x2f0   : > { %v3107_v55 = vsel %vm2079_vm14, %v3106_v46, %v3102_v42  ;;  %v3181_v19 = vsel %vm2072_vm13, %v3180_v44, %v3176_v9 }
 0x2f1   : > { %v3284_v26 = vsel %vm7798_vm2, %v3107_v55, %v7180_v6  ;;  %v1681_v36 = vpop.xlane.xlu1 %1680  ;;  %v1709_v1 = vpop.xlane.xlu0 %1708  ;;  %v3240_v6 = vsel %vm7799_vm3, %v3239_v28, %v3235_v21 }
 0x2f2   : > { %v3185_v41 = vrot.slane %v1681_v36, %v7770_v17  ;;  %v3254_v34 = vrot.slane %v1709_v1, %v7765_v14  ;;  %v3245_v58 = vsel %vm2051_vm10, %v3244_v35, %v3240_v6 }
 0x2f3   : > { %v3250_v33 = vsel %vm2058_vm11, %v3249_v45, %v3245_v58 }
 0x2f4   : > { %v3186_v43 = vsel %vm2079_vm14, %v3185_v41, %v3181_v19  ;;  %v3255_v14 = vsel %vm2065_vm12, %v3254_v34, %v3250_v33 }
 0x2f5   : > { %v3285_v0 = vsel %vm3276_vm15, %v3186_v43, %v3284_v26  ;;  %v1711_v38 = vpop.xlane.xlu0 %1710  ;;  %v1713_v62 = vpop.xlane.xlu1 %1712 }
 0x2f6   : > { %v3259_v63 = vrot.slane %v1711_v38, %v7767_v24  ;;  %v3264_v29 = vrot.slane %v1713_v62, %v7770_v17 }
 0x2f8   : > { %v3260_v40 = vsel %vm2072_vm13, %v3259_v63, %v3255_v14 }
 0x2f9   : > { %v3265_v10 = vsel %vm2079_vm14, %v3264_v29, %v3260_v40 }
 0x2fa   : > { %v3286_v4 = vsel %vm7800_vm4, %v3265_v10, %v3285_v0 }
 0x2fb   : > { %v4612_v24 = vadd.f32 %v6826_v3, %v3286_v4 }
 0x2fd   : > { %v4613_v17 = vadd.f32 %v4612_v24, %v6829_v2 }
 0x2ff   : > { %3974 = vst [vmem:[%s6857_s14 + $0x8] sm:$0xff] %v4613_v17 }
 0x300   : > { %4838 = shalt.err (!%p4835_p3)
}
 0x301   : > { %s4839_s16 = scalar_lea.hbm %s7318_s27, 256  ;;  %s4843_s24 = scalar_lea.hbm %s7366_s2, 512 }
 0x302   : > { %p4840_p12 = scmp.ne.s32.totalorder %s7318_s27, %s4839_s16  ;;  %p4844_p2 = scmp.lt.u32.totalorder %s7318_s27, %s7366_s2 }
 0x303   : > { %p4845_p4 = scmp.lt.u32.totalorder %s4843_s24, %s4839_s16  ;;  %p4847_p13 = scmp.lt.u32.totalorder %s4839_s16, %s7318_s27 }
 0x304   : > { %p4841_p8 = pnand %p4840_p12, %p7801_p1 }
 0x305   : > { %p4846_p6 = por %p4845_p4, %p4844_p2 }
 0x306   : > { %p4842_p0 = pneg %p4841_p8 }
 0x307   : > { %p4848_p11 = por %p4847_p13, %p4846_p6 }
 0x309   : > { %p4849_p10 = pnand %p4848_p11, %p4842_p0 }
 0x30b   : > { %4852 = shalt.err (!%p4849_p10)
}
 0x30c   : > { %s4905_s5 = smov 128   ;;  %s4906_s20 = smov 8  }
 0x30d   : > { %4631 = dma.vmem_to_hbm [thread:$0]  (%p7801_p1), %s7312_s17, 256, %s7318_s27, %s3976_s29, %s4905_s5, %s4905_s5, %s4906_s20  }
 0x30e PF: > { %s4004_s14 = sand.u32 1, %s4883_s9   ;;  %p7802_p5 = scmp.ne.s32.totalorder %s7557_s22, 0 }
 0x30f   : > { %p7803_p7 = scmp.ge.s32.totalorder %s4895_s12, 2  ;;  %s4005_s28 = scalar_lea.sflag [#allocation4], %s4004_s14 }
 0x311   : > { %p4641_p9 = pnand %p7803_p7, %p7802_p5 }
 0x313   : > { %4878 = dma.done.wait (!%p4641_p9), %s4005_s28, 256  }
 0x314   : > { %4880 = vsyncadd (!%p4641_p9), %s4005_s28, 4294967040  ;;  %p18_p3 = scmp.ge.s32.totalorder %s4947_s15, 4   ;;  %s7804_s9 = smov %s4887_s10 }
 0x315   : > { %s7805_s10 = smov %s4891_s11  ;;  %s7806_s11 = smov %s4959_s18 }
 0x316   : > { %s7807_s12 = smov %s4947_s15  ;;  %20 = sbr.rel (!%p18_p3) target bundleno = 7 (0x7), region = 86 }
 0x31d   :  { %4010 = vsyncpa [#allocation3], 1 }
 0x31e   :  { %4012 = vsyncpa [#allocation3 + $0x1], 1 }
 0x31f   :  { %4013 = vsyncpa [#allocation6], 1 }
 0x320   :  { %4015 = vsyncpa [#allocation6 + $0x1], 1 }
 0x321   :  { %4016 = vsyncpa [#allocation4], 1 }
 0x322   :  { %4018 = vsyncpa [#allocation4 + $0x1], 1 }

</bundles_post_ra>
